<compile_context>
chip_gen: v5e
topology: v5e:2x2
jax: 0.10.0
libtpu: 0.0.40
codegen_flags: <defaults>
</compile_context>

<pallas_src>
import functools

import jax
import jax.numpy as jnp
from jax import lax
from jax.experimental import pallas as pl
from jax.experimental.pallas import tpu as pltpu


def _cross_attention_kernel(q_ref, ctx_ref, wq_ref, wk_ref, wv_ref, wo_ref,
                            bias_ref, out_ref, k_scr, v_scr, q_scr, acc_ref, *,
                            heads, dim_head, lk_true, compute_dtype):
    """One grid step = one batch element x one Lq tile."""
    cd = compute_dtype
    qi = pl.program_id(1)

    # --- K/V projections: once per batch element, reused by every q tile. ---
    @pl.when(qi == 0)
    def _():
        ctx = ctx_ref[0]                                        # (Lk_pad, Dc) cd
        k_scr[...] = jnp.dot(ctx, wk_ref[...],
                             preferred_element_type=jnp.float32).astype(cd)
        v_scr[...] = jnp.dot(ctx, wv_ref[...],
                             preferred_element_type=jnp.float32).astype(cd)

    # --- Fused Q projection for this tile (scale already folded into Wq). ---
    x = q_ref[0]                                                # (block_q, Dq) cd
    q_scr[...] = jnp.dot(x, wq_ref[...],
                         preferred_element_type=jnp.float32).astype(cd)

    acc_ref[...] = jnp.zeros_like(acc_ref)

    block_q = acc_ref.shape[0]
    lk_pad = k_scr.shape[0]

    # Key-padding mask, hoisted out of the head loop (broadcasts aren't CSE'd).
    if lk_true < lk_pad:
        col = lax.broadcasted_iota(jnp.int32, (block_q, lk_pad), 1)
        key_mask = col < lk_true
    else:
        key_mask = None

    # --- Per-head attention + accumulated output projection. ---
    # `heads` is a small compile-time constant; per-iteration intermediates
    # die at the accumulator update, so live vreg pressure stays bounded.
    for h in range(heads):
        lo = h * dim_head
        q_h = q_scr[:, lo:lo + dim_head]                        # (block_q, dh) cd
        k_h = k_scr[:, lo:lo + dim_head]                        # (Lk_pad, dh)  cd
        v_h = v_scr[:, lo:lo + dim_head]                        # (Lk_pad, dh)  cd

        # Contract dh of both operands directly (no k.T materialization).
        s = lax.dot_general(q_h, k_h, (((1,), (1,)), ((), ())),
                            preferred_element_type=jnp.float32)  # (bq, Lk_pad)
        if key_mask is not None:
            s = jnp.where(key_mask, s, -jnp.inf)
        s = s - jnp.max(s, axis=-1, keepdims=True)
        p = jnp.exp(s)                                           # f32 (v5e-safe)
        inv = pl.reciprocal(jnp.sum(p, axis=-1, keepdims=True),
                            approx=True)                         # EUP slot
        o_h = jnp.dot(p.astype(cd), v_h,
                      preferred_element_type=jnp.float32) * inv  # (bq, dh) f32

        # Per-head output projection: Wo row slices are sublane-aligned, so no
        # lane-axis head concat is ever materialized.
        acc_ref[...] += jnp.dot(o_h.astype(cd), wo_ref[lo:lo + dim_head, :],
                                preferred_element_type=jnp.float32)

    out_ref[0] = (acc_ref[...] + bias_ref[...]).astype(out_ref.dtype)


def cross_attention(query, context, wq, wk, wv, wo, bias, *, heads, dim_head,
                    scale, block_q=None, compute_dtype=jnp.bfloat16,
                    vmem_cap_bytes=64 * 1024 * 1024):
    """query: (B, Lq, Dq) f32; context: (B, Lk, Dc) f32.

    Packed (in_dim, out_dim) weights (torch Linear weights transposed), heads
    laid out head-major along the H*dh axis:
      wq: (Dq, H*dh); wk, wv: (Dc, H*dh); wo: (H*dh, Dq); bias: (1, Dq).
    Set compute_dtype=jnp.float32 for exact parity (or on v5e-class parts
    where f32 softmax + f32 MXU is preferred over the bf16 fast path).
    """
    B, Lq, Dq = query.shape
    _, Lk, Dc = context.shape
    Hd = heads * dim_head
    assert wq.shape == (Dq, Hd) and wk.shape == (Dc, Hd) and wv.shape == (Dc, Hd)
    assert wo.shape == (Hd, Dq) and bias.shape == (1, Dq)

    cd = jnp.dtype(compute_dtype)
    row_align = 16 if cd.itemsize < 4 else 8

    if block_q is None:
        block_q = min(Lq, 256)
    assert Lq % block_q == 0, "Lq must divide evenly into q tiles"
    assert block_q == Lq or block_q % row_align == 0, (
        "block_q must be a multiple of 16 (bf16) / 8 (f32), or equal Lq")

    # Pad the context length to a lane-dense multiple of 128; padded keys are
    # masked to -inf inside the kernel.
    lk_pad = ((Lk + 127) // 128) * 128
    if lk_pad != Lk:
        context = jnp.pad(context, ((0, 0), (0, lk_pad - Lk), (0, 0)))

    # One-time weight prep OUTSIDE the kernel: fold the softmax scale into Wq
    # and cast all MXU operands to the compute dtype.
    q_in = query.astype(cd)
    c_in = context.astype(cd)
    wq_s = (wq * scale).astype(cd)
    wk_c = wk.astype(cd)
    wv_c = wv.astype(cd)
    wo_c = wo.astype(cd)
    bias_f32 = bias.astype(jnp.float32)       # added to the f32 accumulator

    n_q_tiles = Lq // block_q

    kernel = functools.partial(
        _cross_attention_kernel, heads=heads, dim_head=dim_head, lk_true=Lk,
        compute_dtype=cd)

    # VMEM budget: double-buffered activation tiles + (default double-buffered)
    # resident weights + scratch, with 2x headroom, capped at a v7x-safe limit.
    est = (2 * block_q * Dq * cd.itemsize                       # query tile
           + 2 * lk_pad * Dc * cd.itemsize                      # context tile
           + 2 * block_q * Dq * 4                               # output tile (f32)
           + 2 * (Dq * Hd + 2 * Dc * Hd + Hd * Dq) * cd.itemsize  # weights
           + 2 * Dq * 4                                         # bias
           + (2 * lk_pad + block_q) * Hd * cd.itemsize          # k/v/q scratch
           + block_q * Dq * 4)                                  # f32 accumulator
    vmem_limit_bytes = int(max(32 * 1024 * 1024, min(2 * est, vmem_cap_bytes)))

    out = pl.pallas_call(
        kernel,
        out_shape=jax.ShapeDtypeStruct((B, Lq, Dq), jnp.float32),
        grid_spec=pltpu.PrefetchScalarGridSpec(
            num_scalar_prefetch=0,
            grid=(B, n_q_tiles),
            in_specs=[
                pl.BlockSpec((1, block_q, Dq), lambda b, t: (b, t, 0)),  # query
                pl.BlockSpec((1, lk_pad, Dc), lambda b, t: (b, 0, 0)),   # context
                pl.BlockSpec((Dq, Hd), lambda b, t: (0, 0)),             # Wq*scale
                pl.BlockSpec((Dc, Hd), lambda b, t: (0, 0)),             # Wk
                pl.BlockSpec((Dc, Hd), lambda b, t: (0, 0)),             # Wv
                pl.BlockSpec((Hd, Dq), lambda b, t: (0, 0)),             # Wo
                pl.BlockSpec((1, Dq), lambda b, t: (0, 0)),              # bias
            ],
            out_specs=pl.BlockSpec((1, block_q, Dq), lambda b, t: (b, t, 0)),
            scratch_shapes=[
                pltpu.VMEM((lk_pad, Hd), cd),            # K, all heads
                pltpu.VMEM((lk_pad, Hd), cd),            # V, all heads
                pltpu.VMEM((block_q, Hd), cd),           # Q, all heads
                pltpu.VMEM((block_q, Dq), jnp.float32),  # output accumulator
            ],
        ),
        compiler_params=pltpu.CompilerParams(
            dimension_semantics=("parallel", "arbitrary"),
            vmem_limit_bytes=vmem_limit_bytes),
    )(q_in, c_in, wq_s, wk_c, wv_c, wo_c, bias_f32)

    return out


def cross_attention_ref(query, context, wq, wk, wv, wo, bias, *, heads,
                        dim_head, scale):
    """Pure-JAX f32 reference mirroring the PyTorch forward."""
    B, Lq, _ = query.shape
    _, Lk, _ = context.shape
    q = (query @ wq).reshape(B, Lq, heads, dim_head).transpose(0, 2, 1, 3)
    k = (context @ wk).reshape(B, Lk, heads, dim_head).transpose(0, 2, 1, 3)
    v = (context @ wv).reshape(B, Lk, heads, dim_head).transpose(0, 2, 1, 3)
    s = jnp.einsum("bhqd,bhkd->bhqk", q, k) * scale
    p = jax.nn.softmax(s, axis=-1)
    o = jnp.einsum("bhqk,bhkd->bhqd", p, v)
    o = o.transpose(0, 2, 1, 3).reshape(B, Lq, heads * dim_head)
    return o @ wo + bias


if __name__ == "__main__":
    # Small shapes consistent with the module defaults (heads=8, dim_head=64).
    # Lk=24 is deliberately not lane-aligned to exercise the pad+mask path.
    B, Lq, Lk = 2, 16, 24
    query_dim, context_dim = 128, 128
    heads, dim_head = 8, 64
    scale = dim_head ** (-0.5)
    Hd = heads * dim_head

    key = jax.random.PRNGKey(0)
    k0, k1, k2, k3, k4, k5, k6 = jax.random.split(key, 7)

    query = jax.random.normal(k0, (B, Lq, query_dim), dtype=jnp.float32)
    context = jax.random.normal(k1, (B, Lk, context_dim), dtype=jnp.float32)

    # Packed (in_dim, out_dim) weights, i.e. torch Linear weights transposed,
    # with the H*dh axis head-major (matches .view(B, L, H, dh)).
    wq = 0.05 * jax.random.normal(k2, (query_dim, Hd), dtype=jnp.float32)
    wk = 0.05 * jax.random.normal(k3, (context_dim, Hd), dtype=jnp.float32)
    wv = 0.05 * jax.random.normal(k4, (context_dim, Hd), dtype=jnp.float32)
    wo = 0.05 * jax.random.normal(k5, (Hd, query_dim), dtype=jnp.float32)
    bias = 0.05 * jax.random.normal(k6, (1, query_dim), dtype=jnp.float32)

    out = cross_attention(query, context, wq, wk, wv, wo, bias,
                          heads=heads, dim_head=dim_head, scale=scale)
    out = jax.block_until_ready(out)

    ref = cross_attention_ref(query, context, wq, wk, wv, wo, bias,
                              heads=heads, dim_head=dim_head, scale=scale)
    assert out.shape == (B, Lq, query_dim)
    # bf16 MXU operands + EUP approx reciprocal in the softmax denominator.
    max_err = float(jnp.max(jnp.abs(out - ref)))
    assert jnp.allclose(out, ref, atol=3e-2, rtol=3e-2), (
        f"mismatch vs reference (max abs err {max_err})")

    print("KERNEL_OK")
</pallas_src>

<mosaic_0001>
module attributes {stable_mosaic.version = 11 : i64} {
  func.func @_cross_attention_kernel(%arg0: i32, %arg1: i32, %arg2: memref<1x16x128xbf16, #tpu.memory_space<vmem>>, %arg3: memref<1x128x128xbf16, #tpu.memory_space<vmem>>, %arg4: memref<128x512xbf16, #tpu.memory_space<vmem>>, %arg5: memref<128x512xbf16, #tpu.memory_space<vmem>>, %arg6: memref<128x512xbf16, #tpu.memory_space<vmem>>, %arg7: memref<512x128xbf16, #tpu.memory_space<vmem>>, %arg8: memref<1x128xf32, #tpu.memory_space<vmem>>, %arg9: memref<1x16x128xf32, #tpu.memory_space<vmem>>, %arg10: memref<128x512xbf16, #tpu.memory_space<vmem>>, %arg11: memref<128x512xbf16, #tpu.memory_space<vmem>>, %arg12: memref<16x512xbf16, #tpu.memory_space<vmem>>, %arg13: memref<16x128xf32, #tpu.memory_space<vmem>>) attributes {dimension_semantics = [#tpu.dimension_semantics<parallel>, #tpu.dimension_semantics<arbitrary>], iteration_bounds = array<i64: 2, 1>, scalar_prefetch = 0 : i64, scratch_operands = 4 : i64, tpu.core_type = #tpu.core_type<tc>, window_params = [{transform_indices = @transform_0, window_bounds = array<i64: 1, 16, 128>}, {transform_indices = @transform_1, window_bounds = array<i64: 1, 128, 128>}, {pipeline_mode = #tpu.pipeline_mode<synchronous>, transform_indices = @transform_2, window_bounds = array<i64: 128, 512>}, {pipeline_mode = #tpu.pipeline_mode<synchronous>, transform_indices = @transform_3, window_bounds = array<i64: 128, 512>}, {pipeline_mode = #tpu.pipeline_mode<synchronous>, transform_indices = @transform_4, window_bounds = array<i64: 128, 512>}, {pipeline_mode = #tpu.pipeline_mode<synchronous>, transform_indices = @transform_5, window_bounds = array<i64: 512, 128>}, {pipeline_mode = #tpu.pipeline_mode<synchronous>, transform_indices = @transform_6, window_bounds = array<i64: 1, 128>}, {transform_indices = @transform_7, window_bounds = array<i64: 1, 16, 128>}]} {
    %c0_i32 = arith.constant 0 : i32
    %0 = arith.cmpi eq, %arg1, %c0_i32 : i32
    %1 = arith.extui %0 : i1 to i32
    %c0_i32_0 = arith.constant 0 : i32
    %2 = arith.cmpi ne, %1, %c0_i32_0 : i32
    scf.if %2 {
      %c0_154 = arith.constant 0 : index
      %c0_155 = arith.constant 0 : index
      %c0_156 = arith.constant 0 : index
      %213 = vector.load %arg3[%c0_154, %c0_155, %c0_156] : memref<1x128x128xbf16, #tpu.memory_space<vmem>>, vector<1x128x128xbf16>
      %214 = vector.shape_cast %213 : vector<1x128x128xbf16> to vector<128x128xbf16>
      %c0_157 = arith.constant 0 : index
      %c0_158 = arith.constant 0 : index
      %215 = vector.load %arg5[%c0_157, %c0_158] : memref<128x512xbf16, #tpu.memory_space<vmem>>, vector<128x512xbf16>
      %cst_159 = arith.constant dense<0.000000e+00> : vector<128x512xf32>
      %216 = tpu.matmul %214, %215, %cst_159 {dimension_numbers = #tpu.dot_dimension_numbers<[1], [0], [0], [1], [0, 0, 1, 1], [], []>} : vector<128x128xbf16>, vector<128x512xbf16>, vector<128x512xf32> -> vector<128x512xf32>
      %217 = arith.truncf %216 : vector<128x512xf32> to vector<128x512xbf16>
      %c0_160 = arith.constant 0 : index
      %c0_161 = arith.constant 0 : index
      %218 = vector.load %arg10[%c0_160, %c0_161] : memref<128x512xbf16, #tpu.memory_space<vmem>>, vector<128x512xbf16>
      tpu.vector_store %arg10[%c0_160, %c0_161], %217 {strides = array<i32>} : memref<128x512xbf16, #tpu.memory_space<vmem>>, vector<128x512xbf16>,
      %c0_162 = arith.constant 0 : index
      %c0_163 = arith.constant 0 : index
      %219 = vector.load %arg6[%c0_162, %c0_163] : memref<128x512xbf16, #tpu.memory_space<vmem>>, vector<128x512xbf16>
      %cst_164 = arith.constant dense<0.000000e+00> : vector<128x512xf32>
      %220 = tpu.matmul %214, %219, %cst_164 {dimension_numbers = #tpu.dot_dimension_numbers<[1], [0], [0], [1], [0, 0, 1, 1], [], []>} : vector<128x128xbf16>, vector<128x512xbf16>, vector<128x512xf32> -> vector<128x512xf32>
      %221 = arith.truncf %220 : vector<128x512xf32> to vector<128x512xbf16>
      %c0_165 = arith.constant 0 : index
      %c0_166 = arith.constant 0 : index
      %222 = vector.load %arg11[%c0_165, %c0_166] : memref<128x512xbf16, #tpu.memory_space<vmem>>, vector<128x512xbf16>
      tpu.vector_store %arg11[%c0_165, %c0_166], %221 {strides = array<i32>} : memref<128x512xbf16, #tpu.memory_space<vmem>>, vector<128x512xbf16>,
    } else {
    }
    %c0 = arith.constant 0 : index
    %c0_1 = arith.constant 0 : index
    %c0_2 = arith.constant 0 : index
    %3 = vector.load %arg2[%c0, %c0_1, %c0_2] : memref<1x16x128xbf16, #tpu.memory_space<vmem>>, vector<1x16x128xbf16>
    %4 = vector.shape_cast %3 : vector<1x16x128xbf16> to vector<16x128xbf16>
    %c0_3 = arith.constant 0 : index
    %c0_4 = arith.constant 0 : index
    %5 = vector.load %arg4[%c0_3, %c0_4] : memref<128x512xbf16, #tpu.memory_space<vmem>>, vector<128x512xbf16>
    %cst = arith.constant dense<0.000000e+00> : vector<16x512xf32>
    %6 = tpu.matmul %4, %5, %cst {dimension_numbers = #tpu.dot_dimension_numbers<[1], [0], [0], [1], [0, 0, 1, 1], [], []>} : vector<16x128xbf16>, vector<128x512xbf16>, vector<16x512xf32> -> vector<16x512xf32>
    %7 = arith.truncf %6 : vector<16x512xf32> to vector<16x512xbf16>
    %c0_5 = arith.constant 0 : index
    %c0_6 = arith.constant 0 : index
    %8 = vector.load %arg12[%c0_5, %c0_6] : memref<16x512xbf16, #tpu.memory_space<vmem>>, vector<16x512xbf16>
    tpu.vector_store %arg12[%c0_5, %c0_6], %7 {strides = array<i32>} : memref<16x512xbf16, #tpu.memory_space<vmem>>, vector<16x512xbf16>,
    %cst_7 = arith.constant 0.000000e+00 : f32
    %9 = vector.broadcast %cst_7 : f32 to vector<16x128xf32>
    %c0_8 = arith.constant 0 : index
    %c0_9 = arith.constant 0 : index
    %10 = vector.load %arg13[%c0_8, %c0_9] : memref<16x128xf32, #tpu.memory_space<vmem>>, vector<16x128xf32>
    tpu.vector_store %arg13[%c0_8, %c0_9], %9 {strides = array<i32>} : memref<16x128xf32, #tpu.memory_space<vmem>>, vector<16x128xf32>,
    %11 = tpu.iota {dimensions = array<i32: 1>} : vector<16x128xi32>
    %c24_i32 = arith.constant 24 : i32
    %12 = vector.broadcast %c24_i32 : i32 to vector<16x128xi32>
    %13 = arith.cmpi slt, %11, %12 : vector<16x128xi32>
    %c0_10 = arith.constant 0 : index
    %c0_11 = arith.constant 0 : index
    %14 = vector.load %arg12[%c0_10, %c0_11] : memref<16x512xbf16, #tpu.memory_space<vmem>>, vector<16x64xbf16>
    %c0_12 = arith.constant 0 : index
    %c0_13 = arith.constant 0 : index
    %15 = vector.load %arg10[%c0_12, %c0_13] : memref<128x512xbf16, #tpu.memory_space<vmem>>, vector<128x64xbf16>
    %c0_14 = arith.constant 0 : index
    %c0_15 = arith.constant 0 : index
    %16 = vector.load %arg11[%c0_14, %c0_15] : memref<128x512xbf16, #tpu.memory_space<vmem>>, vector<128x64xbf16>
    %cst_16 = arith.constant dense<0.000000e+00> : vector<16x128xf32>
    %17 = tpu.matmul %14, %15, %cst_16 {dimension_numbers = #tpu.dot_dimension_numbers<[1], [1], [0], [0], [0, 0, 1, 0], [], []>} : vector<16x64xbf16>, vector<128x64xbf16>, vector<16x128xf32> -> vector<16x128xf32>
    %cst_17 = arith.constant 0xFF800000 : f32
    %18 = vector.broadcast %cst_17 : f32 to vector<16x128xf32>
    %19 = arith.select %13, %17, %18 : vector<16x128xi1>, vector<16x128xf32>
    %cst_18 = arith.constant dense<0xFF800000> : vector<16xf32>
    %20 = vector.multi_reduction <maximumf>, %19, %cst_18 [1] : vector<16x128xf32> to vector<16xf32>
    %21 = vector.shape_cast %20 : vector<16xf32> to vector<16x1xf32>
    %22 = vector.broadcast %21 : vector<16x1xf32> to vector<16x128xf32>
    %23 = arith.subf %19, %22 : vector<16x128xf32>
    %24 = math.exp %23 : vector<16x128xf32>
    %cst_19 = arith.constant dense<0.000000e+00> : vector<16xf32>
    %25 = vector.multi_reduction <add>, %24, %cst_19 [1] : vector<16x128xf32> to vector<16xf32>
    %26 = vector.shape_cast %25 : vector<16xf32> to vector<16x1xf32>
    %27 = tpu.reciprocal %26 {approx = true} : vector<16x1xf32> -> vector<16x1xf32>
    %28 = arith.truncf %24 : vector<16x128xf32> to vector<16x128xbf16>
    %cst_20 = arith.constant dense<0.000000e+00> : vector<16x64xf32>
    %29 = tpu.matmul %28, %16, %cst_20 {dimension_numbers = #tpu.dot_dimension_numbers<[1], [0], [0], [1], [0, 0, 1, 1], [], []>} : vector<16x128xbf16>, vector<128x64xbf16>, vector<16x64xf32> -> vector<16x64xf32>
    %30 = vector.broadcast %27 : vector<16x1xf32> to vector<16x64xf32>
    %31 = arith.mulf %29, %30 : vector<16x64xf32>
    %c0_21 = arith.constant 0 : index
    %c0_22 = arith.constant 0 : index
    %32 = vector.load %arg13[%c0_21, %c0_22] : memref<16x128xf32, #tpu.memory_space<vmem>>, vector<16x128xf32>
    %33 = arith.truncf %31 : vector<16x64xf32> to vector<16x64xbf16>
    %c0_23 = arith.constant 0 : index
    %c0_24 = arith.constant 0 : index
    %34 = vector.load %arg7[%c0_23, %c0_24] : memref<512x128xbf16, #tpu.memory_space<vmem>>, vector<64x128xbf16>
    %cst_25 = arith.constant dense<0.000000e+00> : vector<16x128xf32>
    %35 = tpu.matmul %33, %34, %cst_25 {dimension_numbers = #tpu.dot_dimension_numbers<[1], [0], [0], [1], [0, 0, 1, 1], [], []>} : vector<16x64xbf16>, vector<64x128xbf16>, vector<16x128xf32> -> vector<16x128xf32>
    %36 = arith.addf %32, %35 : vector<16x128xf32>
    %c0_26 = arith.constant 0 : index
    %c0_27 = arith.constant 0 : index
    %37 = vector.load %arg13[%c0_26, %c0_27] : memref<16x128xf32, #tpu.memory_space<vmem>>, vector<16x128xf32>
    tpu.vector_store %arg13[%c0_26, %c0_27], %36 {strides = array<i32>} : memref<16x128xf32, #tpu.memory_space<vmem>>, vector<16x128xf32>,
    %c0_28 = arith.constant 0 : index
    %c64 = arith.constant 64 : index
    %38 = vector.load %arg12[%c0_28, %c64] : memref<16x512xbf16, #tpu.memory_space<vmem>>, vector<16x64xbf16>
    %c0_29 = arith.constant 0 : index
    %c64_30 = arith.constant 64 : index
    %39 = vector.load %arg10[%c0_29, %c64_30] : memref<128x512xbf16, #tpu.memory_space<vmem>>, vector<128x64xbf16>
    %c0_31 = arith.constant 0 : index
    %c64_32 = arith.constant 64 : index
    %40 = vector.load %arg11[%c0_31, %c64_32] : memref<128x512xbf16, #tpu.memory_space<vmem>>, vector<128x64xbf16>
    %cst_33 = arith.constant dense<0.000000e+00> : vector<16x128xf32>
    %41 = tpu.matmul %38, %39, %cst_33 {dimension_numbers = #tpu.dot_dimension_numbers<[1], [1], [0], [0], [0, 0, 1, 0], [], []>} : vector<16x64xbf16>, vector<128x64xbf16>, vector<16x128xf32> -> vector<16x128xf32>
    %cst_34 = arith.constant 0xFF800000 : f32
    %42 = vector.broadcast %cst_34 : f32 to vector<16x128xf32>
    %43 = arith.select %13, %41, %42 : vector<16x128xi1>, vector<16x128xf32>
    %cst_35 = arith.constant dense<0xFF800000> : vector<16xf32>
    %44 = vector.multi_reduction <maximumf>, %43, %cst_35 [1] : vector<16x128xf32> to vector<16xf32>
    %45 = vector.shape_cast %44 : vector<16xf32> to vector<16x1xf32>
    %46 = vector.broadcast %45 : vector<16x1xf32> to vector<16x128xf32>
    %47 = arith.subf %43, %46 : vector<16x128xf32>
    %48 = math.exp %47 : vector<16x128xf32>
    %cst_36 = arith.constant dense<0.000000e+00> : vector<16xf32>
    %49 = vector.multi_reduction <add>, %48, %cst_36 [1] : vector<16x128xf32> to vector<16xf32>
    %50 = vector.shape_cast %49 : vector<16xf32> to vector<16x1xf32>
    %51 = tpu.reciprocal %50 {approx = true} : vector<16x1xf32> -> vector<16x1xf32>
    %52 = arith.truncf %48 : vector<16x128xf32> to vector<16x128xbf16>
    %cst_37 = arith.constant dense<0.000000e+00> : vector<16x64xf32>
    %53 = tpu.matmul %52, %40, %cst_37 {dimension_numbers = #tpu.dot_dimension_numbers<[1], [0], [0], [1], [0, 0, 1, 1], [], []>} : vector<16x128xbf16>, vector<128x64xbf16>, vector<16x64xf32> -> vector<16x64xf32>
    %54 = vector.broadcast %51 : vector<16x1xf32> to vector<16x64xf32>
    %55 = arith.mulf %53, %54 : vector<16x64xf32>
    %c0_38 = arith.constant 0 : index
    %c0_39 = arith.constant 0 : index
    %56 = vector.load %arg13[%c0_38, %c0_39] : memref<16x128xf32, #tpu.memory_space<vmem>>, vector<16x128xf32>
    %57 = arith.truncf %55 : vector<16x64xf32> to vector<16x64xbf16>
    %c64_40 = arith.constant 64 : index
    %c0_41 = arith.constant 0 : index
    %58 = vector.load %arg7[%c64_40, %c0_41] : memref<512x128xbf16, #tpu.memory_space<vmem>>, vector<64x128xbf16>
    %cst_42 = arith.constant dense<0.000000e+00> : vector<16x128xf32>
    %59 = tpu.matmul %57, %58, %cst_42 {dimension_numbers = #tpu.dot_dimension_numbers<[1], [0], [0], [1], [0, 0, 1, 1], [], []>} : vector<16x64xbf16>, vector<64x128xbf16>, vector<16x128xf32> -> vector<16x128xf32>
    %60 = arith.addf %56, %59 : vector<16x128xf32>
    %c0_43 = arith.constant 0 : index
    %c0_44 = arith.constant 0 : index
    %61 = vector.load %arg13[%c0_43, %c0_44] : memref<16x128xf32, #tpu.memory_space<vmem>>, vector<16x128xf32>
    tpu.vector_store %arg13[%c0_43, %c0_44], %60 {strides = array<i32>} : memref<16x128xf32, #tpu.memory_space<vmem>>, vector<16x128xf32>,
    %c0_45 = arith.constant 0 : index
    %c128 = arith.constant 128 : index
    %62 = vector.load %arg12[%c0_45, %c128] : memref<16x512xbf16, #tpu.memory_space<vmem>>, vector<16x64xbf16>
    %c0_46 = arith.constant 0 : index
    %c128_47 = arith.constant 128 : index
    %63 = vector.load %arg10[%c0_46, %c128_47] : memref<128x512xbf16, #tpu.memory_space<vmem>>, vector<128x64xbf16>
    %c0_48 = arith.constant 0 : index
    %c128_49 = arith.constant 128 : index
    %64 = vector.load %arg11[%c0_48, %c128_49] : memref<128x512xbf16, #tpu.memory_space<vmem>>, vector<128x64xbf16>
    %cst_50 = arith.constant dense<0.000000e+00> : vector<16x128xf32>
    %65 = tpu.matmul %62, %63, %cst_50 {dimension_numbers = #tpu.dot_dimension_numbers<[1], [1], [0], [0], [0, 0, 1, 0], [], []>} : vector<16x64xbf16>, vector<128x64xbf16>, vector<16x128xf32> -> vector<16x128xf32>
    %cst_51 = arith.constant 0xFF800000 : f32
    %66 = vector.broadcast %cst_51 : f32 to vector<16x128xf32>
    %67 = arith.select %13, %65, %66 : vector<16x128xi1>, vector<16x128xf32>
    %cst_52 = arith.constant dense<0xFF800000> : vector<16xf32>
    %68 = vector.multi_reduction <maximumf>, %67, %cst_52 [1] : vector<16x128xf32> to vector<16xf32>
    %69 = vector.shape_cast %68 : vector<16xf32> to vector<16x1xf32>
    %70 = vector.broadcast %69 : vector<16x1xf32> to vector<16x128xf32>
    %71 = arith.subf %67, %70 : vector<16x128xf32>
    %72 = math.exp %71 : vector<16x128xf32>
    %cst_53 = arith.constant dense<0.000000e+00> : vector<16xf32>
    %73 = vector.multi_reduction <add>, %72, %cst_53 [1] : vector<16x128xf32> to vector<16xf32>
    %74 = vector.shape_cast %73 : vector<16xf32> to vector<16x1xf32>
    %75 = tpu.reciprocal %74 {approx = true} : vector<16x1xf32> -> vector<16x1xf32>
    %76 = arith.truncf %72 : vector<16x128xf32> to vector<16x128xbf16>
    %cst_54 = arith.constant dense<0.000000e+00> : vector<16x64xf32>
    %77 = tpu.matmul %76, %64, %cst_54 {dimension_numbers = #tpu.dot_dimension_numbers<[1], [0], [0], [1], [0, 0, 1, 1], [], []>} : vector<16x128xbf16>, vector<128x64xbf16>, vector<16x64xf32> -> vector<16x64xf32>
    %78 = vector.broadcast %75 : vector<16x1xf32> to vector<16x64xf32>
    %79 = arith.mulf %77, %78 : vector<16x64xf32>
    %c0_55 = arith.constant 0 : index
    %c0_56 = arith.constant 0 : index
    %80 = vector.load %arg13[%c0_55, %c0_56] : memref<16x128xf32, #tpu.memory_space<vmem>>, vector<16x128xf32>
    %81 = arith.truncf %79 : vector<16x64xf32> to vector<16x64xbf16>
    %c128_57 = arith.constant 128 : index
    %c0_58 = arith.constant 0 : index
    %82 = vector.load %arg7[%c128_57, %c0_58] : memref<512x128xbf16, #tpu.memory_space<vmem>>, vector<64x128xbf16>
    %cst_59 = arith.constant dense<0.000000e+00> : vector<16x128xf32>
    %83 = tpu.matmul %81, %82, %cst_59 {dimension_numbers = #tpu.dot_dimension_numbers<[1], [0], [0], [1], [0, 0, 1, 1], [], []>} : vector<16x64xbf16>, vector<64x128xbf16>, vector<16x128xf32> -> vector<16x128xf32>
    %84 = arith.addf %80, %83 : vector<16x128xf32>
    %c0_60 = arith.constant 0 : index
    %c0_61 = arith.constant 0 : index
    %85 = vector.load %arg13[%c0_60, %c0_61] : memref<16x128xf32, #tpu.memory_space<vmem>>, vector<16x128xf32>
    tpu.vector_store %arg13[%c0_60, %c0_61], %84 {strides = array<i32>} : memref<16x128xf32, #tpu.memory_space<vmem>>, vector<16x128xf32>,
    %c0_62 = arith.constant 0 : index
    %c192 = arith.constant 192 : index
    %86 = vector.load %arg12[%c0_62, %c192] : memref<16x512xbf16, #tpu.memory_space<vmem>>, vector<16x64xbf16>
    %c0_63 = arith.constant 0 : index
    %c192_64 = arith.constant 192 : index
    %87 = vector.load %arg10[%c0_63, %c192_64] : memref<128x512xbf16, #tpu.memory_space<vmem>>, vector<128x64xbf16>
    %c0_65 = arith.constant 0 : index
    %c192_66 = arith.constant 192 : index
    %88 = vector.load %arg11[%c0_65, %c192_66] : memref<128x512xbf16, #tpu.memory_space<vmem>>, vector<128x64xbf16>
    %cst_67 = arith.constant dense<0.000000e+00> : vector<16x128xf32>
    %89 = tpu.matmul %86, %87, %cst_67 {dimension_numbers = #tpu.dot_dimension_numbers<[1], [1], [0], [0], [0, 0, 1, 0], [], []>} : vector<16x64xbf16>, vector<128x64xbf16>, vector<16x128xf32> -> vector<16x128xf32>
    %cst_68 = arith.constant 0xFF800000 : f32
    %90 = vector.broadcast %cst_68 : f32 to vector<16x128xf32>
    %91 = arith.select %13, %89, %90 : vector<16x128xi1>, vector<16x128xf32>
    %cst_69 = arith.constant dense<0xFF800000> : vector<16xf32>
    %92 = vector.multi_reduction <maximumf>, %91, %cst_69 [1] : vector<16x128xf32> to vector<16xf32>
    %93 = vector.shape_cast %92 : vector<16xf32> to vector<16x1xf32>
    %94 = vector.broadcast %93 : vector<16x1xf32> to vector<16x128xf32>
    %95 = arith.subf %91, %94 : vector<16x128xf32>
    %96 = math.exp %95 : vector<16x128xf32>
    %cst_70 = arith.constant dense<0.000000e+00> : vector<16xf32>
    %97 = vector.multi_reduction <add>, %96, %cst_70 [1] : vector<16x128xf32> to vector<16xf32>
    %98 = vector.shape_cast %97 : vector<16xf32> to vector<16x1xf32>
    %99 = tpu.reciprocal %98 {approx = true} : vector<16x1xf32> -> vector<16x1xf32>
    %100 = arith.truncf %96 : vector<16x128xf32> to vector<16x128xbf16>
    %cst_71 = arith.constant dense<0.000000e+00> : vector<16x64xf32>
    %101 = tpu.matmul %100, %88, %cst_71 {dimension_numbers = #tpu.dot_dimension_numbers<[1], [0], [0], [1], [0, 0, 1, 1], [], []>} : vector<16x128xbf16>, vector<128x64xbf16>, vector<16x64xf32> -> vector<16x64xf32>
    %102 = vector.broadcast %99 : vector<16x1xf32> to vector<16x64xf32>
    %103 = arith.mulf %101, %102 : vector<16x64xf32>
    %c0_72 = arith.constant 0 : index
    %c0_73 = arith.constant 0 : index
    %104 = vector.load %arg13[%c0_72, %c0_73] : memref<16x128xf32, #tpu.memory_space<vmem>>, vector<16x128xf32>
    %105 = arith.truncf %103 : vector<16x64xf32> to vector<16x64xbf16>
    %c192_74 = arith.constant 192 : index
    %c0_75 = arith.constant 0 : index
    %106 = vector.load %arg7[%c192_74, %c0_75] : memref<512x128xbf16, #tpu.memory_space<vmem>>, vector<64x128xbf16>
    %cst_76 = arith.constant dense<0.000000e+00> : vector<16x128xf32>
    %107 = tpu.matmul %105, %106, %cst_76 {dimension_numbers = #tpu.dot_dimension_numbers<[1], [0], [0], [1], [0, 0, 1, 1], [], []>} : vector<16x64xbf16>, vector<64x128xbf16>, vector<16x128xf32> -> vector<16x128xf32>
    %108 = arith.addf %104, %107 : vector<16x128xf32>
    %c0_77 = arith.constant 0 : index
    %c0_78 = arith.constant 0 : index
    %109 = vector.load %arg13[%c0_77, %c0_78] : memref<16x128xf32, #tpu.memory_space<vmem>>, vector<16x128xf32>
    tpu.vector_store %arg13[%c0_77, %c0_78], %108 {strides = array<i32>} : memref<16x128xf32, #tpu.memory_space<vmem>>, vector<16x128xf32>,
    %c0_79 = arith.constant 0 : index
    %c256 = arith.constant 256 : index
    %110 = vector.load %arg12[%c0_79, %c256] : memref<16x512xbf16, #tpu.memory_space<vmem>>, vector<16x64xbf16>
    %c0_80 = arith.constant 0 : index
    %c256_81 = arith.constant 256 : index
    %111 = vector.load %arg10[%c0_80, %c256_81] : memref<128x512xbf16, #tpu.memory_space<vmem>>, vector<128x64xbf16>
    %c0_82 = arith.constant 0 : index
    %c256_83 = arith.constant 256 : index
    %112 = vector.load %arg11[%c0_82, %c256_83] : memref<128x512xbf16, #tpu.memory_space<vmem>>, vector<128x64xbf16>
    %cst_84 = arith.constant dense<0.000000e+00> : vector<16x128xf32>
    %113 = tpu.matmul %110, %111, %cst_84 {dimension_numbers = #tpu.dot_dimension_numbers<[1], [1], [0], [0], [0, 0, 1, 0], [], []>} : vector<16x64xbf16>, vector<128x64xbf16>, vector<16x128xf32> -> vector<16x128xf32>
    %cst_85 = arith.constant 0xFF800000 : f32
    %114 = vector.broadcast %cst_85 : f32 to vector<16x128xf32>
    %115 = arith.select %13, %113, %114 : vector<16x128xi1>, vector<16x128xf32>
    %cst_86 = arith.constant dense<0xFF800000> : vector<16xf32>
    %116 = vector.multi_reduction <maximumf>, %115, %cst_86 [1] : vector<16x128xf32> to vector<16xf32>
    %117 = vector.shape_cast %116 : vector<16xf32> to vector<16x1xf32>
    %118 = vector.broadcast %117 : vector<16x1xf32> to vector<16x128xf32>
    %119 = arith.subf %115, %118 : vector<16x128xf32>
    %120 = math.exp %119 : vector<16x128xf32>
    %cst_87 = arith.constant dense<0.000000e+00> : vector<16xf32>
    %121 = vector.multi_reduction <add>, %120, %cst_87 [1] : vector<16x128xf32> to vector<16xf32>
    %122 = vector.shape_cast %121 : vector<16xf32> to vector<16x1xf32>
    %123 = tpu.reciprocal %122 {approx = true} : vector<16x1xf32> -> vector<16x1xf32>
    %124 = arith.truncf %120 : vector<16x128xf32> to vector<16x128xbf16>
    %cst_88 = arith.constant dense<0.000000e+00> : vector<16x64xf32>
    %125 = tpu.matmul %124, %112, %cst_88 {dimension_numbers = #tpu.dot_dimension_numbers<[1], [0], [0], [1], [0, 0, 1, 1], [], []>} : vector<16x128xbf16>, vector<128x64xbf16>, vector<16x64xf32> -> vector<16x64xf32>
    %126 = vector.broadcast %123 : vector<16x1xf32> to vector<16x64xf32>
    %127 = arith.mulf %125, %126 : vector<16x64xf32>
    %c0_89 = arith.constant 0 : index
    %c0_90 = arith.constant 0 : index
    %128 = vector.load %arg13[%c0_89, %c0_90] : memref<16x128xf32, #tpu.memory_space<vmem>>, vector<16x128xf32>
    %129 = arith.truncf %127 : vector<16x64xf32> to vector<16x64xbf16>
    %c256_91 = arith.constant 256 : index
    %c0_92 = arith.constant 0 : index
    %130 = vector.load %arg7[%c256_91, %c0_92] : memref<512x128xbf16, #tpu.memory_space<vmem>>, vector<64x128xbf16>
    %cst_93 = arith.constant dense<0.000000e+00> : vector<16x128xf32>
    %131 = tpu.matmul %129, %130, %cst_93 {dimension_numbers = #tpu.dot_dimension_numbers<[1], [0], [0], [1], [0, 0, 1, 1], [], []>} : vector<16x64xbf16>, vector<64x128xbf16>, vector<16x128xf32> -> vector<16x128xf32>
    %132 = arith.addf %128, %131 : vector<16x128xf32>
    %c0_94 = arith.constant 0 : index
    %c0_95 = arith.constant 0 : index
    %133 = vector.load %arg13[%c0_94, %c0_95] : memref<16x128xf32, #tpu.memory_space<vmem>>, vector<16x128xf32>
    tpu.vector_store %arg13[%c0_94, %c0_95], %132 {strides = array<i32>} : memref<16x128xf32, #tpu.memory_space<vmem>>, vector<16x128xf32>,
    %c0_96 = arith.constant 0 : index
    %c320 = arith.constant 320 : index
    %134 = vector.load %arg12[%c0_96, %c320] : memref<16x512xbf16, #tpu.memory_space<vmem>>, vector<16x64xbf16>
    %c0_97 = arith.constant 0 : index
    %c320_98 = arith.constant 320 : index
    %135 = vector.load %arg10[%c0_97, %c320_98] : memref<128x512xbf16, #tpu.memory_space<vmem>>, vector<128x64xbf16>
    %c0_99 = arith.constant 0 : index
    %c320_100 = arith.constant 320 : index
    %136 = vector.load %arg11[%c0_99, %c320_100] : memref<128x512xbf16, #tpu.memory_space<vmem>>, vector<128x64xbf16>
    %cst_101 = arith.constant dense<0.000000e+00> : vector<16x128xf32>
    %137 = tpu.matmul %134, %135, %cst_101 {dimension_numbers = #tpu.dot_dimension_numbers<[1], [1], [0], [0], [0, 0, 1, 0], [], []>} : vector<16x64xbf16>, vector<128x64xbf16>, vector<16x128xf32> -> vector<16x128xf32>
    %cst_102 = arith.constant 0xFF800000 : f32
    %138 = vector.broadcast %cst_102 : f32 to vector<16x128xf32>
    %139 = arith.select %13, %137, %138 : vector<16x128xi1>, vector<16x128xf32>
    %cst_103 = arith.constant dense<0xFF800000> : vector<16xf32>
    %140 = vector.multi_reduction <maximumf>, %139, %cst_103 [1] : vector<16x128xf32> to vector<16xf32>
    %141 = vector.shape_cast %140 : vector<16xf32> to vector<16x1xf32>
    %142 = vector.broadcast %141 : vector<16x1xf32> to vector<16x128xf32>
    %143 = arith.subf %139, %142 : vector<16x128xf32>
    %144 = math.exp %143 : vector<16x128xf32>
    %cst_104 = arith.constant dense<0.000000e+00> : vector<16xf32>
    %145 = vector.multi_reduction <add>, %144, %cst_104 [1] : vector<16x128xf32> to vector<16xf32>
    %146 = vector.shape_cast %145 : vector<16xf32> to vector<16x1xf32>
    %147 = tpu.reciprocal %146 {approx = true} : vector<16x1xf32> -> vector<16x1xf32>
    %148 = arith.truncf %144 : vector<16x128xf32> to vector<16x128xbf16>
    %cst_105 = arith.constant dense<0.000000e+00> : vector<16x64xf32>
    %149 = tpu.matmul %148, %136, %cst_105 {dimension_numbers = #tpu.dot_dimension_numbers<[1], [0], [0], [1], [0, 0, 1, 1], [], []>} : vector<16x128xbf16>, vector<128x64xbf16>, vector<16x64xf32> -> vector<16x64xf32>
    %150 = vector.broadcast %147 : vector<16x1xf32> to vector<16x64xf32>
    %151 = arith.mulf %149, %150 : vector<16x64xf32>
    %c0_106 = arith.constant 0 : index
    %c0_107 = arith.constant 0 : index
    %152 = vector.load %arg13[%c0_106, %c0_107] : memref<16x128xf32, #tpu.memory_space<vmem>>, vector<16x128xf32>
    %153 = arith.truncf %151 : vector<16x64xf32> to vector<16x64xbf16>
    %c320_108 = arith.constant 320 : index
    %c0_109 = arith.constant 0 : index
    %154 = vector.load %arg7[%c320_108, %c0_109] : memref<512x128xbf16, #tpu.memory_space<vmem>>, vector<64x128xbf16>
    %cst_110 = arith.constant dense<0.000000e+00> : vector<16x128xf32>
    %155 = tpu.matmul %153, %154, %cst_110 {dimension_numbers = #tpu.dot_dimension_numbers<[1], [0], [0], [1], [0, 0, 1, 1], [], []>} : vector<16x64xbf16>, vector<64x128xbf16>, vector<16x128xf32> -> vector<16x128xf32>
    %156 = arith.addf %152, %155 : vector<16x128xf32>
    %c0_111 = arith.constant 0 : index
    %c0_112 = arith.constant 0 : index
    %157 = vector.load %arg13[%c0_111, %c0_112] : memref<16x128xf32, #tpu.memory_space<vmem>>, vector<16x128xf32>
    tpu.vector_store %arg13[%c0_111, %c0_112], %156 {strides = array<i32>} : memref<16x128xf32, #tpu.memory_space<vmem>>, vector<16x128xf32>,
    %c0_113 = arith.constant 0 : index
    %c384 = arith.constant 384 : index
    %158 = vector.load %arg12[%c0_113, %c384] : memref<16x512xbf16, #tpu.memory_space<vmem>>, vector<16x64xbf16>
    %c0_114 = arith.constant 0 : index
    %c384_115 = arith.constant 384 : index
    %159 = vector.load %arg10[%c0_114, %c384_115] : memref<128x512xbf16, #tpu.memory_space<vmem>>, vector<128x64xbf16>
    %c0_116 = arith.constant 0 : index
    %c384_117 = arith.constant 384 : index
    %160 = vector.load %arg11[%c0_116, %c384_117] : memref<128x512xbf16, #tpu.memory_space<vmem>>, vector<128x64xbf16>
    %cst_118 = arith.constant dense<0.000000e+00> : vector<16x128xf32>
    %161 = tpu.matmul %158, %159, %cst_118 {dimension_numbers = #tpu.dot_dimension_numbers<[1], [1], [0], [0], [0, 0, 1, 0], [], []>} : vector<16x64xbf16>, vector<128x64xbf16>, vector<16x128xf32> -> vector<16x128xf32>
    %cst_119 = arith.constant 0xFF800000 : f32
    %162 = vector.broadcast %cst_119 : f32 to vector<16x128xf32>
    %163 = arith.select %13, %161, %162 : vector<16x128xi1>, vector<16x128xf32>
    %cst_120 = arith.constant dense<0xFF800000> : vector<16xf32>
    %164 = vector.multi_reduction <maximumf>, %163, %cst_120 [1] : vector<16x128xf32> to vector<16xf32>
    %165 = vector.shape_cast %164 : vector<16xf32> to vector<16x1xf32>
    %166 = vector.broadcast %165 : vector<16x1xf32> to vector<16x128xf32>
    %167 = arith.subf %163, %166 : vector<16x128xf32>
    %168 = math.exp %167 : vector<16x128xf32>
    %cst_121 = arith.constant dense<0.000000e+00> : vector<16xf32>
    %169 = vector.multi_reduction <add>, %168, %cst_121 [1] : vector<16x128xf32> to vector<16xf32>
    %170 = vector.shape_cast %169 : vector<16xf32> to vector<16x1xf32>
    %171 = tpu.reciprocal %170 {approx = true} : vector<16x1xf32> -> vector<16x1xf32>
    %172 = arith.truncf %168 : vector<16x128xf32> to vector<16x128xbf16>
    %cst_122 = arith.constant dense<0.000000e+00> : vector<16x64xf32>
    %173 = tpu.matmul %172, %160, %cst_122 {dimension_numbers = #tpu.dot_dimension_numbers<[1], [0], [0], [1], [0, 0, 1, 1], [], []>} : vector<16x128xbf16>, vector<128x64xbf16>, vector<16x64xf32> -> vector<16x64xf32>
    %174 = vector.broadcast %171 : vector<16x1xf32> to vector<16x64xf32>
    %175 = arith.mulf %173, %174 : vector<16x64xf32>
    %c0_123 = arith.constant 0 : index
    %c0_124 = arith.constant 0 : index
    %176 = vector.load %arg13[%c0_123, %c0_124] : memref<16x128xf32, #tpu.memory_space<vmem>>, vector<16x128xf32>
    %177 = arith.truncf %175 : vector<16x64xf32> to vector<16x64xbf16>
    %c384_125 = arith.constant 384 : index
    %c0_126 = arith.constant 0 : index
    %178 = vector.load %arg7[%c384_125, %c0_126] : memref<512x128xbf16, #tpu.memory_space<vmem>>, vector<64x128xbf16>
    %cst_127 = arith.constant dense<0.000000e+00> : vector<16x128xf32>
    %179 = tpu.matmul %177, %178, %cst_127 {dimension_numbers = #tpu.dot_dimension_numbers<[1], [0], [0], [1], [0, 0, 1, 1], [], []>} : vector<16x64xbf16>, vector<64x128xbf16>, vector<16x128xf32> -> vector<16x128xf32>
    %180 = arith.addf %176, %179 : vector<16x128xf32>
    %c0_128 = arith.constant 0 : index
    %c0_129 = arith.constant 0 : index
    %181 = vector.load %arg13[%c0_128, %c0_129] : memref<16x128xf32, #tpu.memory_space<vmem>>, vector<16x128xf32>
    tpu.vector_store %arg13[%c0_128, %c0_129], %180 {strides = array<i32>} : memref<16x128xf32, #tpu.memory_space<vmem>>, vector<16x128xf32>,
    %c0_130 = arith.constant 0 : index
    %c448 = arith.constant 448 : index
    %182 = vector.load %arg12[%c0_130, %c448] : memref<16x512xbf16, #tpu.memory_space<vmem>>, vector<16x64xbf16>
    %c0_131 = arith.constant 0 : index
    %c448_132 = arith.constant 448 : index
    %183 = vector.load %arg10[%c0_131, %c448_132] : memref<128x512xbf16, #tpu.memory_space<vmem>>, vector<128x64xbf16>
    %c0_133 = arith.constant 0 : index
    %c448_134 = arith.constant 448 : index
    %184 = vector.load %arg11[%c0_133, %c448_134] : memref<128x512xbf16, #tpu.memory_space<vmem>>, vector<128x64xbf16>
    %cst_135 = arith.constant dense<0.000000e+00> : vector<16x128xf32>
    %185 = tpu.matmul %182, %183, %cst_135 {dimension_numbers = #tpu.dot_dimension_numbers<[1], [1], [0], [0], [0, 0, 1, 0], [], []>} : vector<16x64xbf16>, vector<128x64xbf16>, vector<16x128xf32> -> vector<16x128xf32>
    %cst_136 = arith.constant 0xFF800000 : f32
    %186 = vector.broadcast %cst_136 : f32 to vector<16x128xf32>
    %187 = arith.select %13, %185, %186 : vector<16x128xi1>, vector<16x128xf32>
    %cst_137 = arith.constant dense<0xFF800000> : vector<16xf32>
    %188 = vector.multi_reduction <maximumf>, %187, %cst_137 [1] : vector<16x128xf32> to vector<16xf32>
    %189 = vector.shape_cast %188 : vector<16xf32> to vector<16x1xf32>
    %190 = vector.broadcast %189 : vector<16x1xf32> to vector<16x128xf32>
    %191 = arith.subf %187, %190 : vector<16x128xf32>
    %192 = math.exp %191 : vector<16x128xf32>
    %cst_138 = arith.constant dense<0.000000e+00> : vector<16xf32>
    %193 = vector.multi_reduction <add>, %192, %cst_138 [1] : vector<16x128xf32> to vector<16xf32>
    %194 = vector.shape_cast %193 : vector<16xf32> to vector<16x1xf32>
    %195 = tpu.reciprocal %194 {approx = true} : vector<16x1xf32> -> vector<16x1xf32>
    %196 = arith.truncf %192 : vector<16x128xf32> to vector<16x128xbf16>
    %cst_139 = arith.constant dense<0.000000e+00> : vector<16x64xf32>
    %197 = tpu.matmul %196, %184, %cst_139 {dimension_numbers = #tpu.dot_dimension_numbers<[1], [0], [0], [1], [0, 0, 1, 1], [], []>} : vector<16x128xbf16>, vector<128x64xbf16>, vector<16x64xf32> -> vector<16x64xf32>
    %198 = vector.broadcast %195 : vector<16x1xf32> to vector<16x64xf32>
    %199 = arith.mulf %197, %198 : vector<16x64xf32>
    %c0_140 = arith.constant 0 : index
    %c0_141 = arith.constant 0 : index
    %200 = vector.load %arg13[%c0_140, %c0_141] : memref<16x128xf32, #tpu.memory_space<vmem>>, vector<16x128xf32>
    %201 = arith.truncf %199 : vector<16x64xf32> to vector<16x64xbf16>
    %c448_142 = arith.constant 448 : index
    %c0_143 = arith.constant 0 : index
    %202 = vector.load %arg7[%c448_142, %c0_143] : memref<512x128xbf16, #tpu.memory_space<vmem>>, vector<64x128xbf16>
    %cst_144 = arith.constant dense<0.000000e+00> : vector<16x128xf32>
    %203 = tpu.matmul %201, %202, %cst_144 {dimension_numbers = #tpu.dot_dimension_numbers<[1], [0], [0], [1], [0, 0, 1, 1], [], []>} : vector<16x64xbf16>, vector<64x128xbf16>, vector<16x128xf32> -> vector<16x128xf32>
    %204 = arith.addf %200, %203 : vector<16x128xf32>
    %c0_145 = arith.constant 0 : index
    %c0_146 = arith.constant 0 : index
    %205 = vector.load %arg13[%c0_145, %c0_146] : memref<16x128xf32, #tpu.memory_space<vmem>>, vector<16x128xf32>
    tpu.vector_store %arg13[%c0_145, %c0_146], %204 {strides = array<i32>} : memref<16x128xf32, #tpu.memory_space<vmem>>, vector<16x128xf32>,
    %c0_147 = arith.constant 0 : index
    %c0_148 = arith.constant 0 : index
    %206 = vector.load %arg13[%c0_147, %c0_148] : memref<16x128xf32, #tpu.memory_space<vmem>>, vector<16x128xf32>
    %c0_149 = arith.constant 0 : index
    %c0_150 = arith.constant 0 : index
    %207 = vector.load %arg8[%c0_149, %c0_150] : memref<1x128xf32, #tpu.memory_space<vmem>>, vector<1x128xf32>
    %208 = vector.broadcast %207 : vector<1x128xf32> to vector<16x128xf32>
    %209 = arith.addf %206, %208 : vector<16x128xf32>
    %c0_151 = arith.constant 0 : index
    %c0_152 = arith.constant 0 : index
    %c0_153 = arith.constant 0 : index
    %210 = vector.load %arg9[%c0_151, %c0_152, %c0_153] : memref<1x16x128xf32, #tpu.memory_space<vmem>>, vector<1x16x128xf32>
    %211 = vector.shape_cast %210 : vector<1x16x128xf32> to vector<16x128xf32>
    %212 = vector.shape_cast %209 : vector<16x128xf32> to vector<1x16x128xf32>
    tpu.vector_store %arg9[%c0_151, %c0_152, %c0_153], %212 {strides = array<i32>} : memref<1x16x128xf32, #tpu.memory_space<vmem>>, vector<1x16x128xf32>,
    return
  }
  func.func @transform_0(%arg0: i32, %arg1: i32) -> (i32, i32, i32) {
    %c0_i32 = arith.constant 0 : i32
    %c0_i32_0 = arith.constant 0 : i32
    return %arg0, %arg1, %c0_i32 : i32, i32, i32
  }
  func.func @transform_1(%arg0: i32, %arg1: i32) -> (i32, i32, i32) {
    %c0_i32 = arith.constant 0 : i32
    %c0_i32_0 = arith.constant 0 : i32
    %c0_i32_1 = arith.constant 0 : i32
    return %arg0, %c0_i32, %c0_i32_0 : i32, i32, i32
  }
  func.func @transform_2(%arg0: i32, %arg1: i32) -> (i32, i32) {
    %c0_i32 = arith.constant 0 : i32
    %c0_i32_0 = arith.constant 0 : i32
    %c0_i32_1 = arith.constant 0 : i32
    return %c0_i32, %c0_i32_0 : i32, i32
  }
  func.func @transform_3(%arg0: i32, %arg1: i32) -> (i32, i32) {
    %c0_i32 = arith.constant 0 : i32
    %c0_i32_0 = arith.constant 0 : i32
    %c0_i32_1 = arith.constant 0 : i32
    return %c0_i32, %c0_i32_0 : i32, i32
  }
  func.func @transform_4(%arg0: i32, %arg1: i32) -> (i32, i32) {
    %c0_i32 = arith.constant 0 : i32
    %c0_i32_0 = arith.constant 0 : i32
    %c0_i32_1 = arith.constant 0 : i32
    return %c0_i32, %c0_i32_0 : i32, i32
  }
  func.func @transform_5(%arg0: i32, %arg1: i32) -> (i32, i32) {
    %c0_i32 = arith.constant 0 : i32
    %c0_i32_0 = arith.constant 0 : i32
    %c0_i32_1 = arith.constant 0 : i32
    return %c0_i32, %c0_i32_0 : i32, i32
  }
  func.func @transform_6(%arg0: i32, %arg1: i32) -> (i32, i32) {
    %c0_i32 = arith.constant 0 : i32
    %c0_i32_0 = arith.constant 0 : i32
    %c0_i32_1 = arith.constant 0 : i32
    return %c0_i32, %c0_i32_0 : i32, i32
  }
  func.func @transform_7(%arg0: i32, %arg1: i32) -> (i32, i32, i32) {
    %c0_i32 = arith.constant 0 : i32
    %c0_i32_0 = arith.constant 0 : i32
    return %arg0, %arg1, %c0_i32 : i32, i32, i32
  }
}

</mosaic_0001>

<bundles_post_ra>
// kernel: tpu_custom_call.1
= control target key start
LH: loop header
LB: loop body
LE: loop exit
PB: predicated region body
PF: predicated region fallthrough
CT: control target
= control target key end

     0   :  { %s6549_s0 = inlined_call_operand.hbm [shape: bf16[2,16,128], index: 0, kind: input, shape index: {}]   ;;  %s6550_s1 = inlined_call_operand.hbm [shape: bf16[2,128,128], index: 1, kind: input, shape index: {}]   ;;  %s6551_s2 = inlined_call_operand.hbm [shape: bf16[128,512], index: 2, kind: input, shape index: {}]   ;;  %s6552_s3 = inlined_call_operand.hbm [shape: bf16[128,512], index: 3, kind: input, shape index: {}]   ;;  %s6553_s4 = inlined_call_operand.hbm [shape: bf16[128,512], index: 4, kind: input, shape index: {}]   ;;  %s6554_s5 = inlined_call_operand.hbm [shape: bf16[512,128], index: 5, kind: input, shape index: {}]   ;;  %s6555_s6 = inlined_call_operand.vmem [shape: f32[1,128], index: 6, kind: input, shape index: {}]   ;;  %s6556_s7 = inlined_call_operand.hbm [shape: f32[2,16,128], index: 7, kind: output, shape index: {}]  }
   0x1   :  { %6564 = sst [smem:[#allocation28_spill]] %s6551_s2 }
   0x2   :  { %6565 = sst [smem:[#allocation29_spill]] %s6552_s3 }
   0x3   :  { %6566 = sst [smem:[#allocation30_spill]] %s6553_s4 }
   0x4   :  { %6567 = sst [smem:[#allocation31_spill]] %s6554_s5 }
   0x5   :  { %12 = vsyncpa [#allocation7], 0 }
   0x6   :  { %14 = vsyncpa [#allocation7 + $0x1], 0 }
   0x7   :  { %15 = vsyncpa [#allocation10], 0 }
   0x8   :  { %17 = vsyncpa [#allocation10 + $0x1], 0 }
   0x9   :  { %18 = vsyncpa [#allocation13], 0 }
   0xa   :  { %19 = vsyncpa [#allocation16], 0 }
   0xb   :  { %20 = vsyncpa [#allocation8], 0 }
   0xc   :  { %22 = vsyncpa [#allocation8 + $0x1], 0  ;;  %s5984_s24 = smov 0   ;;  %s5986_s25 = smov 0  }
   0xd   :  { %s5988_s26 = smov 0   ;;  %s5990_s27 = smov 0  }
   0xe   :  { %s5992_s28 = smov 0   ;;  %s5994_s29 = smov 0  }
   0xf LB: > { %6568 = sst [smem:[#allocation24_spill]] %s5919_s26  ;;  %s6015_s30 = sadd.s32 4294967295, %s5931_s29   ;;  %s5931_s29 = sphi %s5994_s29, %s28_s29   ;;  %s5927_s28 = sphi %s5992_s28, %s6591_s28   ;;  %s5923_s27 = sphi %s5990_s27, %s6590_s27   ;;  %s5919_s26 = sphi %s5988_s26, %s6586_s26   ;;  %s5915_s25 = sphi %s5986_s25, %s6589_s25   ;;  %s5911_s24 = sphi %s5984_s24, %s6588_s24  }
  0x10   : > { %s4055_s8 = sadd.s32 4294967294, %s5931_s29   ;;  %p62_p0 = scmp.ne.s32.totalorder %s5915_s25, %s5911_s24 }
  0x11   : > { %p63_p1 = scmp.eq.s32.totalorder %s6015_s30, 0  ;;  %p219_p2 = scmp.eq.s32.totalorder %s6015_s30, 1 }
  0x12   : > { %p225_p3 = scmp.eq.s32.totalorder %s4055_s8, 1  ;;  %p4056_p5 = scmp.ge.s32.totalorder %s5931_s29, 1 }
  0x13   : > { %p6024_p4 = por %p63_p1, %p62_p0  ;;  %p232_p7 = scmp.lt.s32.totalorder %s5931_s29, 3 }
  0x14   : > { %p6029_p6 = por %p225_p3, %p62_p0  ;;  %s6572_s2 = sld [smem:[#allocation28_spill]] }
  0x15   : > { %p6037_p8 = pnand %p4056_p5, %p232_p7  ;;  %s5933_s15 = smov [#allocation11]  }
  0x16   : > { %s6570_s10 = scalar_select %p6029_p6, 1, 0 }
  0x17   : > { %p5487_p9 = pneg %p6037_p8  ;;  %s245_s16 = sshll.u32 %s5933_s15, 4  ;;  %s246_s16 = int_to_ptr.vmem [resolvable:$true] %s245_s16 }
  0x18   : > { %6571 = sst [smem:[#allocation25_spill]] %s6570_s10  ;;  %p4061_p11 = scmp.ge.s32.totalorder %s5931_s29, 2 }
  0x19   : > { %p6045_p10 = pnand %p5487_p9, %p63_p1  ;;  %s6575_s3 = sld [smem:[#allocation29_spill]] }
  0x1a   : > { %s243_s13 = sshll.u32 %s6572_s2, 4  ;;  %s5934_s21 = smov 256   ;;  %s244_s13 = int_to_ptr.hbm [resolvable:$true] %s243_s13 }
  0x1b   : > { %s5935_s22 = smov 16   ;;  %s5936_s23 = smov [#allocation12]  }
  0x1c   : > { %5490 = dma.hbm_to_vmem [thread:$0]  (!%p6045_p10), %s244_s13, 4096, %s246_s16, [#allocation10], %s5934_s21, %s5934_s21, %s5935_s22  }
  0x1d   : > { %s259_s8 = sshll.u32 %s5936_s23, 4  ;;  %s6576_s4 = sld [smem:[#allocation30_spill]]  ;;  %s260_s8 = int_to_ptr.vmem [resolvable:$true] %s259_s8 }
  0x1e   : > { %s6577_s5 = sld [smem:[#allocation31_spill]]  ;;  %s5937_s13 = smov [#allocation14]  }
  0x1f   : > { %s257_s20 = sshll.u32 %s6575_s3, 4  ;;  %s273_s16 = sshll.u32 %s5937_s13, 4  ;;  %s258_s20 = int_to_ptr.hbm [resolvable:$true] %s257_s20  ;;  %s274_s16 = int_to_ptr.vmem [resolvable:$true] %s273_s16 }
  0x20   : > { %5493 = dma.hbm_to_vmem [thread:$0]  (!%p6045_p10), %s258_s20, 4096, %s260_s8, [#allocation13], %s5934_s21, %s5934_s21, %s5935_s22  }
  0x21   : > { %s5938_s23 = smov [#allocation15]   ;;  %s6557_s20 = smov 64  }
  0x22   : > { %s287_s11 = sshll.u32 %s5938_s23, 4  ;;  %s6559_s8 = smov 4   ;;  %s288_s11 = int_to_ptr.vmem [resolvable:$true] %s287_s11 }
  0x23   : > { %s271_s15 = sshll.u32 %s6576_s4, 4  ;;  %s40_s12 = sadd.s32 1, %s5927_s28  ;;  %s272_s15 = int_to_ptr.hbm [resolvable:$true] %s271_s15 }
  0x24   : > { %s285_s2 = sshll.u32 %s6577_s5, 4  ;;  %s49_s18 = sadd.s32 1, %s5919_s26  ;;  %s286_s2 = int_to_ptr.hbm [resolvable:$true] %s285_s2 }
  0x25   : > { %5496 = dma.hbm_to_vmem [thread:$0]  (!%p6045_p10), %s272_s15, 4096, %s274_s16, [#allocation13], %s5934_s21, %s5934_s21, %s5935_s22  }
  0x26   : > { %5499 = dma.hbm_to_vmem [thread:$0]  (!%p6045_p10), %s286_s2, 4096, %s288_s11, [#allocation16], %s6557_s20, %s6557_s20, %s6559_s8  }
  0x27   : > { %p42_p12 = scmp.ge.s32.totalorder %s40_s12, 2  ;;  %p56_p13 = scmp.ne.s32.totalorder %s5919_s26, %s5915_s25 }
  0x28   : > { %p57_p0 = scmp.eq.s32.totalorder %s5931_s29, 0  ;;  %p5515_p3 = scmp.lt.s32.totalorder %s5931_s29, 2 }
  0x29   : > { %s6593_s12 = smov (%p42_p12, %s40_s12), 0  ;;  %p6084_p7 = por %p219_p2, %p56_p13 }
  0x2a   : > { %6578 = sst [smem:[#allocation26_spill]] %s6593_s12  ;;  %p6078_p5 = por %p57_p0, %p56_p13 }
  0x2b   : > { %s44_s2 = ssub.s32 %s5927_s28, %s6593_s12  ;;  %s304_s22 = sand.u32 1, %s5919_s26  }
  0x2c   : > { %p47_p9 = scmp.eq.s32.totalorder %s44_s2, 0  ;;  %s4062_s15 = sshll.u32 %s304_s22, 3 }
  0x2d   : > { %s5189_s19 = sshll.u32 %s5927_s28, 3  ;;  %s308_s8 = scalar_lea.vmem [#allocation6], %s4062_s15 }
  0x2e   : > { %s6093_s13 = scalar_select %p47_p9, %s5919_s26, %s49_s18  }
  0x2f   : > { %s315_s11 = scalar_lea.hbm %s6549_s0, %s5189_s19  ;;  %s318_s3 = sshll.u32 %s308_s8, 4  ;;  %s319_s3 = int_to_ptr.vmem [resolvable:$true] %s318_s3 }
  0x30   : > { %6581 = sst [smem:[#allocation27_spill]] %s6093_s13  ;;  %s316_s20 = sshll.u32 %s315_s11, 4  ;;  %s317_s20 = int_to_ptr.hbm [resolvable:$true] %s316_s20 }
  0x31   : > { %p5501_p2 = pnand %p5515_p3, %p6078_p5  ;;  %s328_s4 = sand.u32 1, %s5931_s29  }
  0x32   : > { %s4065_s5 = sshll.u32 %s304_s22, 6  ;;  %s305_s12 = scalar_lea.sflag [#allocation7], %s304_s22 }
  0x33   : > { %s6582_s2 = smov 4   ;;  %s6583_s10 = smov 64  }
  0x34   : > { %5503 = dma.hbm_to_vmem [thread:$0]  (!%p5501_p2), %s317_s20, 128, %s319_s3, %s305_s12, %s6583_s10, %s6583_s10, %s6582_s2  }
  0x35   : > { %s5190_s18 = sshll.u32 %s5927_s28, 6  ;;  %s332_s13 = scalar_lea.vmem [#allocation9], %s4065_s5 }
  0x36   : > { %s340_s26 = sshll.u32 %s332_s13, 4  ;;  %s337_s15 = scalar_lea.hbm %s6550_s1, %s5190_s18  ;;  %s341_s26 = int_to_ptr.vmem [resolvable:$true] %s340_s26 }
  0x37   : > { %s338_s8 = sshll.u32 %s337_s15, 4  ;;  %s329_s21 = scalar_lea.sflag [#allocation10], %s328_s4  ;;  %s339_s8 = int_to_ptr.hbm [resolvable:$true] %s338_s8 }
  0x38   : > { %5506 = dma.hbm_to_vmem [thread:$0]  (!%p5501_p2), %s339_s8, 1024, %s341_s26, %s329_s21, %s6583_s10, %s6583_s10, %s6582_s2  }
  0x39   : > { %352 = sbr.rel (%p6037_p8) target bundleno = 3198 (0xc7e), region = 48  ;;  %s6116_s3 = sand.u32 (!%p6037_p8), 1, %s5915_s25  }
  0x3a   : > { %s4069_s5 = sshll.u32 (!%p6037_p8), %s6116_s3, 3  ;;  %s355_s20 = scalar_lea.sflag (!%p6037_p8), [#allocation7], %s6116_s3 }
  0x3b   : > { %s6120_s12 = scalar_lea.vmem (!%p6037_p8), [#allocation6], %s4069_s5 }
  0x3e   : > { %5886 = dma.done.wait (%p6024_p4), %s355_s20, 128  }
  0x3f   : > { %5888 = vsyncadd (%p6024_p4), %s355_s20, 4294967168  ;;  %s364_s4 = sand.u32 1, %s6015_s30   ;;  %s4070_s26 = sshll.u32 %s6116_s3, 6 }
  0x40   : > { %s365_s10 = scalar_lea.sflag [#allocation10], %s364_s4  ;;  %s6128_s14 = scalar_lea.vmem [#allocation9], %s4070_s26 }
  0x41   : > { %5890 = dma.done.wait (%p6024_p4), %s365_s10, 1024  }
  0x42   : > { %5892 = vsyncadd (%p6024_p4), %s365_s10, 4294966272 }
  0x43   : > { %5894 = dma.done.wait (%p63_p1), [#allocation10], 4096  }
  0x44   : > { %5896 = vsyncadd (%p63_p1), [#allocation10], 4294963200 }
  0x45   : > { %5898 = dma.done.wait (%p63_p1), [#allocation13], 8192  }
  0x46   : > { %5900 = vsyncadd (%p63_p1), [#allocation13], 4294959104 }
  0x47   : > { %5902 = dma.done.wait (%p63_p1), [#allocation16], 4096  }
  0x48   : > { %5904 = vsyncadd (%p63_p1), [#allocation16], 4294963200  ;;  %v4222_v0 = vld [vmem:[#allocation12 + $0xe0] sm:$0xf]  ;;  %v5229_v1 = vld [vmem:[#allocation12 + $0xec] sm:$0xf0] }
  0x49   : > { %v5227_v2 = vld [vmem:[#allocation12 + $0xe4] sm:$0xf]  ;;  %v4223_v3 = vor.u32 %v5229_v1, %v4222_v0  ;;  %v4224_v4 = vld [vmem:[#allocation12 + $0xf0] sm:$0xf0]  ;;  %v4206_v5 = vld [vmem:[#allocation12 + $0xc0] sm:$0xf] }
  0x4a   : > { %v5225_v6 = vld [vmem:[#allocation12 + $0xcc] sm:$0xf0]  ;;  %v4227_v7 = vor.u32 %v5227_v2, %v4224_v4  ;;  %v5223_v8 = vld [vmem:[#allocation12 + $0xc4] sm:$0xf]  ;;  %v4208_v9 = vld [vmem:[#allocation12 + $0xd0] sm:$0xf0] }
  0x4b   : > { %688 = vmatpush.bf16.msra.mxu0 %v4223_v3  ;;  %v4207_v10 = vor.u32 %v5225_v6, %v4206_v5  ;;  %v4211_v11 = vor.u32 %v5223_v8, %v4208_v9  ;;  %v4190_v12 = vld [vmem:[#allocation12 + $0xa0] sm:$0xf]  ;;  %v5221_v13 = vld [vmem:[#allocation12 + $0xac] sm:$0xf0]  ;;  %v5219_v14 = vld [vmem:[#allocation12 + $0xa4] sm:$0xf] }
  0x4c   : > { %737 = vmatpush.bf16.msra.mxu1 %v4227_v7  ;;  %v4192_v15 = vld [vmem:[#allocation12 + $0xb0] sm:$0xf0]  ;;  %v4191_v16 = vor.u32 %v5221_v13, %v4190_v12  ;;  %v4174_v18 = vld [vmem:[#allocation12 + $0x80] sm:$0xf]  ;;  %v5217_v19 = vld [vmem:[#allocation12 + $0x8c] sm:$0xf0] }
  0x4d   : > { %v4195_v17 = vor.u32 %v5219_v14, %v4192_v15  ;;  %v5215_v20 = vld [vmem:[#allocation12 + $0x84] sm:$0xf]  ;;  %v4176_v21 = vld [vmem:[#allocation12 + $0x90] sm:$0xf0]  ;;  %v4175_v22 = vor.u32 %v5217_v19, %v4174_v18  ;;  %v4158_v24 = vld [vmem:[#allocation12 + $0x60] sm:$0xf] }
  0x4e   : > { %v4179_v23 = vor.u32 %v5215_v20, %v4176_v21  ;;  %v5213_v25 = vld [vmem:[#allocation12 + $0x6c] sm:$0xf0]  ;;  %v5211_v26 = vld [vmem:[#allocation12 + $0x64] sm:$0xf]  ;;  %v4160_v27 = vld [vmem:[#allocation12 + $0x70] sm:$0xf0] }
  0x4f   : > { %689 = vmatpush.bf16.msra.mxu0 %v4207_v10  ;;  %v4159_v28 = vor.u32 %v5213_v25, %v4158_v24  ;;  %v4163_v29 = vor.u32 %v5211_v26, %v4160_v27  ;;  %v4142_v30 = vld [vmem:[#allocation12 + $0x40] sm:$0xf]  ;;  %v5209_v31 = vld [vmem:[#allocation12 + $0x4c] sm:$0xf0]  ;;  %v5207_v32 = vld [vmem:[#allocation12 + $0x44] sm:$0xf] }
  0x50   : > { %738 = vmatpush.bf16.msra.mxu1 %v4211_v11  ;;  %v4144_v33 = vld [vmem:[#allocation12 + $0x50] sm:$0xf0]  ;;  %v4143_v34 = vor.u32 %v5209_v31, %v4142_v30  ;;  %v4126_v36 = vld [vmem:[#allocation12 + $0x20] sm:$0xf]  ;;  %v5205_v37 = vld [vmem:[#allocation12 + $0x2c] sm:$0xf0] }
  0x51   : > { %v4147_v35 = vor.u32 %v5207_v32, %v4144_v33  ;;  %v5203_v38 = vld [vmem:[#allocation12 + $0x24] sm:$0xf]  ;;  %v4128_v39 = vld [vmem:[#allocation12 + $0x30] sm:$0xf0]  ;;  %v4127_v40 = vor.u32 %v5205_v37, %v4126_v36  ;;  %v4110_v42 = vld [vmem:[#allocation12] sm:$0xf] }
  0x52   : > { %v4131_v41 = vor.u32 %v5203_v38, %v4128_v39  ;;  %v5201_v43 = vld [vmem:[#allocation12 + $0xc] sm:$0xf0]  ;;  %v5199_v44 = vld [vmem:[#allocation12 + $0x4] sm:$0xf]  ;;  %v4112_v45 = vld [vmem:[#allocation12 + $0x10] sm:$0xf0] }
  0x53   : > { %690 = vmatpush.bf16.msra.mxu0 %v4191_v16  ;;  %v4350_v46 = vld [vmem:[#allocation14 + $0xe0] sm:$0xf]  ;;  %v5261_v47 = vld [vmem:[#allocation14 + $0xec] sm:$0xf0]  ;;  %v5259_v48 = vld [vmem:[#allocation14 + $0xe4] sm:$0xf]  ;;  %v4111_v50 = vor.u32 %v5201_v43, %v4110_v42  ;;  %v4115_v51 = vor.u32 %v5199_v44, %v4112_v45 }
  0x54   : > { %739 = vmatpush.bf16.msra.mxu1 %v4195_v17  ;;  %v4352_v49 = vld [vmem:[#allocation14 + $0xf0] sm:$0xf0]  ;;  %v4351_v52 = vor.u32 %v5261_v47, %v4350_v46  ;;  %v4334_v54 = vld [vmem:[#allocation14 + $0xc0] sm:$0xf]  ;;  %v5257_v55 = vld [vmem:[#allocation14 + $0xcc] sm:$0xf0] }
  0x55   : > { %v4355_v53 = vor.u32 %v5259_v48, %v4352_v49  ;;  %v6147_v56 = vld [vmem:[%s6128_s14] sm:$0xff]  ;;  %v4336_v58 = vld [vmem:[#allocation14 + $0xd0] sm:$0xf0]  ;;  %v4335_v59 = vor.u32 %v5257_v55, %v4334_v54  ;;  %v5253_v62 = vld [vmem:[#allocation14 + $0xac] sm:$0xf0]  ;;  %s5941_s30 = smov 64  }
  0x56   : > { %v5255_v57 = vld [vmem:[#allocation14 + $0xc4] sm:$0xf]  ;;  %v4318_v61 = vld [vmem:[#allocation14 + $0xa0] sm:$0xf]  ;;  %v4320_v1 = vld [vmem:[#allocation14 + $0xb0] sm:$0xf0] }
  0x57   : > { %691 = vmatpush.bf16.msra.mxu0 %v4175_v22  ;;  %v4339_v60 = vor.u32 %v5255_v57, %v4336_v58  ;;  %v5251_v63 = vld [vmem:[#allocation14 + $0xa4] sm:$0xf]  ;;  %v4319_v0 = vor.u32 %v5253_v62, %v4318_v61  ;;  %v6152_v3 = vld [vmem:[%s6128_s14 + $0x8] sm:$0xff]  ;;  %v4302_v4 = vld [vmem:[#allocation14 + $0x80] sm:$0xf]  ;;  %vm1748_vm0 = vcmask 523264  }
  0x58   : > { %740 = vmatpush.bf16.msra.mxu1 %v4179_v23  ;;  %v4323_v2 = vor.u32 %v5251_v63, %v4320_v1  ;;  %v5249_v5 = vld [vmem:[#allocation14 + $0x8c] sm:$0xf0]  ;;  %v5247_v6 = vld [vmem:[#allocation14 + $0x84] sm:$0xf]  ;;  %v4304_v8 = vld [vmem:[#allocation14 + $0x90] sm:$0xf0] }
  0x59   : > { %v4303_v7 = vor.u32 %v5249_v5, %v4302_v4  ;;  %v4307_v9 = vor.u32 %v5247_v6, %v4304_v8  ;;  %v6157_v10 = vld [vmem:[%s6128_s14 + $0x10] sm:$0xff]  ;;  %v4286_v11 = vld [vmem:[#allocation14 + $0x60] sm:$0xf]  ;;  %v5243_v13 = vld [vmem:[#allocation14 + $0x64] sm:$0xf]  ;;  %s4075_s9 = sshll.u32 %s6116_s3, 4 }
  0x5a   : > { %v5245_v12 = vld [vmem:[#allocation14 + $0x6c] sm:$0xf0]  ;;  %v4288_v15 = vld [vmem:[#allocation14 + $0x70] sm:$0xf0]  ;;  %v6162_v17 = vld [vmem:[%s6128_s14 + $0x18] sm:$0xff]  ;;  %s5464_s23 = sshll.u32 %s5923_s27, 4 }
  0x5b   : > { %692 = vmatpush.bf16.msra.mxu0 %v4159_v28  ;;  %v4287_v14 = vor.u32 %v5245_v12, %v4286_v11  ;;  %v4291_v16 = vor.u32 %v5243_v13, %v4288_v15  ;;  %v4270_v18 = vld [vmem:[#allocation14 + $0x40] sm:$0xf]  ;;  %v5241_v19 = vld [vmem:[#allocation14 + $0x4c] sm:$0xf0]  ;;  %v5239_v20 = vld [vmem:[#allocation14 + $0x44] sm:$0xf]  ;;  %s3902_s16 = scalar_lea.hbm %s6556_s7, %s5464_s23 }
  0x5c   : > { %741 = vmatpush.bf16.msra.mxu1 %v4163_v29  ;;  %v4271_v21 = vor.u32 %v5241_v19, %v4270_v18  ;;  %v4272_v22 = vld [vmem:[#allocation14 + $0x50] sm:$0xf0]  ;;  %v6167_v24 = vld [vmem:[%s6128_s14 + $0x20] sm:$0xff]  ;;  %v5237_v26 = vld [vmem:[#allocation14 + $0x2c] sm:$0xf0]  ;;  %s424_s11 = scalar_lea.vmem [#allocation17], %s4075_s9 }
  0x5d   : > { %v4275_v23 = vor.u32 %v5239_v20, %v4272_v22  ;;  %v4254_v25 = vld [vmem:[#allocation14 + $0x20] sm:$0xf]  ;;  %v5235_v27 = vld [vmem:[#allocation14 + $0x24] sm:$0xf]  ;;  %v4256_v29 = vld [vmem:[#allocation14 + $0x30] sm:$0xf0] }
  0x5e   : > { %v4255_v28 = vor.u32 %v5237_v26, %v4254_v25  ;;  %v4259_v30 = vor.u32 %v5235_v27, %v4256_v29  ;;  %v6172_v31 = vld [vmem:[%s6128_s14 + $0x28] sm:$0xff]  ;;  %v4238_v32 = vld [vmem:[#allocation14] sm:$0xf]  ;;  %v5233_v33 = vld [vmem:[#allocation14 + $0xc] sm:$0xf0]  ;;  %s3903_s19 = sshll.u32 %s424_s11, 4  ;;  %s3904_s19 = int_to_ptr.vmem [resolvable:$true] %s3903_s19 }
  0x5f   : > { %693 = vmatpush.bf16.msra.mxu0 %v4143_v34  ;;  %v5231_v34 = vld [vmem:[#allocation14 + $0x4] sm:$0xf]  ;;  %v4240_v36 = vld [vmem:[#allocation14 + $0x10] sm:$0xf0]  ;;  %v4482_v39 = vld [vmem:[#allocation11 + $0xe0] sm:$0xf] }
  0x60   : > { %742 = vmatpush.bf16.msra.mxu1 %v4147_v35  ;;  %v4239_v35 = vor.u32 %v5233_v33, %v4238_v32  ;;  %v4243_v37 = vor.u32 %v5231_v34, %v4240_v36  ;;  %v6177_v38 = vld [vmem:[%s6128_s14 + $0x30] sm:$0xff]  ;;  %v6182_v45 = vld [vmem:[%s6128_s14 + $0x38] sm:$0xff]  ;;  %v4466_v46 = vld [vmem:[#allocation11 + $0xc0] sm:$0xf]  ;;  %s3905_s15 = sshll.u32 %s3902_s16, 4  ;;  %s3889_s8 = scalar_lea.sflag [#allocation8], %s6116_s3  ;;  %s3906_s15 = int_to_ptr.hbm [resolvable:$true] %s3905_s15 }
  0x61   : > { %v4484_v43 = vld [vmem:[#allocation11 + $0xf0] sm:$0xf0]  ;;  %v5290_v47 = vld [vmem:[#allocation11 + $0xcc] sm:$0xf0]  ;;  %v5288_v48 = vld [vmem:[#allocation11 + $0xc4] sm:$0xf] }
  0x62   : > { %v4467_v49 = vor.u32 %v5290_v47, %v4466_v46  ;;  %v4450_v55 = vld [vmem:[#allocation11 + $0xa0] sm:$0xf]  ;;  %v5286_v57 = vld [vmem:[#allocation11 + $0xac] sm:$0xf0]  ;;  %v5280_v8 = vld [vmem:[#allocation11 + $0x84] sm:$0xf] }
  0x63   : > { %694 = vmatpush.bf16.msra.mxu0 %v4127_v40  ;;  %v5294_v40 = vld [vmem:[#allocation11 + $0xec] sm:$0xf0]  ;;  %v4451_v58 = vor.u32 %v5286_v57, %v4450_v55  ;;  %v4434_v5 = vld [vmem:[#allocation11 + $0x80] sm:$0xf]  ;;  %v5228_v15 = vld [vmem:[#allocation12 + $0xec] sm:$0xf] }
  0x64   : > { %743 = vmatpush.bf16.msra.mxu1 %v4131_v41  ;;  %v5292_v41 = vld [vmem:[#allocation11 + $0xe4] sm:$0xf]  ;;  %v4483_v42 = vor.u32 %v5294_v40, %v4482_v39  ;;  %v5282_v6 = vld [vmem:[#allocation11 + $0x8c] sm:$0xf0]  ;;  %v5224_v22 = vld [vmem:[#allocation12 + $0xcc] sm:$0xf] }
  0x65   : > { %v4487_v44 = vor.u32 %v5292_v41, %v4484_v43  ;;  %v4418_v25 = vld [vmem:[#allocation11 + $0x60] sm:$0xf]  ;;  %v5278_v26 = vld [vmem:[#allocation11 + $0x6c] sm:$0xf0]  ;;  %v5276_v29 = vld [vmem:[#allocation11 + $0x64] sm:$0xf] }
  0x66   : > { %v5220_v33 = vld [vmem:[#allocation12 + $0xac] sm:$0xf]  ;;  %v4200_v34 = vld [vmem:[#allocation12 + $0xb8] sm:$0xf0]  ;;  %v5272_v57 = vld [vmem:[#allocation11 + $0x44] sm:$0xf] }
  0x67   : > { %695 = vmatpush.bf16.msra.mxu0 %v4111_v50  ;;  %v4468_v50 = vld [vmem:[#allocation11 + $0xd0] sm:$0xf0]  ;;  %v4203_v36 = vor.u32 %v5220_v33, %v4200_v34  ;;  %v5216_v40 = vld [vmem:[#allocation12 + $0x8c] sm:$0xf]  ;;  %v4184_v41 = vld [vmem:[#allocation12 + $0x98] sm:$0xf0] }
  0x68   : > { %744 = vmatpush.bf16.msra.mxu1 %v4115_v51  ;;  %v4471_v51 = vor.u32 %v5288_v48, %v4468_v50  ;;  %v5212_v43 = vld [vmem:[#allocation12 + $0x6c] sm:$0xf]  ;;  %v4166_v34 = vld [vmem:[#allocation12 + $0x68] sm:$0xf]  ;;  %s5847_s27 = sshra.s32 %s3906_s15, 4  ;;  %s5848_s27 = int_to_ptr.hbm [resolvable:$true] %s5847_s27 }
  0x69   : > { %v5208_v50 = vld [vmem:[#allocation12 + $0x4c] sm:$0xf]  ;;  %s5849_s21 = scalar_lea.hbm %s5848_s27, 16  ;;  %p5854_p10 = scmp.lt.s32.totalorder %s5848_s27, %s6556_s7 }
  0x6a   : > { %696 = vmatmul.bf16.vlgmr.msra.gmra.mxu0 %v6147_v56  ;;  %p5850_p1 = scmp.ne.s32.totalorder %s5848_s27, %s5849_s21 }
  0x6b   : > { %1140 = vmatpush.bf16.msrb.mxu0 %v4351_v52  ;;  %745 = vmatmul.bf16.vlgmr.msra.gmra.mxu1 %v6147_v56 }
  0x6c   : > { %1189 = vmatpush.bf16.msrb.mxu1 %v4355_v53  ;;  %p5851_p4 = pnand %p5850_p1, %p6084_p7 }
  0x6e   : > { %p5852_p8 = pneg %p5851_p4 }
  0x6f   : > { %1141 = vmatpush.bf16.msrb.mxu0 %v4335_v59  ;;  %v5284_v59 = vld [vmem:[#allocation11 + $0xa4] sm:$0xf] }
  0x70   : > { %1190 = vmatpush.bf16.msrb.mxu1 %v4339_v60  ;;  %v4452_v60 = vld [vmem:[#allocation11 + $0xb0] sm:$0xf0] }
  0x71   : > { %v4455_v61 = vor.u32 %v5284_v59, %v4452_v60  ;;  %v4230_v60 = vld [vmem:[#allocation12 + $0xe8] sm:$0xf] }
  0x73   : > { %1142 = vmatpush.bf16.msrb.mxu0 %v4319_v0 }
  0x74   : > { %1191 = vmatpush.bf16.msrb.mxu1 %v4323_v2 }
  0x77   : > { %1143 = vmatpush.bf16.msrb.mxu0 %v4303_v7  ;;  %v4435_v7 = vor.u32 %v5282_v6, %v4434_v5  ;;  %v4214_v6 = vld [vmem:[#allocation12 + $0xc8] sm:$0xf] }
  0x78   : > { %1192 = vmatpush.bf16.msrb.mxu1 %v4307_v9  ;;  %v4436_v9 = vld [vmem:[#allocation11 + $0x90] sm:$0xf0] }
  0x79   : > { %v4439_v11 = vor.u32 %v5280_v8, %v4436_v9  ;;  %v5200_v9 = vld [vmem:[#allocation12 + $0xc] sm:$0xf] }
  0x7a   : > { %701 = vmatmul.bf16.gmra.mxu0 %v6152_v3 }
  0x7b   : > { %750 = vmatmul.bf16.gmra.mxu1 %v6152_v3  ;;  %1144 = vmatpush.bf16.msrb.mxu0 %v4287_v14 }
  0x7c   : > { %1193 = vmatpush.bf16.msrb.mxu1 %v4291_v16  ;;  %v4232_v16 = vld [vmem:[#allocation12 + $0xf8] sm:$0xf0] }
  0x7d   : > { %v4235_v19 = vor.u32 %v5228_v15, %v4232_v16 }
  0x7f   : > { %1145 = vmatpush.bf16.msrb.mxu0 %v4271_v21  ;;  %835 = vmatpush.bf16.msra.mxu3 %v4235_v19 }
  0x80   : > { %1194 = vmatpush.bf16.msrb.mxu1 %v4275_v23  ;;  %v4216_v23 = vld [vmem:[#allocation12 + $0xd8] sm:$0xf0] }
  0x81   : > { %v4219_v27 = vor.u32 %v5224_v22, %v4216_v23  ;;  %v4182_v22 = vld [vmem:[#allocation12 + $0x88] sm:$0xf]  ;;  %v5218_v23 = vld [vmem:[#allocation12 + $0x94] sm:$0xf0] }
  0x83   : > { %1146 = vmatpush.bf16.msrb.mxu0 %v4255_v28  ;;  %v4419_v28 = vor.u32 %v5278_v26, %v4418_v25  ;;  %836 = vmatpush.bf16.msra.mxu3 %v4219_v27  ;;  %v4386_v26 = vld [vmem:[#allocation11 + $0x20] sm:$0xf]  ;;  %v5270_v27 = vld [vmem:[#allocation11 + $0x2c] sm:$0xf0] }
  0x84   : > { %1195 = vmatpush.bf16.msrb.mxu1 %v4259_v30  ;;  %v4420_v30 = vld [vmem:[#allocation11 + $0x70] sm:$0xf0] }
  0x85   : > { %v4423_v32 = vor.u32 %v5276_v29, %v4420_v30  ;;  %v4387_v29 = vor.u32 %v5270_v27, %v4386_v26  ;;  %v5268_v30 = vld [vmem:[#allocation11 + $0x24] sm:$0xf] }
  0x87   : > { %1147 = vmatpush.bf16.msrb.mxu0 %v4239_v35  ;;  %837 = vmatpush.bf16.msra.mxu3 %v4203_v36 }
  0x88   : > { %1196 = vmatpush.bf16.msrb.mxu1 %v4243_v37 }
  0x8a   : > { %706 = vmatmul.bf16.gmra.mxu0 %v6157_v10 }
  0x8b   : > { %755 = vmatmul.bf16.gmra.mxu1 %v6157_v10  ;;  %1600 = vmatpush.bf16.msra.mxu0 %v4483_v42  ;;  %v4187_v42 = vor.u32 %v5216_v40, %v4184_v41 }
  0x8c   : > { %1614 = vmatpush.bf16.msra.mxu1 %v4487_v44  ;;  %v4168_v44 = vld [vmem:[#allocation12 + $0x78] sm:$0xf0] }
  0x8d   : > { %838 = vmatpush.bf16.msra.mxu3 %v4187_v42  ;;  %v4171_v47 = vor.u32 %v5212_v43, %v4168_v44  ;;  %v4150_v43 = vld [vmem:[#allocation12 + $0x48] sm:$0xf]  ;;  %v5210_v44 = vld [vmem:[#allocation12 + $0x54] sm:$0xf0] }
  0x8f   : > { %1601 = vmatpush.bf16.msra.mxu0 %v4467_v49 }
  0x90   : > { %1615 = vmatpush.bf16.msra.mxu1 %v4471_v51  ;;  %v4152_v51 = vld [vmem:[#allocation12 + $0x58] sm:$0xf0] }
  0x91   : > { %839 = vmatpush.bf16.msra.mxu3 %v4171_v47  ;;  %v4151_v47 = vor.u32 %v5210_v44, %v4150_v43 }
  0x93   : > { %1602 = vmatpush.bf16.msra.mxu0 %v4451_v58  ;;  %v4404_v58 = vld [vmem:[#allocation11 + $0x50] sm:$0xf0] }
  0x94   : > { %1616 = vmatpush.bf16.msra.mxu1 %v4455_v61  ;;  %v4407_v59 = vor.u32 %v5272_v57, %v4404_v58  ;;  %v5230_v61 = vld [vmem:[#allocation12 + $0xf4] sm:$0xf0]  ;;  %v4370_v57 = vld [vmem:[#allocation11] sm:$0xf]  ;;  %v5266_v58 = vld [vmem:[#allocation11 + $0xc] sm:$0xf0] }
  0x97   : > { %1603 = vmatpush.bf16.msra.mxu0 %v4435_v7  ;;  %v5226_v7 = vld [vmem:[#allocation12 + $0xd4] sm:$0xf0] }
  0x98   : > { %1617 = vmatpush.bf16.msra.mxu1 %v4439_v11  ;;  %v4215_v8 = vor.u32 %v5226_v7, %v4214_v6  ;;  %v4120_v11 = vld [vmem:[#allocation12 + $0x18] sm:$0xf0] }
  0x9a   : > { %711 = vmatmul.bf16.gmra.mxu0 %v6162_v17 }
  0x9b   : > { %760 = vmatmul.bf16.gmra.mxu1 %v6162_v17  ;;  %1604 = vmatpush.bf16.msra.mxu0 %v4419_v28  ;;  %v4183_v28 = vor.u32 %v5218_v23, %v4182_v22 }
  0x9c   : > { %1618 = vmatpush.bf16.msra.mxu1 %v4423_v32  ;;  %v4388_v32 = vld [vmem:[#allocation11 + $0x30] sm:$0xf0] }
  0x9d   : > { %v4391_v33 = vor.u32 %v5268_v30, %v4388_v32 }
  0xa0   : > { %1619 = vmatpush.bf16.msra.mxu1 %v4407_v59 }
  0xa4   : > { %1620 = vmatpush.bf16.msra.mxu1 %v4391_v33 }
  0xaa   : > { %716 = vmatmul.bf16.gmra.mxu0 %v6167_v24 }
  0xab   : > { %765 = vmatmul.bf16.gmra.mxu1 %v6167_v24 }
  0xba   : > { %721 = vmatmul.bf16.gmra.mxu0 %v6172_v31 }
  0xbb   : > { %770 = vmatmul.bf16.gmra.mxu1 %v6172_v31 }
  0xca   : > { %726 = vmatmul.bf16.gmra.mxu0 %v6177_v38 }
  0xcb   : > { %775 = vmatmul.bf16.gmra.mxu1 %v6177_v38 }
  0xda   : > { %731 = vmatmul.bf16.gmra.mxu0 %v6182_v45 }
  0xdb   : > { %780 = vmatmul.bf16.gmra.mxu1 %v6182_v45 }
  0xe7   : > { %v697_v52 = vpop.f32.mrf.mxu0 }
  0xe8   : > { %v746_v53 = vpop.f32.mrf.mxu1 }
  0xe9   : > { %v884_v54 = vpack.c.bf16 %v746_v53, %v697_v52  ;;  %v4402_v52 = vld [vmem:[#allocation11 + $0x40] sm:$0xf]  ;;  %v5274_v53 = vld [vmem:[#allocation11 + $0x4c] sm:$0xf0] }
  0xea   : > { %1148 = vmatmul.bf16.vlgmr.msrb.gmra.mxu0 %v6147_v56  ;;  %v4403_v55 = vor.u32 %v5274_v53, %v4402_v52 }
  0xeb   : > { %916 = vst [vmem:[#allocation2] sm:$0xff] %v884_v54  ;;  %1197 = vmatmul.bf16.vlgmr.msrb.gmra.mxu1 %v6147_v56  ;;  %v4155_v54 = vor.u32 %v5208_v50, %v4152_v51 }
  0xec   : > { %1605 = vmatpush.bf16.msra.mxu0 %v4403_v55  ;;  %v5202_v55 = vld [vmem:[#allocation12 + $0x14] sm:$0xf0] }
  0xed   : > { %840 = vmatpush.bf16.msra.mxu3 %v4155_v54  ;;  %v4118_v54 = vld [vmem:[#allocation12 + $0x8] sm:$0xf] }
  0xee   : > { %v4119_v59 = vor.u32 %v5202_v55, %v4118_v54 }
  0xef   : > { %v699_v62 = vpop.f32.mrf.mxu0 }
  0xf0   : > { %v748_v63 = vpop.f32.mrf.mxu1  ;;  %1606 = vmatpush.bf16.msra.mxu0 %v4387_v29 }
  0xf1   : > { %v886_v0 = vpack.c.bf16 %v748_v63, %v699_v62  ;;  %v5204_v62 = vld [vmem:[#allocation12 + $0x2c] sm:$0xf] }
  0xf2   : > { %v4588_v22 = vld [vmem:[#allocation2] sm:$0xf] }
  0xf3   : > { %918 = vst [vmem:[#allocation2 + $0x10] sm:$0xff] %v886_v0  ;;  %v4231_v0 = vor.u32 %v5230_v61, %v4230_v60  ;;  %v4371_v60 = vor.u32 %v5266_v58, %v4370_v57  ;;  %v5264_v61 = vld [vmem:[#allocation11 + $0x4] sm:$0xf] }
  0xf5   : > { %786 = vmatpush.bf16.msra.mxu2 %v4231_v0  ;;  %1607 = vmatpush.bf16.msra.mxu0 %v4371_v60 }
  0xf7   : > { %v702_v1 = vpop.f32.mrf.mxu0 }
  0xf8   : > { %v751_v2 = vpop.f32.mrf.mxu1 }
  0xf9   : > { %v888_v4 = vpack.c.bf16 %v751_v2, %v702_v1  ;;  %v4136_v1 = vld [vmem:[#allocation12 + $0x38] sm:$0xf0]  ;;  %787 = vmatpush.bf16.msra.mxu2 %v4215_v8 }
  0xfa   : > { %1153 = vmatmul.bf16.gmra.mxu0 %v6152_v3 }
  0xfb   : > { %920 = vst [vmem:[#allocation2 + $0x20] sm:$0xff] %v888_v4  ;;  %1202 = vmatmul.bf16.gmra.mxu1 %v6152_v3  ;;  %v4139_v4 = vor.u32 %v5204_v62, %v4136_v1  ;;  %v4372_v62 = vld [vmem:[#allocation11 + $0x10] sm:$0xf0] }
  0xfd   : > { %841 = vmatpush.bf16.msra.mxu3 %v4139_v4 }
  0xff   : > { %v704_v12 = vpop.f32.mrf.mxu0 }
 0x100   : > { %v753_v13 = vpop.f32.mrf.mxu1 }
 0x101   : > { %v890_v14 = vpack.c.bf16 %v753_v13, %v704_v12  ;;  %v4123_v12 = vor.u32 %v5200_v9, %v4120_v11  ;;  %v4198_v13 = vld [vmem:[#allocation12 + $0xa8] sm:$0xf] }
 0x102   : > { %v4592_v60 = vld [vmem:[#allocation2 + $0x20] sm:$0xf] }
 0x103   : > { %922 = vst [vmem:[#allocation2 + $0x30] sm:$0xff] %v890_v14  ;;  %842 = vmatpush.bf16.msra.mxu3 %v4123_v12  ;;  %v5222_v14 = vld [vmem:[#allocation12 + $0xb4] sm:$0xf0] }
 0x104   : > { %v4199_v16 = vor.u32 %v5222_v14, %v4198_v13 }
 0x106   : > { %843 = vmatmul.bf16.vlgmr.msra.gmra.mxu3 %v6147_v56  ;;  %788 = vmatpush.bf16.msra.mxu2 %v4199_v16 }
 0x107   : > { %v707_v18 = vpop.f32.mrf.mxu0 }
 0x108   : > { %v756_v20 = vpop.f32.mrf.mxu1 }
 0x109   : > { %v892_v21 = vpack.c.bf16 %v756_v20, %v707_v18 }
 0x10a   : > { %1158 = vmatmul.bf16.gmra.mxu0 %v6157_v10  ;;  %789 = vmatpush.bf16.msra.mxu2 %v4183_v28  ;;  %v6215_v28 = vld [vmem:[%s6120_s12] sm:$0xff]  ;;  %v5319_v55 = vld [vmem:[#allocation2 + $0x2c] sm:$0xf0]  ;;  %s5853_s12 = scalar_lea.hbm %s6556_s7, 32 }
 0x10b   : > { %924 = vst [vmem:[#allocation2 + $0x40] sm:$0xff] %v892_v21  ;;  %1207 = vmatmul.bf16.gmra.mxu1 %v6157_v10  ;;  %p5855_p12 = scmp.lt.s32.totalorder %s5853_s12, %s5849_s21 }
 0x10d   : > { %p5856_p13 = por %p5855_p12, %p5854_p10 }
 0x10f   : > { %v709_v35 = vpop.f32.mrf.mxu0  ;;  %p5857_p0 = pnand %p5856_p13, %p5852_p8 }
 0x110   : > { %v758_v37 = vpop.f32.mrf.mxu1 }
 0x111   : > { %v894_v39 = vpack.c.bf16 %v758_v37, %v709_v35  ;;  %v5214_v35 = vld [vmem:[#allocation12 + $0x74] sm:$0xf0] }
 0x112   : > { %v4167_v37 = vor.u32 %v5214_v35, %v4166_v34  ;;  %v4596_v42 = vld [vmem:[#allocation2 + $0x40] sm:$0xf] }
 0x113   : > { %926 = vst [vmem:[#allocation2 + $0x50] sm:$0xff] %v894_v39 }
 0x114   : > { %790 = vmatpush.bf16.msra.mxu2 %v4167_v37 }
 0x116   : > { %848 = vmatmul.bf16.gmra.mxu3 %v6152_v3 }
 0x117   : > { %v712_v46 = vpop.f32.mrf.mxu0 }
 0x118   : > { %v761_v48 = vpop.f32.mrf.mxu1  ;;  %791 = vmatpush.bf16.msra.mxu2 %v4151_v47 }
 0x119   : > { %v896_v49 = vpack.c.bf16 %v761_v48, %v712_v46  ;;  %v4134_v48 = vld [vmem:[#allocation12 + $0x28] sm:$0xf] }
 0x11a   : > { %1163 = vmatmul.bf16.gmra.mxu0 %v6162_v17  ;;  %v5320_v40 = vld [vmem:[#allocation2 + $0x4c] sm:$0xf0] }
 0x11b   : > { %928 = vst [vmem:[#allocation2 + $0x60] sm:$0xff] %v896_v49  ;;  %1212 = vmatmul.bf16.gmra.mxu1 %v6162_v17  ;;  %v4597_v46 = vor.u32 %v5320_v40, %v4596_v42  ;;  %v5206_v49 = vld [vmem:[#allocation12 + $0x34] sm:$0xf0] }
 0x11c   : > { %v4135_v51 = vor.u32 %v5206_v49, %v4134_v48 }
 0x11e   : > { %792 = vmatpush.bf16.msra.mxu2 %v4135_v51 }
 0x11f   : > { %v714_v63 = vpop.f32.mrf.mxu0 }
 0x120   : > { %v763_v2 = vpop.f32.mrf.mxu1 }
 0x121   : > { %v898_v5 = vpack.c.bf16 %v763_v2, %v714_v63  ;;  %v4375_v63 = vor.u32 %v5264_v61, %v4372_v62  ;;  %v4593_v61 = vor.u32 %v5319_v55, %v4592_v60  ;;  %v5262_v60 = vld [vmem:[#allocation14 + $0xf4] sm:$0xf0] }
 0x122   : > { %v4600_v20 = vld [vmem:[#allocation2 + $0x60] sm:$0xf]  ;;  %793 = vmatpush.bf16.msra.mxu2 %v4119_v59 }
 0x123   : > { %930 = vst [vmem:[#allocation2 + $0x70] sm:$0xff] %v898_v5  ;;  %1621 = vmatpush.bf16.msra.mxu1 %v4375_v63 }
 0x125   : > { %794 = vmatmul.bf16.vlgmr.msra.gmra.mxu2 %v6147_v56 }
 0x126   : > { %853 = vmatmul.bf16.gmra.mxu3 %v6157_v10 }
 0x127   : > { %v717_v15 = vpop.f32.mrf.mxu0 }
 0x128   : > { %v766_v18 = vpop.f32.mrf.mxu1 }
 0x129   : > { %v900_v19 = vpack.c.bf16 %v766_v18, %v717_v15 }
 0x12a   : > { %1168 = vmatmul.bf16.gmra.mxu0 %v6167_v24  ;;  %v5321_v21 = vld [vmem:[#allocation2 + $0x6c] sm:$0xf0] }
 0x12b   : > { %932 = vst [vmem:[#allocation2 + $0x80] sm:$0xff] %v900_v19  ;;  %1217 = vmatmul.bf16.gmra.mxu1 %v6167_v24  ;;  %v4601_v25 = vor.u32 %v5321_v21, %v4600_v20  ;;  %v5318_v20 = vld [vmem:[#allocation2 + $0xc] sm:$0xf0] }
 0x12c   : > { %v4589_v23 = vor.u32 %v5318_v20, %v4588_v22  ;;  %v5252_v20 = vld [vmem:[#allocation14 + $0xac] sm:$0xf] }
 0x12d   : > { %2016 = vrot.lane.b32.xlu2 %v4601_v25, %s5941_s30 }
 0x12f   : > { %v719_v36 = vpop.f32.mrf.mxu0 }
 0x130   : > { %v768_v39 = vpop.f32.mrf.mxu1 }
 0x131   : > { %v902_v41 = vpack.c.bf16 %v768_v39, %v719_v36 }
 0x132   : > { %v4604_v15 = vld [vmem:[#allocation2 + $0x80] sm:$0xf] }
 0x133   : > { %934 = vst [vmem:[#allocation2 + $0x90] sm:$0xff] %v902_v41 }
 0x135   : > { %2014 = vrot.lane.b32.xlu2 %v4597_v46, %s5941_s30  ;;  %799 = vmatmul.bf16.gmra.mxu2 %v6152_v3 }
 0x136   : > { %858 = vmatmul.bf16.gmra.mxu3 %v6162_v17 }
 0x137   : > { %v722_v50 = vpop.f32.mrf.mxu0 }
 0x138   : > { %v771_v52 = vpop.f32.mrf.mxu1 }
 0x139   : > { %v904_v53 = vpack.c.bf16 %v771_v52, %v722_v50 }
 0x13a   : > { %1173 = vmatmul.bf16.gmra.mxu0 %v6172_v31  ;;  %v5322_v13 = vld [vmem:[#allocation2 + $0x8c] sm:$0xf0] }
 0x13b   : > { %936 = vst [vmem:[#allocation2 + $0xa0] sm:$0xff] %v904_v53  ;;  %1222 = vmatmul.bf16.gmra.mxu1 %v6172_v31  ;;  %v4605_v16 = vor.u32 %v5322_v13, %v4604_v15  ;;  %v5301_v63 = vld [vmem:[#allocation2 + $0x8c] sm:$0xf0] }
 0x13f   : > { %v724_v0 = vpop.f32.mrf.mxu0 }
 0x140   : > { %v773_v1 = vpop.f32.mrf.mxu1 }
 0x141   : > { %v906_v2 = vpack.c.bf16 %v773_v1, %v724_v0 }
 0x142   : > { %v4608_v7 = vld [vmem:[#allocation2 + $0xa0] sm:$0xf] }
 0x143   : > { %938 = vst [vmem:[#allocation2 + $0xb0] sm:$0xff] %v906_v2  ;;  %v4522_v57 = vld [vmem:[#allocation2 + $0xa0] sm:$0xf] }
 0x144   : > { %v4518_v2 = vld [vmem:[#allocation2 + $0x80] sm:$0xf] }
 0x145   : > { %804 = vmatmul.bf16.gmra.mxu2 %v6157_v10 }
 0x146   : > { %863 = vmatmul.bf16.gmra.mxu3 %v6167_v24 }
 0x147   : > { %v727_v4 = vpop.f32.mrf.mxu0 }
 0x148   : > { %v776_v5 = vpop.f32.mrf.mxu1 }
 0x149   : > { %v908_v6 = vpack.c.bf16 %v776_v5, %v727_v4  ;;  %v4519_v5 = vor.u32 %v5301_v63, %v4518_v2 }
 0x14a   : > { %1178 = vmatmul.bf16.gmra.mxu0 %v6177_v38  ;;  %v5323_v8 = vld [vmem:[#allocation2 + $0xac] sm:$0xf0] }
 0x14b   : > { %940 = vst [vmem:[#allocation2 + $0xc0] sm:$0xff] %v908_v6  ;;  %1227 = vmatmul.bf16.gmra.mxu1 %v6177_v38  ;;  %v4609_v9 = vor.u32 %v5323_v8, %v4608_v7  ;;  %v5302_v52 = vld [vmem:[#allocation2 + $0xac] sm:$0xf0]  ;;  %v5260_v6 = vld [vmem:[#allocation14 + $0xec] sm:$0xf] }
 0x14c   : > { %v4523_v59 = vor.u32 %v5302_v52, %v4522_v57  ;;  %v4360_v7 = vld [vmem:[#allocation14 + $0xf8] sm:$0xf0] }
 0x14d   : > { %2020 = vrot.lane.b32.xlu1 %v4609_v9, %s5941_s30  ;;  %v4363_v8 = vor.u32 %v5260_v6, %v4360_v7  ;;  %v1765_v9 = vsel %vm1748_vm0, %v4519_v5, 0  ;;  %v4492_v5 = vld [vmem:[#allocation11 + $0xf8] sm:$0xf0]  ;;  %v4342_v7 = vld [vmem:[#allocation14 + $0xc8] sm:$0xf] }
 0x14e   : > { %v1768_v62 = vsel %vm1748_vm0, %v4523_v59, 0  ;;  %v4358_v59 = vld [vmem:[#allocation14 + $0xe8] sm:$0xf] }
 0x14f   : > { %v729_v11 = vpop.f32.mrf.mxu0  ;;  %1287 = vmatpush.bf16.msrb.mxu3 %v4363_v8  ;;  %v4359_v63 = vor.u32 %v5262_v60, %v4358_v59  ;;  %v5258_v8 = vld [vmem:[#allocation14 + $0xd4] sm:$0xf0] }
 0x150   : > { %v778_v12 = vpop.f32.mrf.mxu1 }
 0x151   : > { %v910_v14 = vpack.c.bf16 %v778_v12, %v729_v11  ;;  %v5300_v11 = vld [vmem:[#allocation2 + $0x6c] sm:$0xf0]  ;;  %1238 = vmatpush.bf16.msrb.mxu2 %v4359_v63 }
 0x152   : > { %v4526_v46 = vld [vmem:[#allocation2 + $0xc0] sm:$0xf] }
 0x153   : > { %942 = vst [vmem:[#allocation2 + $0xd0] sm:$0xff] %v910_v14  ;;  %v4612_v49 = vld [vmem:[#allocation2 + $0xc0] sm:$0xf] }
 0x154   : > { %v4514_v14 = vld [vmem:[#allocation2 + $0x60] sm:$0xf] }
 0x155   : > { %2018 = vrot.lane.b32.xlu1 %v4605_v16, %s5941_s30  ;;  %809 = vmatmul.bf16.gmra.mxu2 %v6162_v17  ;;  %v4515_v16 = vor.u32 %v5300_v11, %v4514_v14 }
 0x156   : > { %868 = vmatmul.bf16.gmra.mxu3 %v6172_v31 }
 0x157   : > { %v732_v18 = vpop.f32.mrf.mxu0  ;;  %v1762_v22 = vsel %vm1748_vm0, %v4515_v16, 0  ;;  %v4326_v16 = vld [vmem:[#allocation14 + $0xa8] sm:$0xf] }
 0x158   : > { %v781_v19 = vpop.f32.mrf.mxu1 }
 0x159   : > { %v912_v21 = vpack.c.bf16 %v781_v19, %v732_v18  ;;  %v5256_v18 = vld [vmem:[#allocation14 + $0xcc] sm:$0xf] }
 0x15a   : > { %1183 = vmatmul.bf16.gmra.mxu0 %v6182_v45  ;;  %v5303_v41 = vld [vmem:[#allocation2 + $0xcc] sm:$0xf0] }
 0x15b   : > { %944 = vst [vmem:[#allocation2 + $0xe0] sm:$0xff] %v912_v21  ;;  %1232 = vmatmul.bf16.gmra.mxu1 %v6182_v45  ;;  %v5324_v44 = vld [vmem:[#allocation2 + $0xcc] sm:$0xf0]  ;;  %v4527_v48 = vor.u32 %v5303_v41, %v4526_v46  ;;  %v4328_v21 = vld [vmem:[#allocation14 + $0xb8] sm:$0xf0] }
 0x15c   : > { %v4613_v50 = vor.u32 %v5324_v44, %v4612_v49  ;;  %v5298_v41 = vld [vmem:[#allocation2 + $0x2c] sm:$0xf0]  ;;  %v4506_v44 = vld [vmem:[#allocation2 + $0x20] sm:$0xf] }
 0x15d   : > { %2010 = vrot.lane.b32.xlu1 %v4589_v23, %s5941_s30  ;;  %v1771_v51 = vsel %vm1748_vm0, %v4527_v48, 0  ;;  %v4331_v23 = vor.u32 %v5252_v20, %v4328_v21  ;;  %v4280_v48 = vld [vmem:[#allocation14 + $0x58] sm:$0xf0]  ;;  %v5285_v20 = vld [vmem:[#allocation11 + $0xac] sm:$0xf] }
 0x15e   : > { %v4460_v21 = vld [vmem:[#allocation11 + $0xb8] sm:$0xf0] }
 0x15f   : > { %v734_v25 = vpop.f32.mrf.mxu0 }
 0x160   : > { %v783_v26 = vpop.f32.mrf.mxu1 }
 0x161   : > { %v914_v27 = vpack.c.bf16 %v783_v26, %v734_v25  ;;  %v5299_v25 = vld [vmem:[#allocation2 + $0x4c] sm:$0xf0] }
 0x162   : > { %v4616_v33 = vld [vmem:[#allocation2 + $0xe0] sm:$0xf] }
 0x163   : > { %946 = vst [vmem:[#allocation2 + $0xf0] sm:$0xff] %v914_v27  ;;  %v4530_v35 = vld [vmem:[#allocation2 + $0xe0] sm:$0xf] }
 0x165   : > { %814 = vmatmul.bf16.gmra.mxu2 %v6167_v24  ;;  %v4344_v24 = vld [vmem:[#allocation14 + $0xd8] sm:$0xf0] }
 0x166   : > { %873 = vmatmul.bf16.gmra.mxu3 %v6177_v38  ;;  %v4347_v19 = vor.u32 %v5256_v18, %v4344_v24  ;;  %v5254_v18 = vld [vmem:[#allocation14 + $0xb4] sm:$0xf0] }
 0x167   : > { %v1149_v29 = vpop.f32.mrf.mxu0 }
 0x168   : > { %v1198_v30 = vpop.f32.mrf.mxu1  ;;  %1288 = vmatpush.bf16.msrb.mxu3 %v4347_v19  ;;  %v4327_v19 = vor.u32 %v5254_v18, %v4326_v16 }
 0x169   : > { %v1336_v32 = vpack.c.bf16 %v1198_v30, %v1149_v29  ;;  %v4510_v29 = vld [vmem:[#allocation2 + $0x40] sm:$0xf] }
 0x16a   : > { %1608 = vmatmul.bf16.vlgmr.msra.gmra.mxu0 %v6215_v28  ;;  %v5325_v34 = vld [vmem:[#allocation2 + $0xec] sm:$0xf0] }
 0x16b   : > { %v5304_v36 = vld [vmem:[#allocation2 + $0xec] sm:$0xf0]  ;;  %1368 = vst [vmem:[#allocation3] sm:$0xff] %v1336_v32  ;;  %1622 = vmatmul.bf16.vlgmr.msra.gmra.mxu1 %v6215_v28  ;;  %v4617_v37 = vor.u32 %v5325_v34, %v4616_v33  ;;  %v4511_v32 = vor.u32 %v5299_v25, %v4510_v29  ;;  %v5248_v33 = vld [vmem:[#allocation14 + $0x8c] sm:$0xf] }
 0x16c   : > { %v4531_v39 = vor.u32 %v5304_v36, %v4530_v35  ;;  %1289 = vmatpush.bf16.msrb.mxu3 %v4331_v23  ;;  %v4312_v34 = vld [vmem:[#allocation14 + $0x98] sm:$0xf0]  ;;  %v5244_v36 = vld [vmem:[#allocation14 + $0x6c] sm:$0xf]  ;;  %v4310_v23 = vld [vmem:[#allocation14 + $0x88] sm:$0xf] }
 0x16d   : > { %2024 = vrot.lane.b32.xlu0 %v4617_v37, %s5941_s30  ;;  %v4315_v35 = vor.u32 %v5248_v33, %v4312_v34  ;;  %v4296_v37 = vld [vmem:[#allocation14 + $0x78] sm:$0xf0]  ;;  %v5250_v25 = vld [vmem:[#allocation14 + $0x94] sm:$0xf0]  ;;  %v5281_v29 = vld [vmem:[#allocation11 + $0x8c] sm:$0xf] }
 0x16e   : > { %v1774_v40 = vsel %vm1748_vm0, %v4531_v39, 0  ;;  %v1759_v39 = vsel %vm1748_vm0, %v4511_v32, 0  ;;  %v4294_v34 = vld [vmem:[#allocation14 + $0x68] sm:$0xf] }
 0x16f   : > { %1776 = vmatpush.bf16.xpose.msrb.mxu0 %v1774_v40  ;;  %v1151_v42 = vpop.f32.mrf.mxu0  ;;  %v4299_v40 = vor.u32 %v5244_v36, %v4296_v37  ;;  %v5277_v37 = vld [vmem:[#allocation11 + $0x6c] sm:$0xf] }
 0x170   : > { %v1200_v43 = vpop.f32.mrf.mxu1  ;;  %1290 = vmatpush.bf16.msrb.mxu3 %v4315_v35 }
 0x171   : > { %v1338_v47 = vpack.c.bf16 %v1200_v43, %v1151_v42 }
 0x173   : > { %1370 = vst [vmem:[#allocation3 + $0x10] sm:$0xff] %v1338_v47  ;;  %v5240_v47 = vld [vmem:[#allocation14 + $0x4c] sm:$0xf] }
 0x174   : > { %1291 = vmatpush.bf16.msrb.mxu3 %v4299_v40  ;;  %v4283_v49 = vor.u32 %v5240_v47, %v4280_v48  ;;  %v4262_v48 = vld [vmem:[#allocation14 + $0x28] sm:$0xf] }
 0x175   : > { %2022 = vrot.lane.b32.xlu0 %v4613_v50, %s5941_s30  ;;  %819 = vmatmul.bf16.gmra.mxu2 %v6172_v31  ;;  %v4507_v31 = vor.u32 %v5298_v41, %v4506_v44  ;;  %v5236_v50 = vld [vmem:[#allocation14 + $0x2c] sm:$0xf]  ;;  %v4278_v41 = vld [vmem:[#allocation14 + $0x48] sm:$0xf] }
 0x176   : > { %878 = vmatmul.bf16.gmra.mxu3 %v6182_v45 }
 0x177   : > { %1777 = vmatpush.bf16.xpose.msrb.mxu0 %v1771_v51  ;;  %v1154_v53 = vpop.f32.mrf.mxu0  ;;  %v4264_v51 = vld [vmem:[#allocation14 + $0x38] sm:$0xf0]  ;;  %v1756_v52 = vsel %vm1748_vm0, %v4507_v31, 0 }
 0x178   : > { %v1203_v54 = vpop.f32.mrf.mxu1  ;;  %1292 = vmatpush.bf16.msrb.mxu3 %v4283_v49  ;;  %v4412_v31 = vld [vmem:[#allocation11 + $0x58] sm:$0xf0]  ;;  %v5238_v49 = vld [vmem:[#allocation14 + $0x34] sm:$0xf0] }
 0x179   : > { %v1340_v58 = vpack.c.bf16 %v1203_v54, %v1154_v53  ;;  %v4267_v53 = vor.u32 %v5236_v50, %v4264_v51  ;;  %v5297_v54 = vld [vmem:[#allocation2 + $0xc] sm:$0xf0]  ;;  %v4263_v51 = vor.u32 %v5238_v49, %v4262_v48 }
 0x17b   : > { %1372 = vst [vmem:[#allocation3 + $0x20] sm:$0xff] %v1340_v58  ;;  %v4502_v58 = vld [vmem:[#allocation2] sm:$0xf] }
 0x17c   : > { %1293 = vmatpush.bf16.msrb.mxu3 %v4267_v53  ;;  %v4396_v53 = vld [vmem:[#allocation11 + $0x38] sm:$0xf0] }
 0x17d   : > { %2012 = vrot.lane.b32.xlu0 %v4593_v61, %s5941_s30 }
 0x17f   : > { %1778 = vmatpush.bf16.xpose.msrb.mxu0 %v1768_v62  ;;  %v1156_v0 = vpop.f32.mrf.mxu0  ;;  %v4503_v62 = vor.u32 %v5297_v54, %v4502_v58 }
 0x180   : > { %v1205_v1 = vpop.f32.mrf.mxu1 }
 0x181   : > { %v1342_v4 = vpack.c.bf16 %v1205_v1, %v1156_v0  ;;  %v5232_v0 = vld [vmem:[#allocation14 + $0xc] sm:$0xf]  ;;  %v4248_v1 = vld [vmem:[#allocation14 + $0x18] sm:$0xf0] }
 0x182   : > { %v4251_v2 = vor.u32 %v5232_v0, %v4248_v1  ;;  %v5645_v1 = vld [vmem:[%s6128_s14] sm:$0xff] }
 0x183   : > { %1374 = vst [vmem:[#allocation3 + $0x30] sm:$0xff] %v1342_v4  ;;  %v5293_v4 = vld [vmem:[#allocation11 + $0xec] sm:$0xf] }
 0x184   : > { %v4495_v6 = vor.u32 %v5293_v4, %v4492_v5  ;;  %1294 = vmatpush.bf16.msrb.mxu3 %v4251_v2 }
 0x185   : > { %824 = vmatmul.bf16.gmra.mxu2 %v6177_v38  ;;  %v4343_v38 = vor.u32 %v5258_v8, %v4342_v7 }
 0x187   : > { %1779 = vmatpush.bf16.xpose.msrb.mxu0 %v1765_v9  ;;  %v1159_v12 = vpop.f32.mrf.mxu0  ;;  %v1753_v9 = vsel %vm1748_vm0, %v4503_v62, 0  ;;  %1239 = vmatpush.bf16.msrb.mxu2 %v4343_v38  ;;  %v4380_v62 = vld [vmem:[#allocation11 + $0x18] sm:$0xf0] }
 0x188   : > { %v1208_v13 = vpop.f32.mrf.mxu1  ;;  %1642 = vmatpush.bf16.msra.mxu3 %v4495_v6 }
 0x189   : > { %v1344_v15 = vpack.c.bf16 %v1208_v13, %v1159_v12  ;;  %v5289_v12 = vld [vmem:[#allocation11 + $0xcc] sm:$0xf]  ;;  %v4476_v13 = vld [vmem:[#allocation11 + $0xd8] sm:$0xf0]  ;;  %1295 = vmatmul.bf16.vlgmr.msrb.gmra.mxu3 %v6147_v56  ;;  %v5246_v56 = vld [vmem:[#allocation14 + $0x74] sm:$0xf0]  ;;  %v6241_v59 = vpop.f32.mrf.mxu3 }
 0x18a   : > { %v4295_v36 = vor.u32 %v5246_v56, %v4294_v34 }
 0x18b   : > { %1376 = vst [vmem:[#allocation3 + $0x40] sm:$0xff] %v1344_v15  ;;  %v4479_v15 = vor.u32 %v5289_v12, %v4476_v13  ;;  %1240 = vmatpush.bf16.msrb.mxu2 %v4327_v19 }
 0x18d   : > { %1643 = vmatpush.bf16.msra.mxu3 %v4479_v15 }
 0x18f   : > { %1780 = vmatpush.bf16.xpose.msrb.mxu0 %v1762_v22  ;;  %v1161_v26 = vpop.f32.mrf.mxu0  ;;  %v4463_v22 = vor.u32 %v5285_v20, %v4460_v21  ;;  %v5647_v20 = vld [vmem:[%s6128_s14 + $0x10] sm:$0xff] }
 0x190   : > { %v1210_v27 = vpop.f32.mrf.mxu1 }
 0x191   : > { %v1346_v30 = vpack.c.bf16 %v1210_v27, %v1161_v26  ;;  %v4311_v26 = vor.u32 %v5250_v25, %v4310_v23  ;;  %1644 = vmatpush.bf16.msra.mxu3 %v4463_v22  ;;  %v6244_v5 = vpop.f32.mrf.mxu3 }
 0x193   : > { %1378 = vst [vmem:[#allocation3 + $0x50] sm:$0xff] %v1346_v30  ;;  %1241 = vmatpush.bf16.msrb.mxu2 %v4311_v26  ;;  %v4444_v30 = vld [vmem:[#allocation11 + $0x98] sm:$0xf0] }
 0x194   : > { %v4447_v33 = vor.u32 %v5281_v29, %v4444_v30  ;;  %v6259_v30 = vld [vmem:[%s6128_s14 + $0x20] sm:$0xff] }
 0x195   : > { %829 = vmatmul.bf16.gmra.mxu2 %v6182_v45 }
 0x196   : > { %1645 = vmatpush.bf16.msra.mxu3 %v4447_v33 }
 0x197   : > { %1781 = vmatpush.bf16.xpose.msrb.mxu0 %v1759_v39  ;;  %v1164_v42 = vpop.f32.mrf.mxu0  ;;  %1242 = vmatpush.bf16.msrb.mxu2 %v4295_v36  ;;  %v4428_v39 = vld [vmem:[#allocation11 + $0x78] sm:$0xf0] }
 0x198   : > { %v1213_v43 = vpop.f32.mrf.mxu1  ;;  %v4431_v40 = vor.u32 %v5277_v37, %v4428_v39 }
 0x199   : > { %v1348_v46 = vpack.c.bf16 %v1213_v43, %v1164_v42  ;;  %v5242_v42 = vld [vmem:[#allocation14 + $0x54] sm:$0xf0]  ;;  %1300 = vmatmul.bf16.gmra.mxu3 %v6152_v3  ;;  %v6247_v38 = vpop.f32.mrf.mxu3 }
 0x19a   : > { %v4279_v43 = vor.u32 %v5242_v42, %v4278_v41  ;;  %1646 = vmatpush.bf16.msra.mxu3 %v4431_v40 }
 0x19b   : > { %1380 = vst [vmem:[#allocation3 + $0x60] sm:$0xff] %v1348_v46  ;;  %v5273_v46 = vld [vmem:[#allocation11 + $0x4c] sm:$0xf] }
 0x19c   : > { %1243 = vmatpush.bf16.msrb.mxu2 %v4279_v43  ;;  %v4415_v47 = vor.u32 %v5273_v46, %v4412_v31  ;;  %v5649_v46 = vld [vmem:[%s6128_s14 + $0x18] sm:$0xff] }
 0x19e   : > { %1647 = vmatpush.bf16.msra.mxu3 %v4415_v47 }
 0x19f   : > { %1782 = vmatpush.bf16.xpose.msrb.mxu0 %v1756_v52  ;;  %v1166_v55 = vpop.f32.mrf.mxu0  ;;  %v5269_v52 = vld [vmem:[#allocation11 + $0x2c] sm:$0xf] }
 0x1a0   : > { %v1215_v57 = vpop.f32.mrf.mxu1  ;;  %1244 = vmatpush.bf16.msrb.mxu2 %v4263_v51  ;;  %v4399_v54 = vor.u32 %v5269_v52, %v4396_v53 }
 0x1a1   : > { %v1350_v61 = vpack.c.bf16 %v1215_v57, %v1166_v55  ;;  %v4246_v55 = vld [vmem:[#allocation14 + $0x8] sm:$0xf]  ;;  %v5234_v57 = vld [vmem:[#allocation14 + $0x14] sm:$0xf0]  ;;  %v6251_v15 = vpop.f32.mrf.mxu3 }
 0x1a2   : > { %v4247_v58 = vor.u32 %v5234_v57, %v4246_v55  ;;  %1648 = vmatpush.bf16.msra.mxu3 %v4399_v54  ;;  %v4490_v57 = vld [vmem:[#allocation11 + $0xe8] sm:$0xf] }
 0x1a3   : > { %1382 = vst [vmem:[#allocation3 + $0x70] sm:$0xff] %v1350_v61  ;;  %v5265_v61 = vld [vmem:[#allocation11 + $0xc] sm:$0xf] }
 0x1a4   : > { %1245 = vmatpush.bf16.msrb.mxu2 %v4247_v58  ;;  %v4383_v0 = vor.u32 %v5265_v61, %v4380_v62  ;;  %v5295_v58 = vld [vmem:[#allocation11 + $0xf4] sm:$0xf0]  ;;  %v6269_v61 = vld [vmem:[%s6128_s14 + $0x28] sm:$0xff] }
 0x1a6   : > { %1649 = vmatpush.bf16.msra.mxu3 %v4383_v0  ;;  %v4474_v0 = vld [vmem:[#allocation11 + $0xc8] sm:$0xf] }
 0x1a7   : > { %1783 = vmatpush.bf16.xpose.msrb.mxu0 %v1753_v9  ;;  %v1169_v11 = vpop.f32.mrf.mxu0  ;;  %1246 = vmatmul.bf16.vlgmr.msrb.gmra.mxu2 %v5645_v1 }
 0x1a8   : > { %v1218_v14 = vpop.f32.mrf.mxu1  ;;  %v795_v43 = vpop.f32.mrf.mxu2 }
 0x1a9   : > { %v1352_v24 = vpack.c.bf16 %v1218_v14, %v1169_v11  ;;  %1305 = vmatmul.bf16.gmra.mxu3 %v6157_v10  ;;  %v5646_v11 = vld [vmem:[%s6128_s14 + $0x8] sm:$0xff]  ;;  %v6255_v21 = vpop.f32.mrf.mxu3  ;;  %v885_v31 = vpack.c.bf16 %v6241_v59, %v795_v43 }
 0x1aa   : > { %v5308_v53 = vld [vmem:[#allocation3 + $0x6c] sm:$0xf0]  ;;  %v4410_v43 = vld [vmem:[#allocation11 + $0x48] sm:$0xf] }
 0x1ab   : > { %1384 = vst [vmem:[#allocation3 + $0x80] sm:$0xff] %v1352_v24 }
 0x1ac   : > { %917 = vst [vmem:[#allocation2 + $0x8] sm:$0xff] %v885_v31 }
 0x1af   : > { %v1171_v27 = vpop.f32.mrf.mxu0 }
 0x1b0   : > { %v1220_v32 = vpop.f32.mrf.mxu1  ;;  %v797_v55 = vpop.f32.mrf.mxu2 }
 0x1b1   : > { %v1354_v35 = vpack.c.bf16 %v1220_v32, %v1171_v27  ;;  %v6263_v42 = vpop.f32.mrf.mxu3  ;;  %v887_v62 = vpack.c.bf16 %v6244_v5, %v797_v55  ;;  %v5287_v5 = vld [vmem:[#allocation11 + $0xb4] sm:$0xf0] }
 0x1b2   : > { %v4551_v49 = vld [vmem:[#allocation3 + $0x80] sm:$0xf] }
 0x1b3   : > { %1386 = vst [vmem:[#allocation3 + $0x90] sm:$0xff] %v1354_v35 }
 0x1b4   : > { %919 = vst [vmem:[#allocation2 + $0x18] sm:$0xff] %v887_v62  ;;  %v5315_v62 = vld [vmem:[#allocation15 + $0x10] sm:$0xff] }
 0x1b7   : > { %v1174_v44 = vpop.f32.mrf.mxu0  ;;  %1251 = vmatmul.bf16.gmra.mxu2 %v5646_v11  ;;  %v5307_v11 = vld [vmem:[#allocation3 + $0x4c] sm:$0xf0] }
 0x1b8   : > { %v1223_v45 = vpop.f32.mrf.mxu1 }
 0x1b9   : > { %v1356_v50 = vpack.c.bf16 %v1223_v45, %v1174_v44  ;;  %1310 = vmatmul.bf16.gmra.mxu3 %v6162_v17  ;;  %v6273_v1 = vpop.f32.mrf.mxu3 }
 0x1ba   : > { %v5309_v47 = vld [vmem:[#allocation3 + $0x8c] sm:$0xf0] }
 0x1bb   : > { %1388 = vst [vmem:[#allocation3 + $0xa0] sm:$0xff] %v1356_v50  ;;  %v4552_v50 = vor.u32 %v5309_v47, %v4551_v49  ;;  %v5271_v47 = vld [vmem:[#allocation11 + $0x34] sm:$0xf0] }
 0x1bf   : > { %v1176_v60 = vpop.f32.mrf.mxu0  ;;  %v2021_v32 = vpop.permute.xlu1 %2020 }
 0x1c0   : > { %v1225_v63 = vpop.f32.mrf.mxu1  ;;  %v2045_v37 = vsel %vm1748_vm0, %v2021_v32, 0 }
 0x1c1   : > { %v1358_v3 = vpack.c.bf16 %v1225_v63, %v1176_v60  ;;  %v4491_v63 = vor.u32 %v5295_v58, %v4490_v57  ;;  %v5316_v57 = vld [vmem:[#allocation15 + $0x18] sm:$0xff] }
 0x1c2   : > { %v4555_v44 = vld [vmem:[#allocation3 + $0xa0] sm:$0xf] }
 0x1c3   : > { %1390 = vst [vmem:[#allocation3 + $0xb0] sm:$0xff] %v1358_v3  ;;  %v2017_v3 = vpop.permute.xlu2 %2016  ;;  %1628 = vmatpush.bf16.msra.mxu2 %v4491_v63  ;;  %v5652_v63 = vld [vmem:[%s6128_s14 + $0x38] sm:$0xff] }
 0x1c7   : > { %v1179_v2 = vpop.f32.mrf.mxu0  ;;  %1256 = vmatmul.bf16.gmra.mxu2 %v5647_v20  ;;  %v2019_v48 = vpop.permute.xlu1 %2018 }
 0x1c8   : > { %v1228_v4 = vpop.f32.mrf.mxu1  ;;  %v2042_v51 = vsel %vm1748_vm0, %v2019_v48, 0 }
 0x1c9   : > { %v1360_v6 = vpack.c.bf16 %v1228_v4, %v1179_v2  ;;  %1315 = vmatmul.bf16.gmra.mxu3 %v6259_v30 }
 0x1ca   : > { %v5310_v40 = vld [vmem:[#allocation3 + $0xac] sm:$0xf0] }
 0x1cb   : > { %1392 = vst [vmem:[#allocation3 + $0xc0] sm:$0xff] %v1360_v6  ;;  %v4556_v45 = vor.u32 %v5310_v40, %v4555_v44  ;;  %v4547_v6 = vld [vmem:[#allocation3 + $0x60] sm:$0xf]  ;;  %v2015_v32 = vpop.permute.xlu2 %2014  ;;  %v5275_v44 = vld [vmem:[#allocation11 + $0x54] sm:$0xf0] }
 0x1cc   : > { %v5651_v40 = vld [vmem:[%s6128_s14 + $0x30] sm:$0xff] }
 0x1cf   : > { %v1181_v7 = vpop.f32.mrf.mxu0  ;;  %v2011_v55 = vpop.permute.xlu1 %2010 }
 0x1d0   : > { %v1230_v8 = vpop.f32.mrf.mxu1  ;;  %v2030_v58 = vsel %vm1748_vm0, %v2011_v55, 0  ;;  %v5329_v55 = vld [vmem:[#allocation3 + $0x6c] sm:$0xf0] }
 0x1d1   : > { %v1362_v9 = vpack.c.bf16 %v1230_v8, %v1181_v7  ;;  %v5291_v7 = vld [vmem:[#allocation11 + $0xd4] sm:$0xf0]  ;;  %v4548_v8 = vor.u32 %v5308_v53, %v4547_v6 }
 0x1d2   : > { %v4559_v56 = vld [vmem:[#allocation3 + $0xc0] sm:$0xf]  ;;  %v5267_v53 = vld [vmem:[#allocation11 + $0x14] sm:$0xf0] }
 0x1d3   : > { %1394 = vst [vmem:[#allocation3 + $0xd0] sm:$0xff] %v1362_v9  ;;  %v4475_v9 = vor.u32 %v5291_v7, %v4474_v0 }
 0x1d5   : > { %1629 = vmatpush.bf16.msra.mxu2 %v4475_v9 }
 0x1d7   : > { %v1184_v12 = vpop.f32.mrf.mxu0  ;;  %1261 = vmatmul.bf16.gmra.mxu2 %v5649_v46  ;;  %v4411_v46 = vor.u32 %v5275_v44, %v4410_v43 }
 0x1d8   : > { %v1233_v13 = vpop.f32.mrf.mxu1 }
 0x1d9   : > { %v1364_v14 = vpack.c.bf16 %v1233_v13, %v1184_v12  ;;  %1320 = vmatmul.bf16.gmra.mxu3 %v6269_v61  ;;  %v4458_v12 = vld [vmem:[#allocation11 + $0xa8] sm:$0xf]  ;;  %v4543_v13 = vld [vmem:[#allocation3 + $0x40] sm:$0xf] }
 0x1da   : > { %v5311_v34 = vld [vmem:[#allocation3 + $0xcc] sm:$0xf0] }
 0x1db   : > { %1396 = vst [vmem:[#allocation3 + $0xe0] sm:$0xff] %v1364_v14  ;;  %v4560_v36 = vor.u32 %v5311_v34, %v4559_v56  ;;  %v2039_v14 = vsel %vm1748_vm0, %v2017_v3, 0  ;;  %v5305_v34 = vld [vmem:[#allocation3 + $0xc] sm:$0xf0]  ;;  %v4426_v56 = vld [vmem:[#allocation11 + $0x68] sm:$0xf] }
 0x1df   : > { %v2025_v16 = vpop.permute.xlu0 %2024  ;;  %v1186_v10 = vpop.f32.mrf.mxu0 }
 0x1e0   : > { %v2051_v18 = vsel %vm1748_vm0, %v2025_v16, 0  ;;  %v1235_v24 = vpop.f32.mrf.mxu1  ;;  %v4544_v16 = vor.u32 %v5307_v11, %v4543_v13  ;;  %v5314_v11 = vld [vmem:[#allocation15 + $0x8] sm:$0xff] }
 0x1e1   : > { %v1366_v19 = vpack.c.bf16 %v1235_v24, %v1186_v10  ;;  %2053 = vmatpush.bf16.xpose.msrb.mxu3 %v2051_v18  ;;  %v4459_v18 = vor.u32 %v5287_v5, %v4458_v12  ;;  %v5306_v24 = vld [vmem:[#allocation3 + $0x2c] sm:$0xf0] }
 0x1e2   : > { %v4563_v27 = vld [vmem:[#allocation3 + $0xe0] sm:$0xf] }
 0x1e3   : > { %1398 = vst [vmem:[#allocation3 + $0xf0] sm:$0xff] %v1366_v19  ;;  %v800_v19 = vpop.f32.mrf.mxu2  ;;  %v4649_v20 = vld [vmem:[#allocation3 + $0xe0] sm:$0xf]  ;;  %1630 = vmatpush.bf16.msra.mxu2 %v4459_v18 }
 0x1e7   : > { %v2023_v22 = vpop.permute.xlu0 %2022  ;;  %v1609_v23 = vpop.f32.mrf.mxu0  ;;  %1266 = vmatmul.bf16.gmra.mxu2 %v6259_v30  ;;  %v4535_v30 = vld [vmem:[#allocation3] sm:$0xf] }
 0x1e8   : > { %v2048_v17 = vsel %vm1748_vm0, %v2023_v22, 0  ;;  %v1623_v25 = vpop.f32.mrf.mxu1  ;;  %v889_v22 = vpack.c.bf16 %v6247_v38, %v800_v19  ;;  %v2036_v38 = vsel %vm1748_vm0, %v2015_v32, 0  ;;  %v1666_v32 = vlaneseq }
 0x1e9   : > { %v1656_v26 = vpack.c.bf16 %v1623_v25, %v1609_v23  ;;  %2054 = vmatpush.bf16.xpose.msrb.mxu3 %v2048_v17  ;;  %v4442_v23 = vld [vmem:[#allocation11 + $0x88] sm:$0xf]  ;;  %v5283_v17 = vld [vmem:[#allocation11 + $0x94] sm:$0xf0] }
 0x1ea   : > { %v5312_v29 = vld [vmem:[#allocation3 + $0xec] sm:$0xf0]  ;;  %921 = vst [vmem:[#allocation2 + $0x28] sm:$0xff] %v889_v22  ;;  %1325 = vmatmul.bf16.gmra.mxu3 %v5651_v40 }
 0x1eb   : > { %1660 = vst [vmem:[#allocation4] sm:$0xff] %v1656_v26  ;;  %v4564_v33 = vor.u32 %v5312_v29, %v4563_v27  ;;  %v5333_v10 = vld [vmem:[#allocation3 + $0xec] sm:$0xf0]  ;;  %v4539_v26 = vld [vmem:[#allocation3 + $0x20] sm:$0xf]  ;;  %v4443_v29 = vor.u32 %v5283_v17, %v4442_v23 }
 0x1ec   : > { %v4650_v25 = vor.u32 %v5333_v10, %v4649_v20  ;;  %v4540_v27 = vor.u32 %v5306_v24, %v4539_v26 }
 0x1ed   : > { %1857 = vmatpush.bf16.msrb.mxu1 %v4564_v33  ;;  %v861_v33 = vpop.f32.mrf.mxu3  ;;  %1631 = vmatpush.bf16.msra.mxu2 %v4443_v29 }
 0x1ef   : > { %v1611_v35 = vpop.f32.mrf.mxu0  ;;  %v2013_v31 = vpop.permute.xlu0 %2012 }
 0x1f0   : > { %v1625_v39 = vpop.f32.mrf.mxu1  ;;  %v2033_v49 = vsel %vm1748_vm0, %v2013_v31, 0 }
 0x1f1   : > { %v1658_v41 = vpack.c.bf16 %v1625_v39, %v1611_v35  ;;  %1858 = vmatpush.bf16.msrb.mxu1 %v4560_v36  ;;  %2055 = vmatpush.bf16.xpose.msrb.mxu3 %v2045_v37  ;;  %v5279_v35 = vld [vmem:[#allocation11 + $0x74] sm:$0xf0]  ;;  %v4536_v36 = vor.u32 %v5305_v34, %v4535_v30  ;;  %v802_v39 = vpop.f32.mrf.mxu2  ;;  %v6294_v34 = vand.u32 127, %v1666_v32  ;;  %v5334_v32 = vld [vmem:[#allocation15 + $0x20] sm:$0xff] }
 0x1f2   : > { %v4584_v52 = vld [vmem:[#allocation4] sm:$0xf]  ;;  %v4427_v37 = vor.u32 %v5279_v35, %v4426_v56 }
 0x1f3   : > { %1662 = vst [vmem:[#allocation4 + $0x10] sm:$0xff] %v1658_v41  ;;  %v4498_v54 = vld [vmem:[#allocation4] sm:$0xf]  ;;  %v891_v41 = vpack.c.bf16 %v6251_v15, %v802_v39  ;;  %vm1668_vm1 = vcmp.lt.s32.totalorder %v6294_v34, 24 }
 0x1f4   : > { %1632 = vmatpush.bf16.msra.mxu2 %v4427_v37 }
 0x1f5   : > { %1859 = vmatpush.bf16.msrb.mxu1 %v4556_v45  ;;  %923 = vst [vmem:[#allocation2 + $0x38] sm:$0xff] %v891_v41  ;;  %v4394_v45 = vld [vmem:[#allocation11 + $0x28] sm:$0xf]  ;;  %v864_v48 = vpop.f32.mrf.mxu3 }
 0x1f7   : > { %1271 = vmatmul.bf16.gmra.mxu2 %v6269_v61 }
 0x1f8   : > { %1633 = vmatpush.bf16.msra.mxu2 %v4411_v46 }
 0x1f9   : > { %1860 = vmatpush.bf16.msrb.mxu1 %v4552_v50  ;;  %2056 = vmatpush.bf16.xpose.msrb.mxu3 %v2042_v51  ;;  %v4395_v50 = vor.u32 %v5271_v47, %v4394_v45  ;;  %v805_v51 = vpop.f32.mrf.mxu2 }
 0x1fa   : > { %v5317_v59 = vld [vmem:[#allocation4 + $0xc] sm:$0xf0]  ;;  %v893_v15 = vpack.c.bf16 %v6255_v21, %v805_v51  ;;  %1330 = vmatmul.bf16.gmra.mxu3 %v5652_v63  ;;  %v4645_v51 = vld [vmem:[#allocation3 + $0xc0] sm:$0xf] }
 0x1fb   : > { %v5296_v60 = vld [vmem:[#allocation4 + $0xc] sm:$0xf0]  ;;  %v4585_v2 = vor.u32 %v5317_v59, %v4584_v52  ;;  %v4378_v52 = vld [vmem:[#allocation11 + $0x8] sm:$0xf] }
 0x1fc   : > { %v4499_v4 = vor.u32 %v5296_v60, %v4498_v54  ;;  %925 = vst [vmem:[#allocation2 + $0x48] sm:$0xff] %v893_v15  ;;  %1634 = vmatpush.bf16.msra.mxu2 %v4395_v50  ;;  %v4379_v54 = vor.u32 %v5267_v53, %v4378_v52  ;;  %v5332_v50 = vld [vmem:[#allocation3 + $0xcc] sm:$0xf0] }
 0x1fd   : > { %1968 = vrot.lane.b32.xlu2 %v4585_v2, %s5941_s30  ;;  %1861 = vmatpush.bf16.msrb.mxu1 %v4548_v8  ;;  %v866_v59 = vpop.f32.mrf.mxu3  ;;  %v4646_v52 = vor.u32 %v5332_v50, %v4645_v51  ;;  %v4702_v51 = vld [vmem:[#allocation2 + $0xe4] sm:$0xf] }
 0x1fe   : > { %4532 = vmatmul.msk.bf16.vlgmr.msrb.gmra.mxu0 %vm1748_vm0, %v4499_v4 }
 0x200   : > { %1635 = vmatpush.bf16.msra.mxu2 %v4379_v54 }
 0x201   : > { %2057 = vmatpush.bf16.xpose.msrb.mxu3 %v2039_v14  ;;  %1862 = vmatpush.bf16.msrb.mxu1 %v4544_v16  ;;  %v807_v60 = vpop.f32.mrf.mxu2 }
 0x202   : > { %v895_v61 = vpack.c.bf16 %v6263_v42, %v807_v60  ;;  %v5313_v42 = vld [vmem:[#allocation15] sm:$0xff] }
 0x204   : > { %1915 = vmatpush.bf16.msrb.mxu2 %v5316_v57  ;;  %927 = vst [vmem:[#allocation2 + $0x58] sm:$0xff] %v895_v61  ;;  %v4633_v57 = vld [vmem:[#allocation3 + $0x60] sm:$0xf] }
 0x205   : > { %2140 = vrot.lane.b32.xlu2 %v4650_v25, %s5941_s30  ;;  %1863 = vmatpush.bf16.msrb.mxu1 %v4540_v27  ;;  %v869_v3 = vpop.f32.mrf.mxu3  ;;  %v4629_v61 = vld [vmem:[#allocation3 + $0x40] sm:$0xf] }
 0x207   : > { %1276 = vmatmul.bf16.gmra.mxu2 %v5651_v40 }
 0x208   : > { %1916 = vmatpush.bf16.msrb.mxu2 %v5315_v62 }
 0x209   : > { %2058 = vmatpush.bf16.xpose.msrb.mxu3 %v2036_v38  ;;  %1864 = vmatpush.bf16.msrb.mxu1 %v4536_v36  ;;  %v810_v21 = vpop.f32.mrf.mxu2 }
 0x20a   : > { %v897_v0 = vpack.c.bf16 %v6273_v1, %v810_v21  ;;  %1650 = vmatmul.bf16.vlgmr.msra.gmra.mxu3 %v6215_v28 }
 0x20c   : > { %929 = vst [vmem:[#allocation2 + $0x68] sm:$0xff] %v897_v0  ;;  %1917 = vmatpush.bf16.msrb.mxu2 %v5314_v11  ;;  %v5326_v11 = vld [vmem:[#allocation3 + $0xc] sm:$0xf0] }
 0x20d   : > { %v871_v6 = vpop.f32.mrf.mxu3 }
 0x210   : > { %1918 = vmatpush.bf16.msrb.mxu2 %v5313_v42 }
 0x211   : > { %2059 = vmatpush.bf16.xpose.msrb.mxu3 %v2033_v49  ;;  %v812_v2 = vpop.f32.mrf.mxu2 }
 0x212   : > { %v899_v4 = vpack.c.bf16 %v861_v33, %v812_v2 }
 0x214   : > { %931 = vst [vmem:[#allocation2 + $0x78] sm:$0xff] %v899_v4  ;;  %v5327_v4 = vld [vmem:[#allocation3 + $0x2c] sm:$0xf0] }
 0x215   : > { %v874_v7 = vpop.f32.mrf.mxu3 }
 0x217   : > { %1281 = vmatmul.bf16.gmra.mxu2 %v5652_v63  ;;  %v5328_v63 = vld [vmem:[#allocation3 + $0x4c] sm:$0xf0] }
 0x218   : > { %v4630_v21 = vor.u32 %v5328_v63, %v4629_v61  ;;  %v5331_v61 = vld [vmem:[#allocation3 + $0xac] sm:$0xf0] }
 0x219   : > { %2060 = vmatpush.bf16.xpose.msrb.mxu3 %v2030_v58  ;;  %v815_v8 = vpop.f32.mrf.mxu2  ;;  %v4634_v58 = vor.u32 %v5329_v55, %v4633_v57  ;;  %v5345_v55 = vld [vmem:[#allocation2 + $0xd0] sm:$0xf0]  ;;  %v4698_v57 = vld [vmem:[#allocation2 + $0xc4] sm:$0xf] }
 0x21a   : > { %v901_v9 = vpack.c.bf16 %v864_v48, %v815_v8 }
 0x21c   : > { %933 = vst [vmem:[#allocation2 + $0x88] sm:$0xff] %v901_v9 }
 0x21d   : > { %v876_v1 = vpop.f32.mrf.mxu3 }
 0x221   : > { %v817_v12 = vpop.f32.mrf.mxu2 }
 0x222   : > { %v903_v5 = vpack.c.bf16 %v866_v59, %v817_v12  ;;  %v4621_v12 = vld [vmem:[#allocation3] sm:$0xf] }
 0x224   : > { %935 = vst [vmem:[#allocation2 + $0x98] sm:$0xff] %v903_v5  ;;  %v4622_v5 = vor.u32 %v5326_v11, %v4621_v12  ;;  %v4690_v12 = vld [vmem:[#allocation2 + $0x84] sm:$0xf] }
 0x225   : > { %v879_v16 = vpop.f32.mrf.mxu3 }
 0x227   : > { %1636 = vmatmul.bf16.vlgmr.msra.gmra.mxu2 %v6215_v28 }
 0x229   : > { %v820_v13 = vpop.f32.mrf.mxu2 }
 0x22a   : > { %v905_v14 = vpack.c.bf16 %v869_v3, %v820_v13 }
 0x22c   : > { %937 = vst [vmem:[#allocation2 + $0xa8] sm:$0xff] %v905_v14 }
 0x22d   : > { %v881_v24 = vpop.f32.mrf.mxu3 }
 0x231   : > { %v822_v10 = vpop.f32.mrf.mxu2 }
 0x232   : > { %v907_v18 = vpack.c.bf16 %v871_v6, %v822_v10  ;;  %v4625_v6 = vld [vmem:[#allocation3 + $0x20] sm:$0xf] }
 0x234   : > { %939 = vst [vmem:[#allocation2 + $0xb8] sm:$0xff] %v907_v18 }
 0x235   : > { %v1296_v23 = vpop.f32.mrf.mxu3 }
 0x239   : > { %v825_v20 = vpop.f32.mrf.mxu2 }
 0x23a   : > { %v909_v22 = vpack.c.bf16 %v874_v7, %v825_v20  ;;  %v4626_v7 = vor.u32 %v5327_v4, %v4625_v6 }
 0x23c   : > { %941 = vst [vmem:[#allocation2 + $0xc8] sm:$0xff] %v909_v22 }
 0x23d   : > { %v1298_v28 = vpop.f32.mrf.mxu3 }
 0x241   : > { %v827_v25 = vpop.f32.mrf.mxu2 }
 0x242   : > { %v911_v26 = vpack.c.bf16 %v876_v1, %v827_v25  ;;  %v5336_v25 = vld [vmem:[#allocation15 + $0x30] sm:$0xff] }
 0x244   : > { %943 = vst [vmem:[#allocation2 + $0xd8] sm:$0xff] %v911_v26  ;;  %v5335_v26 = vld [vmem:[#allocation15 + $0x28] sm:$0xff] }
 0x245   : > { %v1301_v33 = vpop.f32.mrf.mxu3 }
 0x249   : > { %v830_v27 = vpop.f32.mrf.mxu2 }
 0x24a   : > { %v913_v29 = vpack.c.bf16 %v879_v16, %v830_v27 }
 0x24c   : > { %945 = vst [vmem:[#allocation2 + $0xe8] sm:$0xff] %v913_v29 }
 0x24d   : > { %v1303_v36 = vpop.f32.mrf.mxu3 }
 0x251   : > { %v832_v56 = vpop.f32.mrf.mxu2 }
 0x252   : > { %v915_v35 = vpack.c.bf16 %v881_v24, %v832_v56 }
 0x254   : > { %947 = vst [vmem:[#allocation2 + $0xf8] sm:$0xff] %v915_v35 }
 0x255   : > { %v1306_v46 = vpop.f32.mrf.mxu3 }
 0x257   : > { %v1969_v19 = vpop.permute.xlu2 %1968 }
 0x258   : > { %4618 = vmatmul.msk.bf16.vlgmr.msrb.gmra.mxu3 %vm1748_vm0, %v1969_v19 }
 0x259   : > { %v1247_v37 = vpop.f32.mrf.mxu2 }
 0x25a   : > { %v1337_v39 = vpack.c.bf16 %v1296_v23, %v1247_v37 }
 0x25c   : > { %1369 = vst [vmem:[#allocation3 + $0x8] sm:$0xff] %v1337_v39 }
 0x25d   : > { %v1308_v47 = vpop.f32.mrf.mxu3 }
 0x25f   : > { %v2141_v17 = vpop.permute.xlu2 %2140 }
 0x260   : > { %2150 = vmatpush.bf16.msra.mxu2 %v2141_v17  ;;  %v5337_v17 = vld [vmem:[#allocation15 + $0x38] sm:$0xff] }
 0x261   : > { %v1249_v43 = vpop.f32.mrf.mxu2  ;;  %2208 = vmatpush.bf16.msra.mxu1 %v5337_v17  ;;  %v4678_v17 = vld [vmem:[#allocation2 + $0x24] sm:$0xf] }
 0x262   : > { %v1339_v44 = vpack.c.bf16 %v1298_v28, %v1249_v43 }
 0x264   : > { %1371 = vst [vmem:[#allocation3 + $0x18] sm:$0xff] %v1339_v44 }
 0x265   : > { %v1311_v15 = vpop.f32.mrf.mxu3  ;;  %2209 = vmatpush.bf16.msra.mxu1 %v5336_v25 }
 0x269   : > { %v1252_v31 = vpop.f32.mrf.mxu2  ;;  %2210 = vmatpush.bf16.msra.mxu1 %v5335_v26 }
 0x26a   : > { %v1341_v45 = vpack.c.bf16 %v1301_v33, %v1252_v31 }
 0x26c   : > { %1373 = vst [vmem:[#allocation3 + $0x28] sm:$0xff] %v1341_v45 }
 0x26d   : > { %v1313_v59 = vpop.f32.mrf.mxu3  ;;  %2211 = vmatpush.bf16.msra.mxu1 %v5334_v32 }
 0x271   : > { %v1254_v48 = vpop.f32.mrf.mxu2 }
 0x272   : > { %v1343_v49 = vpack.c.bf16 %v1303_v36, %v1254_v48 }
 0x274   : > { %1375 = vst [vmem:[#allocation3 + $0x38] sm:$0xff] %v1343_v49  ;;  %v5346_v49 = vld [vmem:[#allocation2 + $0xf0] sm:$0xf0] }
 0x275   : > { %v1316_v2 = vpop.f32.mrf.mxu3 }
 0x279   : > { %v1257_v53 = vpop.f32.mrf.mxu2 }
 0x27a   : > { %v1345_v54 = vpack.c.bf16 %v1306_v46, %v1257_v53 }
 0x27b   : > { %v1785_v30 = vpop.f32.mrf.mxu0 }
 0x27c   : > { %v6299_v38 = vsel %vm1668_vm1, %v1785_v30, -inf  ;;  %1377 = vst [vmem:[#allocation3 + $0x48] sm:$0xff] %v1345_v54 }
 0x27d   : > { %1792 = vmax.xlane.f32.xlu0 %v6299_v38  ;;  %v1318_v42 = vpop.f32.mrf.mxu3 }
 0x281   : > { %v1259_v60 = vpop.f32.mrf.mxu2 }
 0x282   : > { %v1347_v62 = vpack.c.bf16 %v1308_v47, %v1259_v60 }
 0x283   : > { %v1787_v40 = vpop.f32.mrf.mxu0 }
 0x284   : > { %v6304_v41 = vsel %vm1668_vm1, %v1787_v40, -inf  ;;  %1379 = vst [vmem:[#allocation3 + $0x58] sm:$0xff] %v1347_v62 }
 0x285   : > { %1794 = vmax.xlane.f32.xlu1 %v6304_v41  ;;  %v1321_v14 = vpop.f32.mrf.mxu3 }
 0x289   : > { %v1262_v0 = vpop.f32.mrf.mxu2 }
 0x28a   : > { %v1349_v3 = vpack.c.bf16 %v1311_v15, %v1262_v0 }
 0x28c   : > { %1381 = vst [vmem:[#allocation3 + $0x68] sm:$0xff] %v1349_v3  ;;  %v4641_v3 = vld [vmem:[#allocation3 + $0xa0] sm:$0xf] }
 0x28d   : > { %v1323_v18 = vpop.f32.mrf.mxu3  ;;  %v4642_v4 = vor.u32 %v5331_v61, %v4641_v3  ;;  %v4731_v3 = vld [vmem:[#allocation3 + $0xc4] sm:$0xf] }
 0x291   : > { %v1264_v8 = vpop.f32.mrf.mxu2 }
 0x292   : > { %v1351_v9 = vpack.c.bf16 %v1313_v59, %v1264_v8  ;;  %v4699_v59 = vor.u32 %v5345_v55, %v4698_v57  ;;  %v4637_v8 = vld [vmem:[#allocation3 + $0x80] sm:$0xf] }
 0x294   : > { %1383 = vst [vmem:[#allocation3 + $0x78] sm:$0xff] %v1351_v9  ;;  %v2323_v63 = vsel %vm1748_vm0, %v4699_v59, 0 }
 0x295   : > { %v1326_v23 = vpop.f32.mrf.mxu3 }
 0x299   : > { %v1267_v1 = vpop.f32.mrf.mxu2 }
 0x29a   : > { %v1353_v13 = vpack.c.bf16 %v1316_v2, %v1267_v1  ;;  %v4694_v2 = vld [vmem:[#allocation2 + $0xa4] sm:$0xf] }
 0x29c   : > { %1385 = vst [vmem:[#allocation3 + $0x88] sm:$0xff] %v1353_v13  ;;  %v5342_v13 = vld [vmem:[#allocation2 + $0x70] sm:$0xf0] }
 0x29d   : > { %v1328_v28 = vpop.f32.mrf.mxu3 }
 0x29e   : > { %2138 = vrot.lane.b32.xlu1 %v4646_v52, %s5941_s30 }
 0x2a1   : > { %v1269_v16 = vpop.f32.mrf.mxu2 }
 0x2a2   : > { %v1355_v10 = vpack.c.bf16 %v1318_v42, %v1269_v16  ;;  %v5343_v42 = vld [vmem:[#allocation2 + $0x90] sm:$0xf0] }
 0x2a4   : > { %1387 = vst [vmem:[#allocation3 + $0x98] sm:$0xff] %v1355_v10 }
 0x2a5   : > { %v1331_v35 = vpop.f32.mrf.mxu3 }
 0x2a6   : > { %2132 = vrot.lane.b32.xlu1 %v4634_v58, %s5941_s30 }
 0x2a9   : > { %v1272_v24 = vpop.f32.mrf.mxu2 }
 0x2aa   : > { %v1357_v19 = vpack.c.bf16 %v1321_v14, %v1272_v24  ;;  %v4686_v14 = vld [vmem:[#allocation2 + $0x64] sm:$0xf] }
 0x2ab   : > { %v4687_v16 = vor.u32 %v5342_v13, %v4686_v14  ;;  %v4682_v24 = vld [vmem:[#allocation2 + $0x44] sm:$0xf] }
 0x2ac   : > { %1389 = vst [vmem:[#allocation3 + $0xa8] sm:$0xff] %v1357_v19  ;;  %v4715_v13 = vld [vmem:[#allocation3 + $0x44] sm:$0xf] }
 0x2ad   : > { %v1333_v43 = vpop.f32.mrf.mxu3  ;;  %v2314_v10 = vsel %vm1748_vm0, %v4687_v16, 0  ;;  %v5348_v16 = vld [vmem:[#allocation3 + $0x30] sm:$0xf0] }
 0x2ae   : > { %2130 = vrot.lane.b32.xlu1 %v4630_v21, %s5941_s30  ;;  %v5344_v21 = vld [vmem:[#allocation2 + $0xb0] sm:$0xf0] }
 0x2af   : > { %v4695_v6 = vor.u32 %v5344_v21, %v4694_v2 }
 0x2b1   : > { %v1274_v20 = vpop.f32.mrf.mxu2  ;;  %v2320_v9 = vsel %vm1748_vm0, %v4695_v6, 0  ;;  %v4727_v6 = vld [vmem:[#allocation3 + $0xa4] sm:$0xf] }
 0x2b2   : > { %v1359_v22 = vpack.c.bf16 %v1323_v18, %v1274_v20  ;;  %v5341_v18 = vld [vmem:[#allocation2 + $0x50] sm:$0xf0] }
 0x2b3   : > { %v4683_v19 = vor.u32 %v5341_v18, %v4682_v24  ;;  %v4711_v24 = vld [vmem:[#allocation3 + $0x24] sm:$0xf] }
 0x2b4   : > { %1391 = vst [vmem:[#allocation3 + $0xb8] sm:$0xff] %v1359_v22 }
 0x2b5   : > { %v1651_v50 = vpop.f32.mrf.mxu3  ;;  %v2311_v20 = vsel %vm1748_vm0, %v4683_v19, 0  ;;  %v4712_v19 = vor.u32 %v5348_v16, %v4711_v24 }
 0x2b6   : > { %2128 = vrot.lane.b32.xlu1 %v4626_v7, %s5941_s30  ;;  %v5330_v7 = vld [vmem:[#allocation3 + $0x8c] sm:$0xf0] }
 0x2b7   : > { %v4638_v11 = vor.u32 %v5330_v7, %v4637_v8  ;;  %v5351_v8 = vld [vmem:[#allocation3 + $0x90] sm:$0xf0] }
 0x2b9   : > { %v1277_v27 = vpop.f32.mrf.mxu2 }
 0x2ba   : > { %v1361_v29 = vpack.c.bf16 %v1326_v23, %v1277_v27  ;;  %v5340_v23 = vld [vmem:[#allocation2 + $0x30] sm:$0xf0] }
 0x2bb   : > { %v4679_v25 = vor.u32 %v5340_v23, %v4678_v17  ;;  %v4707_v17 = vld [vmem:[#allocation3 + $0x4] sm:$0xf] }
 0x2bc   : > { %1393 = vst [vmem:[#allocation3 + $0xc8] sm:$0xff] %v1361_v29  ;;  %v4674_v29 = vld [vmem:[#allocation2 + $0x4] sm:$0xf] }
 0x2bd   : > { %v1653_v58 = vpop.f32.mrf.mxu3  ;;  %v2308_v26 = vsel %vm1748_vm0, %v4679_v25, 0 }
 0x2be   : > { %2126 = vrot.lane.b32.xlu1 %v4622_v5, %s5941_s30  ;;  %v4691_v5 = vor.u32 %v5343_v42, %v4690_v12  ;;  %v5350_v42 = vld [vmem:[#allocation3 + $0x70] sm:$0xf0]  ;;  %v4719_v12 = vld [vmem:[#allocation3 + $0x64] sm:$0xf] }
 0x2c0   : > { %v2317_v1 = vsel %vm1748_vm0, %v4691_v5, 0  ;;  %v4720_v5 = vor.u32 %v5350_v42, %v4719_v12 }
 0x2c1   : > { %v1279_v33 = vpop.f32.mrf.mxu2 }
 0x2c2   : > { %v1363_v56 = vpack.c.bf16 %v1328_v28, %v1279_v33  ;;  %v5339_v28 = vld [vmem:[#allocation2 + $0x10] sm:$0xf0] }
 0x2c3   : > { %v4675_v32 = vor.u32 %v5339_v28, %v4674_v29 }
 0x2c4   : > { %1395 = vst [vmem:[#allocation3 + $0xd8] sm:$0xff] %v1363_v56 }
 0x2c5   : > { %v2305_v56 = vsel %vm1748_vm0, %v4675_v32, 0 }
 0x2c9   : > { %v1282_v37 = vpop.f32.mrf.mxu2 }
 0x2ca   : > { %v1365_v40 = vpack.c.bf16 %v1331_v35, %v1282_v37 }
 0x2cc   : > { %1397 = vst [vmem:[#allocation3 + $0xe8] sm:$0xff] %v1365_v40  ;;  %v4780_v40 = vld [vmem:[#allocation2 + $0xa4] sm:$0xf] }
 0x2d1   : > { %v1284_v31 = vpop.f32.mrf.mxu2 }
 0x2d2   : > { %v1367_v48 = vpack.c.bf16 %v1333_v43, %v1284_v31 }
 0x2d4   : > { %1399 = vst [vmem:[#allocation3 + $0xf8] sm:$0xff] %v1367_v48 }
 0x2d9   : > { %v1637_v15 = vpop.f32.mrf.mxu2 }
 0x2da   : > { %v1657_v53 = vpack.c.bf16 %v1651_v50, %v1637_v15 }
 0x2db   : > { %v2062_v22 = vpop.f32.mrf.mxu3 }
 0x2dc   : > { %1661 = vst [vmem:[#allocation4 + $0x8] sm:$0xff] %v1657_v53  ;;  %v6331_v35 = vsel %vm1668_vm1, %v2062_v22, -inf  ;;  %v5347_v22 = vld [vmem:[#allocation3 + $0x10] sm:$0xf0] }
 0x2e1   : > { %v1639_v60 = vpop.f32.mrf.mxu2 }
 0x2e2   : > { %v1659_v62 = vpack.c.bf16 %v1653_v58, %v1639_v60 }
 0x2e3   : > { %v2064_v27 = vpop.f32.mrf.mxu3 }
 0x2e4   : > { %1663 = vst [vmem:[#allocation4 + $0x18] sm:$0xff] %v1659_v62  ;;  %v6325_v33 = vsel %vm1668_vm1, %v2064_v27, -inf  ;;  %v5354_v62 = vld [vmem:[#allocation3 + $0xf0] sm:$0xf0] }
 0x2f0   : > { %v1793_v30 = vpop.xlane.xlu0 %1792 }
 0x2f1   : > { %v1796_v36 = vsub.f32 %v6299_v38, %v1793_v30  ;;  %v4703_v38 = vor.u32 %v5346_v49, %v4702_v51  ;;  %v5367_v30 = vld [vmem:[#allocation2 + $0xf0] sm:$0xf0] }
 0x2f3   : > { %v1798_v39 = vmul.f32 1.442695, %v1796_v36  ;;  %v4788_v36 = vld [vmem:[#allocation2 + $0xe4] sm:$0xf] }
 0x2f4   : > { %v4789_v37 = vor.u32 %v5367_v30, %v4788_v36  ;;  %v5366_v30 = vld [vmem:[#allocation2 + $0xd0] sm:$0xf0]  ;;  %v4784_v36 = vld [vmem:[#allocation2 + $0xc4] sm:$0xf] }
 0x2f5   : > { %5581 = vpow2.f32 %v1798_v39  ;;  %v5365_v39 = vld [vmem:[#allocation2 + $0xb0] sm:$0xf0] }
 0x2f6   : > { %v4781_v43 = vor.u32 %v5365_v39, %v4780_v40  ;;  %v4776_v39 = vld [vmem:[#allocation2 + $0x84] sm:$0xf]  ;;  %v5363_v40 = vld [vmem:[#allocation2 + $0x70] sm:$0xf0] }
 0x2f8   : > { %v1795_v44 = vpop.xlane.xlu1 %1794 }
 0x2f9   : > { %v1797_v46 = vsub.f32 %v6304_v41, %v1795_v44  ;;  %v2326_v41 = vsel %vm1748_vm0, %v4703_v38, 0  ;;  %v5362_v44 = vld [vmem:[#allocation2 + $0x50] sm:$0xf0] }
 0x2fb   : > { %v5582_v45 = vpop.eup %5581  ;;  %v1800_v47 = vmul.f32 1.442695, %v1797_v46  ;;  %v4768_v46 = vld [vmem:[#allocation2 + $0x44] sm:$0xf] }
 0x2fc   : > { %1802 = vadd.xlane.f32.xlu2 %v5582_v45  ;;  %v4769_v31 = vor.u32 %v5362_v44, %v4768_v46  ;;  %v4772_v44 = vld [vmem:[#allocation2 + $0x64] sm:$0xf] }
 0x2fd   : > { %5583 = vpow2.f32 %v1800_v47  ;;  %v4760_v47 = vld [vmem:[#allocation2 + $0x4] sm:$0xf]  ;;  %v4773_v46 = vor.u32 %v5363_v40, %v4772_v44  ;;  %v5377_v40 = vld [vmem:[#allocation15 + $0x68] sm:$0xff] }
 0x303   : > { %v5584_v52 = vpop.eup %5583 }
 0x304   : > { %v1808_v54 = vpack.c.bf16 %v5584_v52, %v5582_v45  ;;  %1804 = vadd.xlane.f32.xlu0 %v5584_v52  ;;  %v5360_v45 = vld [vmem:[#allocation2 + $0x10] sm:$0xf0] }
 0x305   : > { %v4761_v48 = vor.u32 %v5360_v45, %v4760_v47  ;;  %v4764_v45 = vld [vmem:[#allocation2 + $0x24] sm:$0xf]  ;;  %v5375_v47 = vld [vmem:[#allocation3 + $0xf0] sm:$0xf0] }
 0x306   : > { %1865 = vmatmul.bf16.vlgmr.msrb.gmra.mxu1 %v1808_v54 }
 0x307   : > { %2328 = vmatpush.bf16.xpose.msrb.mxu1 %v2326_v41 }
 0x30f   : > { %2329 = vmatpush.bf16.xpose.msrb.mxu1 %v2323_v63  ;;  %v4735_v63 = vld [vmem:[#allocation3 + $0xe4] sm:$0xf] }
 0x310   : > { %v2139_v0 = vpop.permute.xlu1 %2138  ;;  %v4736_v21 = vor.u32 %v5354_v62, %v4735_v63 }
 0x311   : > { %2151 = vmatpush.bf16.msra.mxu2 %v2139_v0  ;;  %v5353_v0 = vld [vmem:[#allocation3 + $0xd0] sm:$0xf0] }
 0x312   : > { %v4732_v2 = vor.u32 %v5353_v0, %v4731_v3 }
 0x314   : > { %2136 = vrot.lane.b32.xlu2 %v4642_v4, %s5941_s30  ;;  %v5352_v4 = vld [vmem:[#allocation3 + $0xb0] sm:$0xf0] }
 0x315   : > { %v4728_v7 = vor.u32 %v5352_v4, %v4727_v6 }
 0x317   : > { %2330 = vmatpush.bf16.xpose.msrb.mxu1 %v2320_v9  ;;  %v4723_v9 = vld [vmem:[#allocation3 + $0x84] sm:$0xf] }
 0x318   : > { %2134 = vrot.lane.b32.xlu0 %v4638_v11, %s5941_s30  ;;  %v2133_v51 = vpop.permute.xlu1 %2132  ;;  %v4724_v11 = vor.u32 %v5351_v8, %v4723_v9 }
 0x31f   : > { %2331 = vmatpush.bf16.xpose.msrb.mxu1 %v2317_v1  ;;  %v5349_v1 = vld [vmem:[#allocation3 + $0x50] sm:$0xf0] }
 0x320   : > { %v2131_v52 = vpop.permute.xlu1 %2130  ;;  %v4716_v14 = vor.u32 %v5349_v1, %v4715_v13  ;;  %v4670_v13 = vld [vmem:[#allocation4 + $0x4] sm:$0xf] }
 0x327   : > { %2332 = vmatpush.bf16.xpose.msrb.mxu1 %v2314_v10 }
 0x328   : > { %v2129_v60 = vpop.permute.xlu1 %2128 }
 0x32f   : > { %2333 = vmatpush.bf16.xpose.msrb.mxu1 %v2311_v20 }
 0x330   : > { %v2127_v61 = vpop.permute.xlu1 %2126 }
 0x337   : > { %2334 = vmatpush.bf16.xpose.msrb.mxu1 %v2308_v26  ;;  %v4708_v26 = vor.u32 %v5347_v22, %v4707_v17 }
 0x33d   : > { %2071 = vmax.xlane.f32.xlu2 %v6325_v33 }
 0x33f   : > { %2335 = vmatpush.bf16.xpose.msrb.mxu1 %v2305_v56 }
 0x342   : > { %2069 = vmax.xlane.f32.xlu0 %v6331_v35 }
 0x355   : > { %2576 = vrot.lane.b32.xlu2 %v4789_v37, %s5941_s30  ;;  %v4785_v37 = vor.u32 %v5366_v30, %v4784_v36 }
 0x35d   : > { %2572 = vrot.lane.b32.xlu2 %v4781_v43, %s5941_s30 }
 0x365   : > { %2566 = vrot.lane.b32.xlu2 %v4769_v31, %s5941_s30  ;;  %v5361_v31 = vld [vmem:[#allocation2 + $0x30] sm:$0xf0] }
 0x36d   : > { %2562 = vrot.lane.b32.xlu2 %v4761_v48, %s5941_s30  ;;  %v4765_v48 = vor.u32 %v5361_v31, %v4764_v45 }
 0x36f   : > { %v1803_v49 = vpop.xlane.xlu2 %1802 }
 0x370   : > { %5585 = vrcp.f32 %v1803_v49  ;;  %v4821_v49 = vld [vmem:[#allocation3 + $0xe4] sm:$0xf] }
 0x376   : > { %v5586_v53 = vpop.eup %5585 }
 0x377   : > { %v2137_v50 = vpop.permute.xlu2 %2136  ;;  %v1805_v38 = vpop.xlane.xlu0 %1804 }
 0x378   : > { %2152 = vmatpush.bf16.msra.mxu2 %v2137_v50  ;;  %5587 = vrcp.f32 %v1805_v38  ;;  %v4822_v50 = vor.u32 %v5375_v47, %v4821_v49  ;;  %v4756_v38 = vld [vmem:[#allocation4 + $0x4] sm:$0xf] }
 0x37e   : > { %v5588_v41 = vpop.eup %5587 }
 0x383   : > { %v1866_v15 = vpop.f32.mrf.mxu1 }
 0x384   : > { %v1871_v57 = vmul.f32 %v5586_v53, %v1866_v15  ;;  %v5357_v53 = vld [vmem:[#allocation15 + $0x50] sm:$0xff] }
 0x38a   : > { %v2135_v54 = vpop.permute.xlu0 %2134 }
 0x38b   : > { %v1868_v55 = vpop.f32.mrf.mxu1  ;;  %2153 = vmatpush.bf16.msra.mxu2 %v2135_v54  ;;  %v5356_v54 = vld [vmem:[#allocation15 + $0x48] sm:$0xff] }
 0x38c   : > { %v1872_v58 = vmul.f32 %v5588_v41, %v1868_v55  ;;  %v5355_v41 = vld [vmem:[#allocation15 + $0x40] sm:$0xff] }
 0x38e   : > { %v1875_v59 = vpack.c.bf16 %v1872_v58, %v1871_v57 }
 0x38f   : > { %2154 = vmatpush.bf16.msra.mxu2 %v2133_v51  ;;  %v5359_v51 = vld [vmem:[#allocation4 + $0x10] sm:$0xf0] }
 0x390   : > { %4581 = vmatmul.msk.bf16.vlgmr.msrb.gmra.mxu2 %vm1748_vm0, %v1875_v59  ;;  %v4757_v15 = vor.u32 %v5359_v51, %v4756_v38  ;;  %v5388_v51 = vld [vmem:[#allocation2 + $0xf4] sm:$0xf0] }
 0x393   : > { %2155 = vmatpush.bf16.msra.mxu2 %v2131_v52  ;;  %v5358_v52 = vld [vmem:[#allocation15 + $0x58] sm:$0xff] }
 0x394   : > { %2467 = vmatpush.bf16.msra.mxu0 %v5358_v52 }
 0x397   : > { %2156 = vmatpush.bf16.msra.mxu2 %v2129_v60 }
 0x398   : > { %2468 = vmatpush.bf16.msra.mxu0 %v5357_v53 }
 0x39b   : > { %2157 = vmatpush.bf16.msra.mxu2 %v2127_v61 }
 0x39c   : > { %2469 = vmatpush.bf16.msra.mxu0 %v5356_v54  ;;  %v4870_v54 = vld [vmem:[#allocation2 + $0xc8] sm:$0xf] }
 0x39f   : > { %2409 = vmatpush.bf16.msrb.mxu2 %v4736_v21 }
 0x3a0   : > { %2470 = vmatpush.bf16.msra.mxu0 %v5355_v41  ;;  %v5387_v41 = vld [vmem:[#allocation2 + $0xd4] sm:$0xf0] }
 0x3a3   : > { %2410 = vmatpush.bf16.msrb.mxu2 %v4732_v2 }
 0x3a7   : > { %2411 = vmatpush.bf16.msrb.mxu2 %v4728_v7 }
 0x3ab   : > { %2412 = vmatpush.bf16.msrb.mxu2 %v4724_v11 }
 0x3af   : > { %2413 = vmatpush.bf16.msrb.mxu2 %v4720_v5  ;;  %v5338_v5 = vld [vmem:[#allocation4 + $0x10] sm:$0xf0] }
 0x3b0   : > { %v2072_v10 = vpop.xlane.xlu2 %2071 }
 0x3b1   : > { %v2074_v18 = vsub.f32 %v6325_v33, %v2072_v10 }
 0x3b3   : > { %2414 = vmatpush.bf16.msrb.mxu2 %v4716_v14  ;;  %v2077_v20 = vmul.f32 1.442695, %v2074_v18  ;;  %v4671_v14 = vor.u32 %v5338_v5, %v4670_v13  ;;  %v4858_v13 = vld [vmem:[#allocation2 + $0x68] sm:$0xf] }
 0x3b5   : > { %5589 = vpow2.f32 %v2077_v20  ;;  %v2070_v23 = vpop.xlane.xlu0 %2069 }
 0x3b6   : > { %v2073_v25 = vsub.f32 %v6331_v35, %v2070_v23  ;;  %v5364_v35 = vld [vmem:[#allocation2 + $0x90] sm:$0xf0] }
 0x3b7   : > { %2415 = vmatpush.bf16.msrb.mxu2 %v4712_v19  ;;  %v4777_v43 = vor.u32 %v5364_v35, %v4776_v39  ;;  %v5379_v35 = vld [vmem:[#allocation15 + $0x78] sm:$0xff]  ;;  %v5378_v39 = vld [vmem:[#allocation15 + $0x70] sm:$0xff] }
 0x3b8   : > { %v2075_v28 = vmul.f32 1.442695, %v2073_v25  ;;  %v2577_v27 = vpop.permute.xlu2 %2576 }
 0x3b9   : > { %v2603_v29 = vsel %vm1748_vm0, %v2577_v27, 0  ;;  %v5374_v27 = vld [vmem:[#allocation3 + $0xd0] sm:$0xf0] }
 0x3ba   : > { %5591 = vpow2.f32 %v2075_v28  ;;  %2605 = vmatpush.bf16.xpose.msra.mxu3 %v2603_v29  ;;  %v4817_v29 = vld [vmem:[#allocation3 + $0xc4] sm:$0xf] }
 0x3bb   : > { %2416 = vmatpush.bf16.msrb.mxu2 %v4708_v26  ;;  %v5590_v32 = vpop.eup %5589 }
 0x3bc   : > { %2081 = vadd.xlane.f32.xlu0 %v5590_v32 }
 0x3c0   : > { %v5592_v33 = vpop.eup %5591  ;;  %v2573_v61 = vpop.permute.xlu2 %2572 }
 0x3c1   : > { %v2085_v56 = vpack.c.bf16 %v5590_v32, %v5592_v33  ;;  %2079 = vadd.xlane.f32.xlu1 %v5592_v33  ;;  %v2597_v21 = vsel %vm1748_vm0, %v2573_v61, 0  ;;  %v4818_v32 = vor.u32 %v5374_v27, %v4817_v29  ;;  %v5371_v33 = vld [vmem:[#allocation3 + $0x70] sm:$0xf0] }
 0x3c2   : > { %v5372_v61 = vld [vmem:[#allocation3 + $0x90] sm:$0xf0] }
 0x3c3   : > { %2158 = vmatmul.bf16.vlgmr.msra.gmra.mxu2 %v2085_v56  ;;  %v4805_v56 = vld [vmem:[#allocation3 + $0x64] sm:$0xf] }
 0x3c4   : > { %v4806_v30 = vor.u32 %v5371_v33, %v4805_v56  ;;  %2760 = vmatpush.bf16.msra.mxu2 %v5379_v35  ;;  %v5382_v33 = vld [vmem:[#allocation2 + $0x34] sm:$0xf0] }
 0x3c5   : > { %v5381_v35 = vld [vmem:[#allocation2 + $0x14] sm:$0xf0] }
 0x3c8   : > { %v2567_v1 = vpop.permute.xlu2 %2566  ;;  %2761 = vmatpush.bf16.msra.mxu2 %v5378_v39 }
 0x3c9   : > { %v2588_v16 = vsel %vm1748_vm0, %v2567_v1, 0 }
 0x3cc   : > { %2762 = vmatpush.bf16.msra.mxu2 %v5377_v40 }
 0x3d0   : > { %2574 = vrot.lane.b32.xlu0 %v4785_v37, %s5941_s30  ;;  %v2563_v24 = vpop.permute.xlu2 %2562 }
 0x3d1   : > { %v2582_v19 = vsel %vm1748_vm0, %v2563_v24, 0 }
 0x3d8   : > { %2570 = vrot.lane.b32.xlu0 %v4777_v43, %s5941_s30  ;;  %v5376_v43 = vld [vmem:[#allocation15 + $0x60] sm:$0xff] }
 0x3d9   : > { %2763 = vmatpush.bf16.msra.mxu2 %v5376_v43 }
 0x3da   : > { %2568 = vrot.lane.b32.xlu1 %v4773_v46, %s5941_s30 }
 0x3e0   : > { %2564 = vrot.lane.b32.xlu0 %v4765_v48, %s5941_s30 }
 0x3e2   : > { %2692 = vrot.lane.b32.xlu1 %v4822_v50, %s5941_s30  ;;  %v4874_v50 = vld [vmem:[#allocation2 + $0xe8] sm:$0xf] }
 0x3e3   : > { %v4875_v38 = vor.u32 %v5388_v51, %v4874_v50  ;;  %v5407_v50 = vld [vmem:[#allocation2 + $0xb4] sm:$0xf0] }
 0x3e5   : > { %v2878_v53 = vsel %vm1748_vm0, %v4875_v38, 0  ;;  %v4940_v38 = vld [vmem:[#allocation2 + $0x48] sm:$0xf] }
 0x3e8   : > { %2520 = vrot.lane.b32.xlu0 %v4757_v15, %s5941_s30 }
 0x413   : > { %v6348_v55 = vpop.f32.mrf.mxu2 }
 0x41b   : > { %v6350_v58 = vpop.f32.mrf.mxu2 }
 0x42f   : > { %v2082_v57 = vpop.xlane.xlu0 %2081 }
 0x430   : > { %5593 = vrcp.f32 %v2082_v57  ;;  %v4871_v57 = vor.u32 %v5387_v41, %v4870_v54  ;;  %v4936_v54 = vld [vmem:[#allocation2 + $0x28] sm:$0xf]  ;;  %v5403_v41 = vld [vmem:[#allocation2 + $0x34] sm:$0xf0] }
 0x434   : > { %v2080_v62 = vpop.xlane.xlu1 %2079 }
 0x435   : > { %5595 = vrcp.f32 %v2080_v62  ;;  %v4866_v62 = vld [vmem:[#allocation2 + $0xa8] sm:$0xf] }
 0x436   : > { %v5594_v3 = vpop.eup %5593 }
 0x43b   : > { %v5596_v2 = vpop.eup %5595 }
 0x442   : > { %v2575_v59 = vpop.permute.xlu0 %2574 }
 0x443   : > { %v2600_v60 = vsel %vm1748_vm0, %v2575_v59, 0 }
 0x444   : > { %2606 = vmatpush.bf16.xpose.msra.mxu3 %v2600_v60  ;;  %v2875_v60 = vsel %vm1748_vm0, %v4871_v57, 0 }
 0x446   : > { %v2159_v63 = vpop.f32.mrf.mxu2 }
 0x447   : > { %v2164_v6 = vmul.f32 %v5596_v2, %v2159_v63  ;;  %v5386_v63 = vld [vmem:[#allocation2 + $0xb4] sm:$0xf0] }
 0x44a   : > { %v2571_v8 = vpop.permute.xlu0 %2570 }
 0x44b   : > { %v2594_v11 = vsel %vm1748_vm0, %v2571_v8, 0  ;;  %v5370_v8 = vld [vmem:[#allocation3 + $0x50] sm:$0xf0] }
 0x44c   : > { %2607 = vmatpush.bf16.xpose.msra.mxu3 %v2597_v21  ;;  %v2569_v0 = vpop.permute.xlu1 %2568  ;;  %v4809_v21 = vld [vmem:[#allocation3 + $0x84] sm:$0xf] }
 0x44d   : > { %v2591_v12 = vsel %vm1748_vm0, %v2569_v0, 0  ;;  %v4867_v0 = vor.u32 %v5386_v63, %v4866_v62  ;;  %v5402_v62 = vld [vmem:[#allocation2 + $0x14] sm:$0xf0] }
 0x44e   : > { %v2161_v4 = vpop.f32.mrf.mxu2 }
 0x44f   : > { %v2165_v7 = vmul.f32 %v5594_v3, %v2161_v4  ;;  %v4810_v3 = vor.u32 %v5372_v61, %v4809_v21  ;;  %v2872_v2 = vsel %vm1748_vm0, %v4867_v0, 0  ;;  %v5373_v4 = vld [vmem:[#allocation3 + $0xb0] sm:$0xf0]  ;;  %v4928_v0 = vld [vmem:[#allocation4 + $0x8] sm:$0xf] }
 0x451   : > { %v2168_v9 = vpack.c.bf16 %v2165_v7, %v2164_v6  ;;  %v4862_v6 = vld [vmem:[#allocation2 + $0x88] sm:$0xf]  ;;  %v5385_v7 = vld [vmem:[#allocation2 + $0x94] sm:$0xf0] }
 0x452   : > { %v2565_v10 = vpop.permute.xlu0 %2564 }
 0x453   : > { %4667 = vmatmul.msk.bf16.vlgmr.msra.gmra.mxu1 %vm1748_vm0, %v2168_v9  ;;  %v2585_v18 = vsel %vm1748_vm0, %v2565_v10, 0  ;;  %v4813_v9 = vld [vmem:[#allocation3 + $0xa4] sm:$0xf] }
 0x454   : > { %2608 = vmatpush.bf16.xpose.msra.mxu3 %v2594_v11  ;;  %v2693_v42 = vpop.permute.xlu1 %2692  ;;  %v4814_v11 = vor.u32 %v5373_v4, %v4813_v9  ;;  %v4797_v10 = vld [vmem:[#allocation3 + $0x24] sm:$0xf] }
 0x455   : > { %2702 = vmatpush.bf16.msrb.mxu0 %v2693_v42  ;;  %v4801_v42 = vld [vmem:[#allocation3 + $0x44] sm:$0xf] }
 0x456   : > { %v4802_v5 = vor.u32 %v5370_v8, %v4801_v42  ;;  %v4985_v42 = vld [vmem:[#allocation3 + $0xa8] sm:$0xf] }
 0x45a   : > { %v2521_v20 = vpop.permute.xlu0 %2520 }
 0x45c   : > { %2609 = vmatpush.bf16.xpose.msra.mxu3 %v2591_v12  ;;  %v4863_v12 = vor.u32 %v5385_v7, %v4862_v6 }
 0x45e   : > { %v2869_v1 = vsel %vm1748_vm0, %v4863_v12, 0  ;;  %v5415_v12 = vld [vmem:[#allocation3 + $0xb4] sm:$0xf0] }
 0x463   : > { %4704 = vmatmul.msk.bf16.vlgmr.msrb.gmra.mxu1 %vm1748_vm0, %v4671_v14  ;;  %v5384_v14 = vld [vmem:[#allocation2 + $0x74] sm:$0xf0] }
 0x464   : > { %2610 = vmatpush.bf16.xpose.msra.mxu3 %v2588_v16  ;;  %v5369_v16 = vld [vmem:[#allocation3 + $0x30] sm:$0xf0] }
 0x465   : > { %v4798_v24 = vor.u32 %v5369_v16, %v4797_v10  ;;  %v5414_v16 = vld [vmem:[#allocation3 + $0x94] sm:$0xf0]  ;;  %v4907_v10 = vld [vmem:[#allocation3 + $0xe8] sm:$0xf] }
 0x46c   : > { %2611 = vmatpush.bf16.xpose.msra.mxu3 %v2585_v18  ;;  %v4859_v18 = vor.u32 %v5384_v14, %v4858_v13  ;;  %v4981_v14 = vld [vmem:[#allocation3 + $0x88] sm:$0xf] }
 0x474   : > { %2612 = vmatpush.bf16.xpose.msra.mxu3 %v2582_v19  ;;  %v2866_v19 = vsel %vm1748_vm0, %v4859_v18, 0  ;;  %v5396_v18 = vld [vmem:[#allocation3 + $0xf4] sm:$0xf0] }
 0x47b   : > { %4790 = vmatmul.msk.bf16.vlgmr.msra.gmra.mxu3 %vm1748_vm0, %v2521_v20  ;;  %v4854_v20 = vld [vmem:[#allocation2 + $0x48] sm:$0xf] }
 0x4d0   : > { %v6362_v22 = vpop.f32.mrf.mxu1 }
 0x4d8   : > { %v6364_v23 = vpop.f32.mrf.mxu1 }
 0x4e0   : > { %v2337_v17 = vpop.f32.mrf.mxu1 }
 0x4e1   : > { %v2342_v25 = vsel %vm1668_vm1, %v2337_v17, -inf  ;;  %v5383_v17 = vld [vmem:[#allocation2 + $0x54] sm:$0xf0] }
 0x4e2   : > { %2344 = vmax.xlane.f32.xlu2 %v2342_v25 }
 0x4e8   : > { %v2339_v26 = vpop.f32.mrf.mxu1 }
 0x4e9   : > { %v2343_v28 = vsel %vm1668_vm1, %v2339_v26, -inf  ;;  %v4793_v26 = vld [vmem:[#allocation3 + $0x4] sm:$0xf] }
 0x4ea   : > { %2346 = vmax.xlane.f32.xlu0 %v2343_v28 }
 0x4fe   : > { %2690 = vrot.lane.b32.xlu0 %v4818_v32, %s5941_s30  ;;  %v2614_v36 = vpop.f32.mrf.mxu3  ;;  %v4850_v32 = vld [vmem:[#allocation2 + $0x28] sm:$0xf] }
 0x4ff   : > { %v6374_v37 = vsel %vm1668_vm1, %v2614_v36, -inf  ;;  %v4851_v56 = vor.u32 %v5382_v33, %v4850_v32  ;;  %v4846_v36 = vld [vmem:[#allocation2 + $0x8] sm:$0xf]  ;;  %v5394_v32 = vld [vmem:[#allocation3 + $0xb4] sm:$0xf0] }
 0x500   : > { %v4847_v39 = vor.u32 %v5381_v35, %v4846_v36  ;;  %v5393_v36 = vld [vmem:[#allocation3 + $0x94] sm:$0xf0] }
 0x502   : > { %v2857_v43 = vsel %vm1748_vm0, %v4847_v39, 0  ;;  %v4973_v39 = vld [vmem:[#allocation3 + $0x48] sm:$0xf] }
 0x506   : > { %2684 = vrot.lane.b32.xlu0 %v4806_v30, %s5941_s30  ;;  %v2860_v30 = vsel %vm1748_vm0, %v4851_v56, 0 }
 0x530   : > { %2621 = vmax.xlane.f32.xlu0 %v6374_v37 }
 0x555   : > { %v2345_v44 = vpop.xlane.xlu2 %2344 }
 0x556   : > { %v2348_v46 = vsub.f32 %v2342_v25, %v2345_v44  ;;  %v5368_v25 = vld [vmem:[#allocation3 + $0x10] sm:$0xf0]  ;;  %v2616_v44 = vpop.f32.mrf.mxu3 }
 0x557   : > { %v4794_v27 = vor.u32 %v5368_v25, %v4793_v26  ;;  %v5395_v25 = vld [vmem:[#allocation3 + $0xd4] sm:$0xf0] }
 0x558   : > { %v2350_v31 = vmul.f32 1.442695, %v2348_v46  ;;  %v6392_v46 = vsel %vm1668_vm1, %v2616_v44, -inf  ;;  %v5392_v44 = vld [vmem:[#allocation3 + $0x74] sm:$0xf0] }
 0x55a   : > { %5597 = vpow2.f32 %v2350_v31 }
 0x55d   : > { %v2347_v45 = vpop.xlane.xlu0 %2346 }
 0x55e   : > { %v2349_v47 = vsub.f32 %v2343_v28, %v2347_v45  ;;  %v4855_v28 = vor.u32 %v5383_v17, %v4854_v20  ;;  %v4908_v20 = vor.u32 %v5396_v18, %v4907_v10  ;;  %v4903_v17 = vld [vmem:[#allocation3 + $0xc8] sm:$0xf] }
 0x55f   : > { %v4904_v26 = vor.u32 %v5395_v25, %v4903_v17  ;;  %v5438_v17 = vld [vmem:[#allocation3 + $0xf8] sm:$0xf0]  ;;  %v5075_v25 = vld [vmem:[#allocation3 + $0xcc] sm:$0xf] }
 0x560   : > { %v5598_v48 = vpop.eup %5597  ;;  %v2352_v49 = vmul.f32 1.442695, %v2349_v47  ;;  %v2863_v29 = vsel %vm1748_vm0, %v4855_v28, 0  ;;  %v4977_v28 = vld [vmem:[#allocation3 + $0x68] sm:$0xf] }
 0x561   : > { %2354 = vadd.xlane.f32.xlu1 %v5598_v48 }
 0x562   : > { %5599 = vpow2.f32 %v2352_v49  ;;  %v4952_v49 = vld [vmem:[#allocation2 + $0xa8] sm:$0xf] }
 0x563   : > { %v4953_v51 = vor.u32 %v5407_v50, %v4952_v49  ;;  %v5391_v49 = vld [vmem:[#allocation3 + $0x54] sm:$0xf0] }
 0x568   : > { %v5600_v15 = vpop.eup %5599 }
 0x569   : > { %v2360_v52 = vpack.c.bf16 %v5600_v15, %v5598_v48  ;;  %2356 = vadd.xlane.f32.xlu2 %v5600_v15  ;;  %v5404_v15 = vld [vmem:[#allocation2 + $0x54] sm:$0xf0] }
 0x56b   : > { %2417 = vmatmul.bf16.vlgmr.msrb.gmra.mxu2 %v2360_v52  ;;  %v4941_v52 = vor.u32 %v5404_v15, %v4940_v38  ;;  %v5411_v38 = vld [vmem:[#allocation3 + $0x34] sm:$0xf0]  ;;  %v4883_v15 = vld [vmem:[#allocation3 + $0x28] sm:$0xf] }
 0x56c   : > { %2880 = vmatpush.bf16.xpose.msrb.mxu2 %v2878_v53 }
 0x570   : > { %v2691_v59 = vpop.permute.xlu0 %2690 }
 0x571   : > { %2703 = vmatpush.bf16.msrb.mxu0 %v2691_v59 }
 0x574   : > { %2881 = vmatpush.bf16.xpose.msrb.mxu2 %v2875_v60  ;;  %v4932_v60 = vld [vmem:[#allocation2 + $0x8] sm:$0xf] }
 0x575   : > { %v4933_v63 = vor.u32 %v5402_v62, %v4932_v60 }
 0x578   : > { %v2685_v40 = vpop.permute.xlu0 %2684 }
 0x57a   : > { %2686 = vrot.lane.b32.xlu1 %v4810_v3, %s5941_s30  ;;  %v5401_v3 = vld [vmem:[#allocation4 + $0x14] sm:$0xf0] }
 0x57c   : > { %2882 = vmatpush.bf16.xpose.msrb.mxu2 %v2872_v2  ;;  %v4929_v2 = vor.u32 %v5401_v3, %v4928_v0  ;;  %v5132_v3 = vld [vmem:[#allocation2 + $0xec] sm:$0xf] }
 0x581   : > { %2688 = vrot.lane.b32.xlu2 %v4814_v11, %s5941_s30 }
 0x582   : > { %2682 = vrot.lane.b32.xlu1 %v4802_v5, %s5941_s30 }
 0x584   : > { %2883 = vmatpush.bf16.xpose.msrb.mxu2 %v2869_v1  ;;  %v4986_v1 = vor.u32 %v5415_v12, %v4985_v42  ;;  %v2219_v12 = vadd.f32 %v6364_v23, %v6350_v58  ;;  %v5437_v58 = vld [vmem:[#allocation3 + $0xd8] sm:$0xf0] }
 0x585   : > { %v5076_v23 = vor.u32 %v5437_v58, %v5075_v25 }
 0x58a   : > { %2680 = vrot.lane.b32.xlu1 %v4798_v24, %s5941_s30  ;;  %v4982_v24 = vor.u32 %v5414_v16, %v4981_v14 }
 0x58c   : > { %2884 = vmatpush.bf16.xpose.msrb.mxu2 %v2866_v19 }
 0x592   : > { %2678 = vrot.lane.b32.xlu1 %v4794_v27, %s5941_s30  ;;  %v5413_v27 = vld [vmem:[#allocation3 + $0x74] sm:$0xf0] }
 0x593   : > { %v4978_v33 = vor.u32 %v5413_v27, %v4977_v28  ;;  %v5436_v28 = vld [vmem:[#allocation3 + $0xb8] sm:$0xf0] }
 0x594   : > { %2885 = vmatpush.bf16.xpose.msrb.mxu2 %v2863_v29  ;;  %v4899_v29 = vld [vmem:[#allocation3 + $0xa8] sm:$0xf] }
 0x595   : > { %v4900_v56 = vor.u32 %v5394_v32, %v4899_v29  ;;  %v5067_v29 = vld [vmem:[#allocation3 + $0x8c] sm:$0xf]  ;;  %v5435_v32 = vld [vmem:[#allocation3 + $0x98] sm:$0xf0] }
 0x59c   : > { %2886 = vmatpush.bf16.xpose.msrb.mxu2 %v2860_v30  ;;  %v4895_v30 = vld [vmem:[#allocation3 + $0x88] sm:$0xf] }
 0x59d   : > { %v4896_v35 = vor.u32 %v5393_v36, %v4895_v30  ;;  %v5380_v30 = vld [vmem:[#allocation4 + $0x14] sm:$0xf0]  ;;  %v5063_v36 = vld [vmem:[#allocation3 + $0x6c] sm:$0xf] }
 0x5a3   : > { %v2622_v31 = vpop.xlane.xlu0 %2621 }
 0x5a4   : > { %2887 = vmatpush.bf16.xpose.msrb.mxu2 %v2857_v43  ;;  %v2625_v45 = vsub.f32 %v6374_v37, %v2622_v31  ;;  %v4937_v37 = vor.u32 %v5403_v41, %v4936_v54  ;;  %v4891_v43 = vld [vmem:[#allocation3 + $0x68] sm:$0xf] }
 0x5a6   : > { %v2627_v47 = vmul.f32 1.442695, %v2625_v45  ;;  %v4892_v45 = vor.u32 %v5392_v44, %v4891_v43  ;;  %v5059_v43 = vld [vmem:[#allocation3 + $0x4c] sm:$0xf]  ;;  %v5433_v44 = vld [vmem:[#allocation3 + $0x58] sm:$0xf0] }
 0x5a8   : > { %5601 = vpow2.f32 %v2627_v47  ;;  %v4887_v47 = vld [vmem:[#allocation3 + $0x48] sm:$0xf] }
 0x5a9   : > { %v4888_v50 = vor.u32 %v5391_v49, %v4887_v47  ;;  %v5432_v47 = vld [vmem:[#allocation3 + $0x38] sm:$0xf0] }
 0x5aa   : > { %2623 = vmax.xlane.f32.xlu2 %v6392_v46 }
 0x5ae   : > { %v6396_v48 = vpop.eup %5601 }
 0x5bc   : > { %2631 = vadd.xlane.f32.xlu1 %v6396_v48 }
 0x5d4   : > { %v2355_v57 = vpop.xlane.xlu1 %2354 }
 0x5d5   : > { %3124 = vrot.lane.b32.xlu1 %v4953_v51, %s5941_s30  ;;  %5603 = vrcp.f32 %v2355_v57  ;;  %v4969_v51 = vld [vmem:[#allocation3 + $0x28] sm:$0xf]  ;;  %v5389_v57 = vld [vmem:[#allocation3 + $0x14] sm:$0xf0] }
 0x5db   : > { %v5604_v6 = vpop.eup %5603 }
 0x5dc   : > { %v2357_v53 = vpop.xlane.xlu2 %2356 }
 0x5dd   : > { %3118 = vrot.lane.b32.xlu1 %v4941_v52, %s5941_s30  ;;  %5605 = vrcp.f32 %v2357_v53  ;;  %v5390_v52 = vld [vmem:[#allocation3 + $0x34] sm:$0xf0]  ;;  %v4970_v53 = vor.u32 %v5411_v38, %v4969_v51  ;;  %v5431_v51 = vld [vmem:[#allocation3 + $0x18] sm:$0xf0] }
 0x5de   : > { %v4884_v54 = vor.u32 %v5390_v52, %v4883_v15 }
 0x5e3   : > { %v5606_v7 = vpop.eup %5605 }
 0x5e4   : > { %v2689_v59 = vpop.permute.xlu2 %2688 }
 0x5e5   : > { %3116 = vrot.lane.b32.xlu1 %v4937_v37, %s5941_s30  ;;  %2704 = vmatpush.bf16.msrb.mxu0 %v2689_v59  ;;  %v4879_v37 = vld [vmem:[#allocation3 + $0x8] sm:$0xf] }
 0x5e6   : > { %v4880_v62 = vor.u32 %v5389_v57, %v4879_v37  ;;  %v5400_v57 = vld [vmem:[#allocation15 + $0x98] sm:$0xff] }
 0x5e7   : > { %3019 = vmatpush.bf16.msra.mxu1 %v5400_v57  ;;  %v5030_v57 = vld [vmem:[#allocation2 + $0x6c] sm:$0xf] }
 0x5ec   : > { %v2687_v61 = vpop.permute.xlu1 %2686 }
 0x5ed   : > { %3114 = vrot.lane.b32.xlu1 %v4933_v63, %s5941_s30  ;;  %2705 = vmatpush.bf16.msrb.mxu0 %v2687_v61  ;;  %v4965_v63 = vld [vmem:[#allocation3 + $0x8] sm:$0xf]  ;;  %v5410_v61 = vld [vmem:[#allocation3 + $0x14] sm:$0xf0] }
 0x5ee   : > { %v2418_v21 = vpop.f32.mrf.mxu2 }
 0x5ef   : > { %v2423_v9 = vmul.f32 %v5604_v6, %v2418_v21  ;;  %v4966_v21 = vor.u32 %v5410_v61, %v4965_v63  ;;  %v5409_v63 = vld [vmem:[#allocation2 + $0xf4] sm:$0xf0] }
 0x5f1   : > { %2706 = vmatpush.bf16.msrb.mxu0 %v2685_v40  ;;  %v5412_v40 = vld [vmem:[#allocation3 + $0x54] sm:$0xf0] }
 0x5f2   : > { %v4974_v31 = vor.u32 %v5412_v40, %v4973_v39 }
 0x5f4   : > { %v2683_v4 = vpop.permute.xlu1 %2682 }
 0x5f5   : > { %3072 = vrot.lane.b32.xlu1 %v4929_v2, %s5941_s30  ;;  %2707 = vmatpush.bf16.msrb.mxu0 %v2683_v4  ;;  %v5451_v2 = vld [vmem:[#allocation2 + $0xf8] sm:$0xf0] }
 0x5f6   : > { %v2420_v8 = vpop.f32.mrf.mxu2  ;;  %v5133_v6 = vor.u32 %v5451_v2, %v5132_v3  ;;  %v4948_v2 = vld [vmem:[#allocation2 + $0x88] sm:$0xf] }
 0x5f7   : > { %v2424_v11 = vmul.f32 %v5606_v7, %v2420_v8  ;;  %v5450_v7 = vld [vmem:[#allocation2 + $0xd8] sm:$0xf0] }
 0x5f9   : > { %v2427_v5 = vpack.c.bf16 %v2424_v11, %v2423_v9  ;;  %v2218_v9 = vadd.f32 %v6362_v22, %v6348_v55 }
 0x5fb   : > { %4753 = vmatmul.msk.bf16.vlgmr.msra.gmra.mxu0 %vm1748_vm0, %v2427_v5 }
 0x5fc   : > { %v2681_v13 = vpop.permute.xlu1 %2680 }
 0x5fd   : > { %3240 = vrot.lane.b32.xlu1 %v4986_v1, %s5941_s30  ;;  %2708 = vmatpush.bf16.msrb.mxu0 %v2681_v13 }
 0x604   : > { %v2679_v19 = vpop.permute.xlu1 %2678 }
 0x605   : > { %3238 = vrot.lane.b32.xlu1 %v4982_v24, %s5941_s30  ;;  %2709 = vmatpush.bf16.msrb.mxu0 %v2679_v19 }
 0x609   : > { %2961 = vmatpush.bf16.msra.mxu0 %v4908_v20  ;;  %v5079_v20 = vld [vmem:[#allocation3 + $0xec] sm:$0xf] }
 0x60a   : > { %v5080_v22 = vor.u32 %v5438_v17, %v5079_v20 }
 0x60d   : > { %2962 = vmatpush.bf16.msra.mxu0 %v4904_v26  ;;  %3236 = vrot.lane.b32.xlu1 %v4978_v33, %s5941_s30  ;;  %v5071_v26 = vld [vmem:[#allocation3 + $0xac] sm:$0xf]  ;;  %v5068_v33 = vor.u32 %v5435_v32, %v5067_v29 }
 0x60e   : > { %v5072_v27 = vor.u32 %v5436_v28, %v5071_v26  ;;  %v5042_v28 = vld [vmem:[#allocation2 + $0xcc] sm:$0xf] }
 0x611   : > { %2963 = vmatpush.bf16.msra.mxu0 %v4900_v56  ;;  %v4842_v56 = vld [vmem:[#allocation4 + $0x8] sm:$0xf] }
 0x612   : > { %v4843_v39 = vor.u32 %v5380_v30, %v4842_v56  ;;  %v5038_v30 = vld [vmem:[#allocation2 + $0xac] sm:$0xf] }
 0x615   : > { %2964 = vmatpush.bf16.msra.mxu0 %v4896_v35  ;;  %3234 = vrot.lane.b32.xlu1 %v4974_v31, %s5941_s30  ;;  %v5434_v35 = vld [vmem:[#allocation3 + $0x78] sm:$0xf0]  ;;  %v5060_v31 = vor.u32 %v5433_v44, %v5059_v43 }
 0x616   : > { %v5064_v40 = vor.u32 %v5434_v35, %v5063_v36  ;;  %v4993_v36 = vld [vmem:[#allocation3 + $0xe8] sm:$0xf]  ;;  %v5417_v35 = vld [vmem:[#allocation3 + $0xf4] sm:$0xf0] }
 0x617   : > { %v4994_v43 = vor.u32 %v5417_v35, %v4993_v36 }
 0x619   : > { %2965 = vmatpush.bf16.msra.mxu0 %v4892_v45  ;;  %v5055_v45 = vld [vmem:[#allocation3 + $0x2c] sm:$0xf] }
 0x61a   : > { %v5056_v49 = vor.u32 %v5432_v47, %v5055_v45  ;;  %v5416_v45 = vld [vmem:[#allocation3 + $0xd4] sm:$0xf0] }
 0x61d   : > { %2966 = vmatpush.bf16.msra.mxu0 %v4888_v50  ;;  %3232 = vrot.lane.b32.xlu1 %v4970_v53, %s5941_s30  ;;  %v2624_v41 = vpop.xlane.xlu2 %2623  ;;  %v5051_v50 = vld [vmem:[#allocation3 + $0xc] sm:$0xf] }
 0x61e   : > { %v2626_v59 = vsub.f32 %v6392_v46, %v2624_v41  ;;  %v5128_v46 = vld [vmem:[#allocation2 + $0xcc] sm:$0xf]  ;;  %v5052_v38 = vor.u32 %v5431_v51, %v5051_v50 }
 0x61f   : > { %v5129_v8 = vor.u32 %v5450_v7, %v5128_v46  ;;  %v4944_v46 = vld [vmem:[#allocation2 + $0x68] sm:$0xf]  ;;  %v5405_v7 = vld [vmem:[#allocation2 + $0x74] sm:$0xf0]  ;;  %v5034_v51 = vld [vmem:[#allocation2 + $0x8c] sm:$0xf] }
 0x620   : > { %v2629_v60 = vmul.f32 1.442695, %v2626_v59 }
 0x621   : > { %2967 = vmatpush.bf16.msra.mxu0 %v4884_v54 }
 0x622   : > { %5607 = vpow2.f32 %v2629_v60 }
 0x625   : > { %2968 = vmatpush.bf16.msra.mxu0 %v4880_v62  ;;  %3230 = vrot.lane.b32.xlu1 %v4966_v21, %s5941_s30  ;;  %v4960_v62 = vld [vmem:[#allocation2 + $0xe8] sm:$0xf] }
 0x626   : > { %v4961_v61 = vor.u32 %v5409_v63, %v4960_v62  ;;  %v4956_v21 = vld [vmem:[#allocation2 + $0xc8] sm:$0xf] }
 0x628   : > { %v5608_v0 = vpop.eup %5607 }
 0x629   : > { %v2637_v4 = vpack.c.bf16 %v5608_v0, %v6396_v48  ;;  %2633 = vadd.xlane.f32.xlu0 %v5608_v0  ;;  %v5408_v0 = vld [vmem:[#allocation2 + $0xd4] sm:$0xf0] }
 0x62a   : > { %v4957_v3 = vor.u32 %v5408_v0, %v4956_v21  ;;  %v5026_v0 = vld [vmem:[#allocation2 + $0x4c] sm:$0xf] }
 0x62b   : > { %2710 = vmatmul.bf16.vlgmr.msrb.gmra.mxu0 %v2637_v4  ;;  %v5406_v4 = vld [vmem:[#allocation2 + $0x94] sm:$0xf0] }
 0x62d   : > { %3680 = vrot.lane.b32.xlu1 %v5133_v6, %s5941_s30  ;;  %v4949_v6 = vor.u32 %v5406_v4, %v4948_v2 }
 0x62f   : > { %v2632_v1 = vpop.xlane.xlu1 %2631 }
 0x630   : > { %5609 = vrcp.f32 %v2632_v1  ;;  %v5418_v1 = vld [vmem:[#allocation15 + $0xa0] sm:$0xff] }
 0x635   : > { %3678 = vrot.lane.b32.xlu1 %v5129_v8, %s5941_s30  ;;  %v4945_v8 = vor.u32 %v5405_v7, %v4944_v46  ;;  %v5022_v7 = vld [vmem:[#allocation2 + $0x2c] sm:$0xf] }
 0x636   : > { %v5610_v16 = vpop.eup %5609 }
 0x678   : > { %v2472_v11 = vpop.f32.mrf.mxu0 }
 0x679   : > { %v2477_v42 = vadd.f32 %v2472_v11, %v2218_v9  ;;  %v5399_v9 = vld [vmem:[#allocation15 + $0x90] sm:$0xff]  ;;  %v5398_v11 = vld [vmem:[#allocation15 + $0x88] sm:$0xff] }
 0x67a   : > { %3020 = vmatpush.bf16.msra.mxu1 %v5399_v9 }
 0x67e   : > { %3021 = vmatpush.bf16.msra.mxu1 %v5398_v11 }
 0x680   : > { %v2474_v5 = vpop.f32.mrf.mxu0 }
 0x681   : > { %v2478_v48 = vadd.f32 %v2474_v5, %v2219_v12  ;;  %v5421_v12 = vld [vmem:[#allocation15 + $0xb8] sm:$0xff]  ;;  %v5420_v5 = vld [vmem:[#allocation15 + $0xb0] sm:$0xff] }
 0x682   : > { %3312 = vmatpush.bf16.msrb.mxu0 %v5421_v12  ;;  %v5018_v12 = vld [vmem:[#allocation2 + $0xc] sm:$0xf] }
 0x686   : > { %3313 = vmatpush.bf16.msrb.mxu0 %v5420_v5  ;;  %v5423_v5 = vld [vmem:[#allocation2 + $0x18] sm:$0xf0] }
 0x69c   : > { %v2634_v13 = vpop.xlane.xlu0 %2633 }
 0x69d   : > { %5611 = vrcp.f32 %v2634_v13 }
 0x6a3   : > { %v5612_v10 = vpop.eup %5611 }
 0x6a8   : > { %v2711_v14 = vpop.f32.mrf.mxu0 }
 0x6a9   : > { %v2716_v24 = vmul.f32 %v5610_v16, %v2711_v14 }
 0x6b0   : > { %v2713_v18 = vpop.f32.mrf.mxu0 }
 0x6b1   : > { %v2717_v19 = vmul.f32 %v5612_v10, %v2713_v18 }
 0x6b3   : > { %v2720_v55 = vpack.c.bf16 %v2717_v19, %v2716_v24 }
 0x6b5   : > { %4839 = vmatmul.msk.bf16.vlgmr.msra.gmra.mxu2 %vm1748_vm0, %v2720_v55  ;;  %v5046_v55 = vld [vmem:[#allocation2 + $0xec] sm:$0xf] }
 0x6b6   : > { %3513 = vmatpush.bf16.msra.mxu2 %v5080_v22  ;;  %v5430_v22 = vld [vmem:[#allocation2 + $0xf8] sm:$0xf0] }
 0x6b7   : > { %v5047_v25 = vor.u32 %v5430_v22, %v5046_v55 }
 0x6b9   : > { %v3430_v26 = vsel %vm1748_vm0, %v5047_v25, 0 }
 0x6ba   : > { %3514 = vmatpush.bf16.msra.mxu2 %v5076_v23 }
 0x6be   : > { %3515 = vmatpush.bf16.msra.mxu2 %v5072_v27  ;;  %v5429_v27 = vld [vmem:[#allocation2 + $0xd8] sm:$0xf0] }
 0x6bf   : > { %v5043_v29 = vor.u32 %v5429_v27, %v5042_v28 }
 0x6c1   : > { %v3427_v56 = vsel %vm1748_vm0, %v5043_v29, 0 }
 0x6c2   : > { %3516 = vmatpush.bf16.msra.mxu2 %v5068_v33 }
 0x6c5   : > { %4876 = vmatmul.msk.bf16.vlgmr.msrb.gmra.mxu2 %vm1748_vm0, %v4843_v39  ;;  %v5428_v39 = vld [vmem:[#allocation2 + $0xb8] sm:$0xf0] }
 0x6c6   : > { %3517 = vmatpush.bf16.msra.mxu2 %v5064_v40  ;;  %v3125_v40 = vpop.permute.xlu1 %3124  ;;  %v5039_v44 = vor.u32 %v5428_v39, %v5038_v30 }
 0x6c7   : > { %v3149_v47 = vsel %vm1748_vm0, %v3125_v40, 0 }
 0x6ca   : > { %3518 = vmatpush.bf16.msra.mxu2 %v5060_v31  ;;  %v4989_v31 = vld [vmem:[#allocation3 + $0xc8] sm:$0xf] }
 0x6cb   : > { %v4990_v50 = vor.u32 %v5416_v45, %v4989_v31 }
 0x6ce   : > { %3519 = vmatpush.bf16.msra.mxu2 %v5056_v49  ;;  %v3424_v49 = vsel %vm1748_vm0, %v5039_v44, 0 }
 0x6d2   : > { %3520 = vmatpush.bf16.msra.mxu2 %v5052_v38  ;;  %v5427_v38 = vld [vmem:[#allocation2 + $0x98] sm:$0xf0] }
 0x738   : > { %v2765_v15 = vpop.f32.mrf.mxu2 }
 0x739   : > { %v6421_v52 = vadd.f32 %v2765_v15, %v2477_v42  ;;  %v5397_v42 = vld [vmem:[#allocation15 + $0x80] sm:$0xff] }
 0x73a   : > { %3022 = vmatpush.bf16.msra.mxu1 %v5397_v42 }
 0x740   : > { %v2767_v53 = vpop.f32.mrf.mxu2 }
 0x741   : > { %v6423_v54 = vadd.f32 %v2767_v53, %v2478_v48  ;;  %v5419_v48 = vld [vmem:[#allocation15 + $0xa8] sm:$0xff]  ;;  %v5035_v53 = vor.u32 %v5427_v38, %v5034_v51 }
 0x742   : > { %3314 = vmatpush.bf16.msrb.mxu0 %v5419_v48  ;;  %v5449_v51 = vld [vmem:[#allocation2 + $0xb8] sm:$0xf0] }
 0x746   : > { %3315 = vmatpush.bf16.msrb.mxu0 %v5418_v1  ;;  %v5019_v1 = vor.u32 %v5423_v5, %v5018_v12 }
 0x748   : > { %v2889_v41 = vpop.f32.mrf.mxu2 }
 0x749   : > { %v2894_v37 = vsel %vm1668_vm1, %v2889_v41, -inf }
 0x74a   : > { %2896 = vmax.xlane.f32.xlu2 %v2894_v37 }
 0x750   : > { %v2891_v59 = vpop.f32.mrf.mxu2 }
 0x751   : > { %v2895_v60 = vsel %vm1668_vm1, %v2891_v59, -inf  ;;  %v5426_v59 = vld [vmem:[#allocation2 + $0x78] sm:$0xf0] }
 0x752   : > { %2898 = vmax.xlane.f32.xlu0 %v2895_v60  ;;  %v5031_v62 = vor.u32 %v5426_v59, %v5030_v57  ;;  %v5100_v57 = vld [vmem:[#allocation4 + $0xc] sm:$0xf]  ;;  %v5443_v59 = vld [vmem:[#allocation4 + $0x18] sm:$0xf0] }
 0x754   : > { %v3418_v21 = vsel %vm1748_vm0, %v5031_v62, 0  ;;  %v5165_v62 = vld [vmem:[#allocation3 + $0xec] sm:$0xf] }
 0x762   : > { %3128 = vrot.lane.b32.xlu2 %v4961_v61, %s5941_s30  ;;  %v3119_v61 = vpop.permute.xlu1 %3118 }
 0x763   : > { %v3140_v4 = vsel %vm1748_vm0, %v3119_v61, 0 }
 0x766   : > { %3126 = vrot.lane.b32.xlu0 %v4957_v3, %s5941_s30  ;;  %v5425_v3 = vld [vmem:[#allocation2 + $0x58] sm:$0xf0] }
 0x767   : > { %v5027_v2 = vor.u32 %v5425_v3, %v5026_v0  ;;  %v5457_v0 = vld [vmem:[#allocation3 + $0xb8] sm:$0xf0] }
 0x76a   : > { %3122 = vrot.lane.b32.xlu2 %v4949_v6, %s5941_s30  ;;  %v3415_v6 = vsel %vm1748_vm0, %v5027_v2, 0  ;;  %v3117_v46 = vpop.permute.xlu1 %3116  ;;  %v5153_v2 = vld [vmem:[#allocation3 + $0x8c] sm:$0xf] }
 0x76b   : > { %v3137_v11 = vsel %vm1748_vm0, %v3117_v46, 0  ;;  %v5149_v46 = vld [vmem:[#allocation3 + $0x6c] sm:$0xf] }
 0x76e   : > { %3120 = vrot.lane.b32.xlu0 %v4945_v8, %s5941_s30  ;;  %v5424_v8 = vld [vmem:[#allocation2 + $0x38] sm:$0xf0] }
 0x76f   : > { %v5023_v9 = vor.u32 %v5424_v8, %v5022_v7  ;;  %v5455_v7 = vld [vmem:[#allocation3 + $0x78] sm:$0xf0] }
 0x770   : > { %v5150_v8 = vor.u32 %v5455_v7, %v5149_v46  ;;  %v5161_v46 = vld [vmem:[#allocation3 + $0xcc] sm:$0xf]  ;;  %v5458_v7 = vld [vmem:[#allocation3 + $0xd8] sm:$0xf0] }
 0x771   : > { %v3412_v42 = vsel %vm1748_vm0, %v5023_v9, 0 }
 0x772   : > { %v3115_v48 = vpop.permute.xlu1 %3114 }
 0x7bd   : > { %v2897_v13 = vpop.xlane.xlu2 %2896 }
 0x7be   : > { %v2900_v14 = vsub.f32 %v2894_v37, %v2897_v13  ;;  %v3421_v37 = vsel %vm1748_vm0, %v5035_v53, 0  ;;  %v3134_v13 = vsel %vm1748_vm0, %v3115_v48, 0 }
 0x7c0   : > { %v2902_v16 = vmul.f32 1.442695, %v2900_v14  ;;  %v3409_v14 = vsel %vm1748_vm0, %v5019_v1, 0 }
 0x7c2   : > { %5613 = vpow2.f32 %v2902_v16  ;;  %v3073_v16 = vpop.permute.xlu1 %3072 }
 0x7c5   : > { %v3129_v10 = vpop.permute.xlu2 %3128  ;;  %v2899_v18 = vpop.xlane.xlu0 %2898 }
 0x7c6   : > { %v3155_v24 = vsel %vm1748_vm0, %v3129_v10, 0  ;;  %v2901_v19 = vsub.f32 %v2895_v60, %v2899_v18 }
 0x7c7   : > { %3157 = vmatpush.bf16.xpose.msrb.mxu1 %v3155_v24 }
 0x7c8   : > { %v5614_v20 = vpop.eup %5613  ;;  %v2904_v17 = vmul.f32 1.442695, %v2901_v19 }
 0x7c9   : > { %2906 = vadd.xlane.f32.xlu2 %v5614_v20 }
 0x7ca   : > { %5615 = vpow2.f32 %v2904_v17  ;;  %v3241_v10 = vpop.permute.xlu1 %3240 }
 0x7cd   : > { %v3123_v15 = vpop.permute.xlu2 %3122 }
 0x7ce   : > { %v3146_v41 = vsel %vm1748_vm0, %v3123_v15, 0  ;;  %v5447_v15 = vld [vmem:[#allocation2 + $0x78] sm:$0xf0] }
 0x7d0   : > { %v5616_v58 = vpop.eup %5615 }
 0x7d1   : > { %v2912_v23 = vpack.c.bf16 %v5616_v58, %v5614_v20  ;;  %2908 = vadd.xlane.f32.xlu0 %v5616_v58 }
 0x7d2   : > { %v3239_v18 = vpop.permute.xlu1 %3238 }
 0x7d3   : > { %2969 = vmatmul.bf16.vlgmr.msra.gmra.mxu0 %v2912_v23 }
 0x7d4   : > { %3432 = vmatpush.bf16.xpose.msra.mxu0 %v3430_v26 }
 0x7d8   : > { %v3127_v32 = vpop.permute.xlu0 %3126 }
 0x7d9   : > { %v3152_v33 = vsel %vm1748_vm0, %v3127_v32, 0 }
 0x7da   : > { %3158 = vmatpush.bf16.xpose.msrb.mxu1 %v3152_v33  ;;  %v3237_v19 = vpop.permute.xlu1 %3236 }
 0x7dc   : > { %3433 = vmatpush.bf16.xpose.msra.mxu0 %v3427_v56 }
 0x7e0   : > { %v3121_v60 = vpop.permute.xlu0 %3120 }
 0x7e1   : > { %3244 = vrot.lane.b32.xlu2 %v4994_v43, %s5941_s30  ;;  %v3143_v63 = vsel %vm1748_vm0, %v3121_v60, 0  ;;  %v5101_v60 = vor.u32 %v5443_v59, %v5100_v57 }
 0x7e2   : > { %3159 = vmatpush.bf16.xpose.msrb.mxu1 %v3149_v47  ;;  %v3235_v17 = vpop.permute.xlu1 %3234 }
 0x7e4   : > { %3434 = vmatpush.bf16.xpose.msra.mxu0 %v3424_v49 }
 0x7e5   : > { %3242 = vrot.lane.b32.xlu0 %v4990_v50, %s5941_s30  ;;  %v5124_v50 = vld [vmem:[#allocation2 + $0xac] sm:$0xf] }
 0x7e6   : > { %v5125_v38 = vor.u32 %v5449_v51, %v5124_v50 }
 0x7ea   : > { %3160 = vmatpush.bf16.xpose.msrb.mxu1 %v3146_v41  ;;  %v3233_v58 = vpop.permute.xlu1 %3232  ;;  %v5445_v41 = vld [vmem:[#allocation2 + $0x38] sm:$0xf0] }
 0x7ec   : > { %3435 = vmatpush.bf16.xpose.msra.mxu0 %v3421_v37 }
 0x7f2   : > { %3161 = vmatpush.bf16.xpose.msrb.mxu1 %v3143_v63  ;;  %v3231_v33 = vpop.permute.xlu1 %3230  ;;  %v5459_v63 = vld [vmem:[#allocation3 + $0xf8] sm:$0xf0] }
 0x7f3   : > { %v5166_v61 = vor.u32 %v5459_v63, %v5165_v62 }
 0x7f4   : > { %3436 = vmatpush.bf16.xpose.msra.mxu0 %v3418_v21  ;;  %v5157_v21 = vld [vmem:[#allocation3 + $0xac] sm:$0xf] }
 0x7f5   : > { %v5158_v3 = vor.u32 %v5457_v0, %v5157_v21 }
 0x7fa   : > { %3162 = vmatpush.bf16.xpose.msrb.mxu1 %v3140_v4  ;;  %v3681_v56 = vpop.permute.xlu1 %3680  ;;  %v5456_v4 = vld [vmem:[#allocation3 + $0x98] sm:$0xf0] }
 0x7fb   : > { %v3707_v30 = vsel %vm1748_vm0, %v3681_v56, 0 }
 0x7fc   : > { %3437 = vmatpush.bf16.xpose.msra.mxu0 %v3415_v6  ;;  %v5154_v6 = vor.u32 %v5456_v4, %v5153_v2  ;;  %v5453_v4 = vld [vmem:[#allocation3 + $0x38] sm:$0xf0] }
 0x802   : > { %3163 = vmatpush.bf16.xpose.msrb.mxu1 %v3137_v11  ;;  %v3679_v36 = vpop.permute.xlu1 %3678 }
 0x803   : > { %v3704_v35 = vsel %vm1748_vm0, %v3679_v36, 0 }
 0x804   : > { %3438 = vmatpush.bf16.xpose.msra.mxu0 %v3412_v42 }
 0x80a   : > { %3164 = vmatpush.bf16.xpose.msrb.mxu1 %v3134_v13 }
 0x80c   : > { %3439 = vmatpush.bf16.xpose.msra.mxu0 %v3409_v14 }
 0x83c   : > { %v2907_v24 = vpop.xlane.xlu2 %2906 }
 0x83d   : > { %5617 = vrcp.f32 %v2907_v24 }
 0x843   : > { %v5618_v25 = vpop.eup %5617 }
 0x844   : > { %v3245_v20 = vpop.permute.xlu2 %3244  ;;  %v2909_v55 = vpop.xlane.xlu0 %2908 }
 0x845   : > { %3254 = vmatpush.bf16.msrb.mxu3 %v3245_v20  ;;  %5619 = vrcp.f32 %v2909_v55  ;;  %v5448_v20 = vld [vmem:[#allocation2 + $0x98] sm:$0xf0] }
 0x84b   : > { %v5620_v26 = vpop.eup %5619 }
 0x850   : > { %v2970_v22 = vpop.f32.mrf.mxu0 }
 0x851   : > { %v2975_v27 = vmul.f32 %v5618_v25, %v2970_v22  ;;  %v5112_v22 = vld [vmem:[#allocation2 + $0x4c] sm:$0xf]  ;;  %v5446_v25 = vld [vmem:[#allocation2 + $0x58] sm:$0xf0] }
 0x857   : > { %v3243_v23 = vpop.permute.xlu0 %3242 }
 0x858   : > { %v2972_v28 = vpop.f32.mrf.mxu0  ;;  %3255 = vmatpush.bf16.msrb.mxu3 %v3243_v23 }
 0x859   : > { %v2976_v29 = vmul.f32 %v5620_v26, %v2972_v28  ;;  %v5104_v26 = vld [vmem:[#allocation2 + $0xc] sm:$0xf]  ;;  %v5444_v28 = vld [vmem:[#allocation2 + $0x18] sm:$0xf0] }
 0x85b   : > { %v2979_v32 = vpack.c.bf16 %v2976_v29, %v2975_v27  ;;  %v5105_v27 = vor.u32 %v5444_v28, %v5104_v26 }
 0x85c   : > { %3256 = vmatpush.bf16.msrb.mxu3 %v3241_v10 }
 0x85d   : > { %4925 = vmatmul.msk.bf16.vlgmr.msra.gmra.mxu1 %vm1748_vm0, %v2979_v32 }
 0x860   : > { %3257 = vmatpush.bf16.msrb.mxu3 %v3239_v18 }
 0x864   : > { %3258 = vmatpush.bf16.msrb.mxu3 %v3237_v19  ;;  %v5120_v19 = vld [vmem:[#allocation2 + $0x8c] sm:$0xf] }
 0x868   : > { %3259 = vmatpush.bf16.msrb.mxu3 %v3235_v17  ;;  %v5121_v17 = vor.u32 %v5448_v20, %v5120_v19 }
 0x86c   : > { %3260 = vmatpush.bf16.msrb.mxu3 %v3233_v58  ;;  %v5113_v58 = vor.u32 %v5446_v25, %v5112_v22 }
 0x86d   : > { %4962 = vmatmul.msk.bf16.vlgmr.msrb.gmra.mxu1 %vm1748_vm0, %v3073_v16 }
 0x870   : > { %3261 = vmatpush.bf16.msrb.mxu3 %v3231_v33 }
 0x874   : > { %3709 = vmatpush.bf16.xpose.msra.mxu3 %v3707_v30 }
 0x87c   : > { %3710 = vmatpush.bf16.xpose.msra.mxu3 %v3704_v35 }
 0x8da   : > { %v3024_v39 = vpop.f32.mrf.mxu1 }
 0x8db   : > { %v6456_v40 = vadd.f32 %v3024_v39, %v6421_v52  ;;  %v5116_v52 = vld [vmem:[#allocation2 + $0x6c] sm:$0xf] }
 0x8dc   : > { %v5117_v53 = vor.u32 %v5447_v15, %v5116_v52  ;;  %v5014_v52 = vld [vmem:[#allocation4 + $0xc] sm:$0xf]  ;;  %v5422_v15 = vld [vmem:[#allocation4 + $0x18] sm:$0xf0] }
 0x8e2   : > { %v3026_v43 = vpop.f32.mrf.mxu1 }
 0x8e3   : > { %v6459_v44 = vadd.f32 %v3026_v43, %v6423_v54  ;;  %v5108_v54 = vld [vmem:[#allocation2 + $0x2c] sm:$0xf] }
 0x8e4   : > { %v5109_v37 = vor.u32 %v5445_v41, %v5108_v54  ;;  %v5015_v54 = vor.u32 %v5422_v15, %v5014_v52 }
 0x8ea   : > { %v3166_v31 = vpop.f32.mrf.mxu1 }
 0x8eb   : > { %v3171_v45 = vsel %vm1668_vm1, %v3166_v31, -inf }
 0x8ec   : > { %3173 = vmax.xlane.f32.xlu2 %v3171_v45 }
 0x8f2   : > { %v3168_v47 = vpop.f32.mrf.mxu1 }
 0x8f3   : > { %v3172_v49 = vsel %vm1668_vm1, %v3168_v47, -inf }
 0x8f4   : > { %3175 = vmax.xlane.f32.xlu0 %v3172_v49 }
 0x904   : > { %3676 = vrot.lane.b32.xlu2 %v5125_v38, %s5941_s30 }
 0x90c   : > { %3672 = vrot.lane.b32.xlu2 %v5117_v53, %s5941_s30 }
 0x914   : > { %3668 = vrot.lane.b32.xlu2 %v5109_v37, %s5941_s30 }
 0x91c   : > { %3624 = vrot.lane.b32.xlu2 %v5101_v60, %s5941_s30 }
 0x924   : > { %3796 = vrot.lane.b32.xlu2 %v5166_v61, %s5941_s30 }
 0x92c   : > { %3792 = vrot.lane.b32.xlu2 %v5158_v3, %s5941_s30  ;;  %v5454_v3 = vld [vmem:[#allocation3 + $0x58] sm:$0xf0] }
 0x934   : > { %3790 = vrot.lane.b32.xlu2 %v5154_v6, %s5941_s30 }
 0x93c   : > { %3788 = vrot.lane.b32.xlu2 %v5150_v8, %s5941_s30  ;;  %v5162_v8 = vor.u32 %v5458_v7, %v5161_v46  ;;  %v5580_v46 = vld [vmem:[%s6555_s6] ss:$0 sm:$0xff] }
 0x95f   : > { %v3174_v9 = vpop.xlane.xlu2 %3173 }
 0x960   : > { %v3177_v11 = vsub.f32 %v3171_v45, %v3174_v9  ;;  %v5137_v9 = vld [vmem:[#allocation3 + $0xc] sm:$0xf] }
 0x962   : > { %v3179_v42 = vmul.f32 1.442695, %v3177_v11  ;;  %v5452_v11 = vld [vmem:[#allocation3 + $0x18] sm:$0xf0] }
 0x964   : > { %5621 = vpow2.f32 %v3179_v42  ;;  %v5138_v42 = vor.u32 %v5452_v11, %v5137_v9 }
 0x967   : > { %v3677_v12 = vpop.permute.xlu2 %3676  ;;  %v3176_v5 = vpop.xlane.xlu0 %3175 }
 0x968   : > { %v3701_v48 = vsel %vm1748_vm0, %v3677_v12, 0  ;;  %v3178_v1 = vsub.f32 %v3172_v49, %v3176_v5 }
 0x969   : > { %3711 = vmatpush.bf16.xpose.msra.mxu3 %v3701_v48 }
 0x96a   : > { %v5622_v13 = vpop.eup %5621  ;;  %v3181_v14 = vmul.f32 1.442695, %v3178_v1 }
 0x96b   : > { %3183 = vadd.xlane.f32.xlu0 %v5622_v13 }
 0x96c   : > { %5623 = vpow2.f32 %v3181_v14 }
 0x96f   : > { %v3673_v16 = vpop.permute.xlu2 %3672 }
 0x970   : > { %v3695_v36 = vsel %vm1748_vm0, %v3673_v16, 0 }
 0x972   : > { %v5624_v10 = vpop.eup %5623 }
 0x973   : > { %v3189_v18 = vpack.c.bf16 %v5624_v10, %v5622_v13  ;;  %3185 = vadd.xlane.f32.xlu1 %v5624_v10 }
 0x975   : > { %3262 = vmatmul.bf16.vlgmr.msrb.gmra.mxu3 %v3189_v18 }
 0x977   : > { %v3669_v24 = vpop.permute.xlu2 %3668 }
 0x978   : > { %v3689_v51 = vsel %vm1748_vm0, %v3669_v24, 0 }
 0x97f   : > { %v3625_v55 = vpop.permute.xlu2 %3624  ;;  %3674 = vrot.lane.b32.xlu0 %v5121_v17, %s5941_s30 }
 0x987   : > { %v3797_v23 = vpop.permute.xlu2 %3796  ;;  %3670 = vrot.lane.b32.xlu0 %v5113_v58, %s5941_s30 }
 0x988   : > { %3806 = vmatpush.bf16.msra.mxu1 %v3797_v23 }
 0x98f   : > { %3666 = vrot.lane.b32.xlu0 %v5105_v27, %s5941_s30  ;;  %v3793_v48 = vpop.permute.xlu2 %3792 }
 0x997   : > { %v3791_v1 = vpop.permute.xlu2 %3790 }
 0x99f   : > { %v3789_v16 = vpop.permute.xlu2 %3788 }
 0x9de   : > { %v3184_v29 = vpop.xlane.xlu0 %3183 }
 0x9df   : > { %5625 = vrcp.f32 %v3184_v29 }
 0x9e5   : > { %v5626_v35 = vpop.eup %5625 }
 0x9e6   : > { %v3186_v56 = vpop.xlane.xlu1 %3185 }
 0x9e7   : > { %5627 = vrcp.f32 %v3186_v56 }
 0x9ed   : > { %v5628_v43 = vpop.eup %5627 }
 0x9f1   : > { %v3675_v32 = vpop.permute.xlu0 %3674 }
 0x9f2   : > { %v3698_v33 = vsel %vm1748_vm0, %v3675_v32, 0 }
 0x9f3   : > { %3712 = vmatpush.bf16.xpose.msra.mxu3 %v3698_v33 }
 0x9f8   : > { %v3263_v30 = vpop.f32.mrf.mxu3 }
 0x9f9   : > { %v3671_v39 = vpop.permute.xlu0 %3670  ;;  %v3268_v45 = vmul.f32 %v5626_v35, %v3263_v30  ;;  %v5441_v35 = vld [vmem:[#allocation15 + $0xd0] sm:$0xff] }
 0x9fa   : > { %v3692_v49 = vsel %vm1748_vm0, %v3671_v39, 0  ;;  %v5440_v39 = vld [vmem:[#allocation15 + $0xc8] sm:$0xff] }
 0x9fb   : > { %3713 = vmatpush.bf16.xpose.msra.mxu3 %v3695_v36  ;;  %v5442_v36 = vld [vmem:[#allocation15 + $0xd8] sm:$0xff] }
 0x9fc   : > { %3571 = vmatpush.bf16.msrb.mxu2 %v5442_v36 }
 0xa00   : > { %v3265_v31 = vpop.f32.mrf.mxu3  ;;  %3572 = vmatpush.bf16.msrb.mxu2 %v5441_v35 }
 0xa01   : > { %v3269_v47 = vmul.f32 %v5628_v43, %v3265_v31  ;;  %v3667_v38 = vpop.permute.xlu0 %3666  ;;  %v5439_v43 = vld [vmem:[#allocation15 + $0xc0] sm:$0xff] }
 0xa02   : > { %v3686_v53 = vsel %vm1748_vm0, %v3667_v38, 0 }
 0xa03   : > { %v3272_v50 = vpack.c.bf16 %v3269_v47, %v3268_v45  ;;  %3714 = vmatpush.bf16.xpose.msra.mxu3 %v3692_v49 }
 0xa04   : > { %3573 = vmatpush.bf16.msrb.mxu2 %v5440_v39 }
 0xa05   : > { %5011 = vmatmul.msk.bf16.vlgmr.msrb.gmra.mxu0 %vm1748_vm0, %v3272_v50 }
 0xa08   : > { %3574 = vmatpush.bf16.msrb.mxu2 %v5439_v43 }
 0xa0b   : > { %3715 = vmatpush.bf16.xpose.msra.mxu3 %v3689_v51 }
 0xa13   : > { %3716 = vmatpush.bf16.xpose.msra.mxu3 %v3686_v53  ;;  %v5463_v53 = vld [vmem:[#allocation15 + $0xf8] sm:$0xff] }
 0xa15   : > { %5048 = vmatmul.msk.bf16.vlgmr.msra.gmra.mxu0 %vm1748_vm0, %v5015_v54  ;;  %v5462_v54 = vld [vmem:[#allocation15 + $0xf0] sm:$0xff] }
 0xa1a   : > { %5134 = vmatmul.msk.bf16.vlgmr.msra.gmra.mxu3 %vm1748_vm0, %v3625_v55 }
 0xa82   : > { %v3317_v41 = vpop.f32.mrf.mxu0 }
 0xa83   : > { %v6486_v37 = vadd.f32 %v3317_v41, %v6456_v40  ;;  %v5145_v40 = vld [vmem:[#allocation3 + $0x4c] sm:$0xf]  ;;  %v5461_v41 = vld [vmem:[#allocation15 + $0xe8] sm:$0xff] }
 0xa84   : > { %v5146_v2 = vor.u32 %v5454_v3, %v5145_v40 }
 0xa8a   : > { %v3319_v57 = vpop.f32.mrf.mxu0 }
 0xa8b   : > { %v6489_v59 = vadd.f32 %v3319_v57, %v6459_v44  ;;  %v5141_v44 = vld [vmem:[#allocation3 + $0x2c] sm:$0xf]  ;;  %v5460_v57 = vld [vmem:[#allocation15 + $0xe0] sm:$0xff] }
 0xa8c   : > { %v5142_v6 = vor.u32 %v5453_v4, %v5141_v44 }
 0xa92   : > { %v3441_v60 = vpop.f32.mrf.mxu0 }
 0xa93   : > { %v3446_v62 = vsel %vm1668_vm1, %v3441_v60, -inf }
 0xa94   : > { %3448 = vmax.xlane.f32.xlu0 %v3446_v62 }
 0xa9a   : > { %v3443_v63 = vpop.f32.mrf.mxu0 }
 0xa9b   : > { %v3447_v61 = vsel %vm1668_vm1, %v3443_v63, -inf }
 0xa9c   : > { %3450 = vmax.xlane.f32.xlu1 %v3447_v61 }
 0xa9d   : > { %v3718_v21 = vpop.f32.mrf.mxu3 }
 0xa9e   : > { %v3723_v0 = vsel %vm1668_vm1, %v3718_v21, -inf }
 0xa9f   : > { %3725 = vmax.xlane.f32.xlu2 %v3723_v0 }
 0xaa5   : > { %v3720_v12 = vpop.f32.mrf.mxu3 }
 0xaa6   : > { %v3724_v5 = vsel %vm1668_vm1, %v3720_v12, -inf }
 0xaa8   : > { %3786 = vrot.lane.b32.xlu0 %v5146_v2, %s5941_s30 }
 0xab0   : > { %3784 = vrot.lane.b32.xlu0 %v5142_v6, %s5941_s30 }
 0xab5   : > { %3794 = vrot.lane.b32.xlu1 %v5162_v8, %s5941_s30 }
 0xab8   : > { %3782 = vrot.lane.b32.xlu0 %v5138_v42, %s5941_s30 }
 0xadf   : > { %3727 = vmax.xlane.f32.xlu1 %v3724_v5 }
 0xb07   : > { %v3449_v13 = vpop.xlane.xlu0 %3448 }
 0xb08   : > { %v3452_v14 = vsub.f32 %v3446_v62, %v3449_v13 }
 0xb0a   : > { %v3454_v10 = vmul.f32 1.442695, %v3452_v14 }
 0xb0c   : > { %5629 = vpow2.f32 %v3454_v10 }
 0xb0f   : > { %v3451_v18 = vpop.xlane.xlu1 %3450 }
 0xb10   : > { %v3453_v24 = vsub.f32 %v3447_v61, %v3451_v18 }
 0xb12   : > { %v5630_v19 = vpop.eup %5629  ;;  %v3456_v20 = vmul.f32 1.442695, %v3453_v24  ;;  %v3726_v17 = vpop.xlane.xlu2 %3725 }
 0xb13   : > { %v3729_v55 = vsub.f32 %v3723_v0, %v3726_v17  ;;  %3458 = vadd.xlane.f32.xlu2 %v5630_v19 }
 0xb14   : > { %5631 = vpow2.f32 %v3456_v20 }
 0xb15   : > { %v3731_v22 = vmul.f32 1.442695, %v3729_v55 }
 0xb17   : > { %5633 = vpow2.f32 %v3731_v22 }
 0xb1a   : > { %v5632_v34 = vpop.eup %5631  ;;  %v3787_v26 = vpop.permute.xlu0 %3786 }
 0xb1b   : > { %v3464_v25 = vpack.c.bf16 %v5632_v34, %v5630_v19  ;;  %3460 = vadd.xlane.f32.xlu1 %v5632_v34 }
 0xb1d   : > { %v5634_v58 = vpop.eup %5633  ;;  %3521 = vmatmul.bf16.vlgmr.msra.gmra.mxu2 %v3464_v25 }
 0xb1e   : > { %3735 = vadd.xlane.f32.xlu0 %v5634_v58  ;;  %3864 = vmatpush.bf16.msra.mxu2 %v5463_v53 }
 0xb22   : > { %v3785_v28 = vpop.permute.xlu0 %3784  ;;  %3865 = vmatpush.bf16.msra.mxu2 %v5462_v54 }
 0xb26   : > { %3866 = vmatpush.bf16.msra.mxu2 %v5461_v41 }
 0xb27   : > { %v3795_v23 = vpop.permute.xlu1 %3794 }
 0xb28   : > { %3807 = vmatpush.bf16.msra.mxu1 %v3795_v23 }
 0xb2a   : > { %v3783_v27 = vpop.permute.xlu0 %3782  ;;  %3867 = vmatpush.bf16.msra.mxu2 %v5460_v57 }
 0xb2c   : > { %3808 = vmatpush.bf16.msra.mxu1 %v3793_v48 }
 0xb30   : > { %3809 = vmatpush.bf16.msra.mxu1 %v3791_v1 }
 0xb34   : > { %3810 = vmatpush.bf16.msra.mxu1 %v3789_v16 }
 0xb38   : > { %3811 = vmatpush.bf16.msra.mxu1 %v3787_v26 }
 0xb3c   : > { %3812 = vmatpush.bf16.msra.mxu1 %v3785_v28 }
 0xb40   : > { %3813 = vmatpush.bf16.msra.mxu1 %v3783_v27 }
 0xb52   : > { %v3728_v29 = vpop.xlane.xlu1 %3727 }
 0xb53   : > { %v3730_v32 = vsub.f32 %v3724_v5, %v3728_v29 }
 0xb55   : > { %v3733_v33 = vmul.f32 1.442695, %v3730_v32 }
 0xb57   : > { %5635 = vpow2.f32 %v3733_v33 }
 0xb5d   : > { %v5636_v56 = vpop.eup %5635 }
 0xb5e   : > { %v3741_v30 = vpack.c.bf16 %v5636_v56, %v5634_v58  ;;  %3737 = vadd.xlane.f32.xlu2 %v5636_v56 }
 0xb60   : > { %3814 = vmatmul.bf16.vlgmr.msra.gmra.mxu1 %v3741_v30 }
 0xb86   : > { %v3459_v31 = vpop.xlane.xlu2 %3458 }
 0xb87   : > { %5637 = vrcp.f32 %v3459_v31 }
 0xb8d   : > { %v5638_v49 = vpop.eup %5637 }
 0xb8e   : > { %v3461_v45 = vpop.xlane.xlu1 %3460 }
 0xb8f   : > { %5639 = vrcp.f32 %v3461_v45 }
 0xb91   : > { %v3736_v60 = vpop.xlane.xlu0 %3735 }
 0xb92   : > { %5641 = vrcp.f32 %v3736_v60 }
 0xb95   : > { %v5640_v50 = vpop.eup %5639 }
 0xb98   : > { %v5642_v61 = vpop.eup %5641 }
 0xba0   : > { %v3522_v47 = vpop.f32.mrf.mxu2 }
 0xba1   : > { %v3527_v38 = vmul.f32 %v5638_v49, %v3522_v47 }
 0xba8   : > { %v3524_v51 = vpop.f32.mrf.mxu2 }
 0xba9   : > { %v3528_v52 = vmul.f32 %v5640_v50, %v3524_v51 }
 0xbab   : > { %v3531_v15 = vpack.c.bf16 %v3528_v52, %v3527_v38 }
 0xbad   : > { %5097 = vmatmul.msk.bf16.vlgmr.msrb.gmra.mxu2 %vm1748_vm0, %v3531_v15 }
 0xbd1   : > { %v3738_v62 = vpop.xlane.xlu2 %3737 }
 0xbd2   : > { %5643 = vrcp.f32 %v3738_v62 }
 0xbd8   : > { %v5644_v21 = vpop.eup %5643 }
 0xbdd   : > { %v3815_v63 = vpop.f32.mrf.mxu1 }
 0xbde   : > { %v3820_v40 = vmul.f32 %v5642_v61, %v3815_v63 }
 0xbe5   : > { %v3817_v0 = vpop.f32.mrf.mxu1 }
 0xbe6   : > { %v3821_v3 = vmul.f32 %v5644_v21, %v3817_v0 }
 0xbe8   : > { %v3824_v2 = vpack.c.bf16 %v3821_v3, %v3820_v40 }
 0xbea   : > { %5183 = vmatmul.msk.bf16.vlgmr.msra.gmra.mxu2 %vm1748_vm0, %v3824_v2 }
 0xc30   : > { %v3576_v44 = vpop.f32.mrf.mxu2 }
 0xc31   : > { %v3581_v6 = vadd.f32 %v3576_v44, %v6486_v37 }
 0xc38   : > { %v3578_v4 = vpop.f32.mrf.mxu2 }
 0xc39   : > { %v3582_v37 = vadd.f32 %v3578_v4, %v6489_v59 }
 0xc6d   : > { %v3869_v7 = vpop.f32.mrf.mxu2 }
 0xc6e   : > { %v3874_v8 = vadd.f32 %v3869_v7, %v3581_v6 }
 0xc70   : > { %v3884_v9 = vadd.f32 %v5580_v46, %v3874_v8 }
 0xc72   : > { %3886 = vst [vmem:[%s424_s11] sm:$0xff] %v3884_v9 }
 0xc75   : > { %v3871_v11 = vpop.f32.mrf.mxu2 }
 0xc76   : > { %v3875_v42 = vadd.f32 %v3871_v11, %v3582_v37 }
 0xc78   : > { %v3885_v12 = vadd.f32 %v5580_v46, %v3875_v42 }
 0xc7a   : > { %3887 = vst [vmem:[%s424_s11 + $0x8] sm:$0xff] %v3885_v12 }
 0xc7b   : > { %5860 = shalt.err (!%p5857_p0)
}
 0xc7c   : > { %s5942_s3 = smov 128   ;;  %s5943_s10 = smov 8  }
 0xc7d   : > { %5485 = dma.vmem_to_hbm [thread:$0]  (%p6084_p7), %s3904_s19, 256, %s3906_s15, %s3889_s8, %s5942_s3, %s5942_s3, %s5943_s10  }
 0xc7e PF: > { %s3920_s30 = sand.u32 1, %s5911_s24   ;;  %p5508_p3 = pnand %p4061_p11, %p6029_p6 }
 0xc7f   : > { %s3921_s9 = scalar_lea.sflag [#allocation8], %s3920_s30 }
 0xc80   : > { %p5509_p5 = pneg %p5508_p3 }
 0xc82   : > { %5906 = dma.done.wait (%p5509_p5), %s3921_s9, 256  }
 0xc83   : > { %5908 = vsyncadd (%p5509_p5), %s3921_s9, 4294967040  ;;  %s28_s29 = sadd.s32 1, %s5931_s29   ;;  %s6585_s22 = sld [smem:[#allocation24_spill]] }
 0xc84   : > { %p25_p9 = scmp.ge.s32.totalorder %s28_s29, 4   ;;  %s6586_s26 = sld [smem:[#allocation27_spill]] }
 0xc85   : > { %s6587_s17 = sld [smem:[#allocation26_spill]]  ;;  %s6588_s24 = smov %s5915_s25 }
 0xc86   : > { %s6590_s27 = smov %s5927_s28 }
 0xc87   :  { %27 = sbr.rel (!%p25_p9) target bundleno = 15 (0xf), region = 126 }
 0xc89   : > { %s6589_s25 = smov %s6585_s22 }
 0xc8b   : > { %s6591_s28 = smov %s6587_s17 }
 0xc8c   :  { %3927 = vsyncpa [#allocation7], 1 }
 0xc8d   :  { %3929 = vsyncpa [#allocation7 + $0x1], 1 }
 0xc8e   :  { %3930 = vsyncpa [#allocation10], 1 }
 0xc8f   :  { %3932 = vsyncpa [#allocation10 + $0x1], 1 }
 0xc90   :  { %3933 = vsyncpa [#allocation13], 1 }
 0xc91   :  { %3934 = vsyncpa [#allocation16], 1 }
 0xc92   :  { %3935 = vsyncpa [#allocation8], 1 }
 0xc93   :  { %3937 = vsyncpa [#allocation8 + $0x1], 1 }

</bundles_post_ra>
